<compile_context>
chip_gen: v5e
topology: v5e:2x2
jax: 0.10.0
libtpu: 0.0.40
codegen_flags: <defaults>
</compile_context>

<pallas_src>
import functools

import jax
import jax.numpy as jnp
from jax.experimental import pallas as pl
from jax.experimental.pallas import tpu as pltpu


def _round_up(x, m):
    return (x + m - 1) // m * m


def _age_classify_kernel(x_ref, w1_ref, c1_ref, w2_ref, c2_ref, w3_ref, b3_ref,
                         o_ref, h1_ref):
    j = pl.program_id(0)
    nj = pl.num_programs(0)

    # Step 0: layer 1 (Linear with BN folded into W -> +c -> ReLU).
    # h1 stays resident in VMEM (bf16) across all grid steps.
    @pl.when(j == 0)
    def _():
        h1 = jnp.dot(x_ref[...].astype(jnp.bfloat16), w1_ref[...],
                     preferred_element_type=jnp.float32)
        h1 = jnp.maximum(h1 + c1_ref[...], 0.0)
        h1_ref[...] = h1.astype(jnp.bfloat16)
        o_ref[...] = jnp.zeros_like(o_ref)

    # Every step: one column tile of layer 2, immediately reduced into the head.
    h2 = jnp.dot(h1_ref[...], w2_ref[...], preferred_element_type=jnp.float32)
    h2 = jnp.maximum(h2 + c2_ref[...], 0.0)
    o_ref[...] += jnp.dot(h2.astype(jnp.bfloat16), w3_ref[...],
                          preferred_element_type=jnp.float32)

    # Last step: add the head bias.
    @pl.when(j == nj - 1)
    def _():
        o_ref[...] += b3_ref[...]


def age_classify_forward(x, params):
    """x: [B, input_size] float32.  Returns [B, 10] float32."""
    (w1, c1, w2, c2, w3, b3) = params

    B, F = x.shape
    Fp, H = w1.shape          # padded input (512) / hidden (1024)
    O = w3.shape[1]           # padded output (128)

    Bp = _round_up(B, 8)
    if B == Bp and F == Fp:
        xp = x                # already (8,128)-aligned: skip the pad round-trip
    else:
        xp = jnp.zeros((Bp, Fp), jnp.float32).at[:B, :F].set(x)

    # Coarse streaming tile over hidden columns: 2 steps at H=1024.
    TN = 512 if H % 512 == 0 else 256
    nj = H // TN

    flops = 2 * Bp * (Fp * H + H * H + H * O)
    bytes_accessed = int(
        Bp * Fp * 4
        + sum(int(p.size) * p.dtype.itemsize for p in params)
        + Bp * O * 4)

    out = pl.pallas_call(
        _age_classify_kernel,
        out_shape=jax.ShapeDtypeStruct((Bp, O), jnp.float32),
        grid=(nj,),
        in_specs=[
            pl.BlockSpec((Bp, Fp), lambda j: (0, 0)),   # x   (resident, f32)
            pl.BlockSpec((Fp, H), lambda j: (0, 0)),    # w1  (resident, bf16)
            pl.BlockSpec((1, H), lambda j: (0, 0)),     # c1  (BN1 shift + bias)
            pl.BlockSpec((H, TN), lambda j: (0, j)),    # w2 column tile (streamed)
            pl.BlockSpec((1, TN), lambda j: (0, j)),    # c2 tile
            pl.BlockSpec((TN, O), lambda j: (j, 0)),    # w3 row tile (streamed)
            pl.BlockSpec((1, O), lambda j: (0, 0)),     # b3
        ],
        out_specs=pl.BlockSpec((Bp, O), lambda j: (0, 0)),   # resident f32 accumulator
        scratch_shapes=[pltpu.VMEM((Bp, H), jnp.bfloat16)],  # h1 activations
        compiler_params=pltpu.CompilerParams(
            dimension_semantics=("arbitrary",)),
        cost_estimate=pl.CostEstimate(flops=flops, transcendentals=0,
                                      bytes_accessed=bytes_accessed),
    )(xp, w1, c1, w2, c2, w3, b3)

    return out[:B, :10]


def make_params(key, input_size, hidden=1000, n_out=10, eps=1e-5):
    """Deterministic synthetic parameters (PyTorch-equivalent shapes), BN-folded,
    padded to TPU-friendly sizes (zero padding contributes nothing), weights in bf16."""
    Fp = _round_up(input_size, 128)
    H = _round_up(hidden, 128)       # 1024
    O = _round_up(n_out, 128)        # 128

    ks = jax.random.split(key, 14)

    def linear(kw, kb, fan_in, fan_out):
        bound = 1.0 / jnp.sqrt(fan_in)
        w = jax.random.uniform(kw, (fan_in, fan_out), jnp.float32, -bound, bound)
        b = jax.random.uniform(kb, (fan_out,), jnp.float32, -bound, bound)
        return w, b

    w1, b1 = linear(ks[0], ks[1], input_size, hidden)
    w2, b2 = linear(ks[2], ks[3], hidden, hidden)
    w3, b3 = linear(ks[4], ks[5], hidden, n_out)

    def bn(kg, kb, km, kv, n):
        gamma = 1.0 + 0.1 * jax.random.normal(kg, (n,), jnp.float32)
        beta = 0.1 * jax.random.normal(kb, (n,), jnp.float32)
        mean = 0.1 * jax.random.normal(km, (n,), jnp.float32)
        var = jnp.abs(jax.random.normal(kv, (n,), jnp.float32)) + 0.5
        return gamma, beta, mean, var

    g1, be1, m1, v1 = bn(ks[6], ks[7], ks[8], ks[9], hidden)
    g2, be2, m2, v2 = bn(ks[10], ks[11], ks[12], ks[13], hidden)

    # Fold BN:  relu((xW + b - m) * a + beta) = relu(x (W*a) + (a*b + beta - m*a))
    a1 = g1 / jnp.sqrt(v1 + eps)
    c1 = a1 * b1 + (be1 - m1 * a1)
    a2 = g2 / jnp.sqrt(v2 + eps)
    c2 = a2 * b2 + (be2 - m2 * a2)
    w1f = (w1 * a1[None, :]).astype(jnp.bfloat16)
    w2f = (w2 * a2[None, :]).astype(jnp.bfloat16)
    w3f = w3.astype(jnp.bfloat16)

    # Pad (zero padding => padded lanes stay exactly zero through the network).
    w1p = jnp.zeros((Fp, H), jnp.bfloat16).at[:input_size, :hidden].set(w1f)
    c1p = jnp.zeros((1, H), jnp.float32).at[0, :hidden].set(c1)
    w2p = jnp.zeros((H, H), jnp.bfloat16).at[:hidden, :hidden].set(w2f)
    c2p = jnp.zeros((1, H), jnp.float32).at[0, :hidden].set(c2)
    w3p = jnp.zeros((H, O), jnp.bfloat16).at[:hidden, :n_out].set(w3f)
    b3p = jnp.zeros((1, O), jnp.float32).at[0, :n_out].set(b3)

    packed = (w1p, c1p, w2p, c2p, w3p, b3p)
    raw = dict(w1=w1, b1=b1, w2=w2, b2=b2, w3=w3, b3=b3,
               g1=g1, be1=be1, m1=m1, v1=v1, g2=g2, be2=be2, m2=m2, v2=v2,
               eps=eps)
    return packed, raw


def reference_forward(x, raw):
    """Pure-JAX f32 reference matching PyTorch eval-mode forward."""
    eps = raw["eps"]
    h = x @ raw["w1"] + raw["b1"]
    h = (h - raw["m1"]) / jnp.sqrt(raw["v1"] + eps) * raw["g1"] + raw["be1"]
    h = jnp.maximum(h, 0.0)
    h = h @ raw["w2"] + raw["b2"]
    h = (h - raw["m2"]) / jnp.sqrt(raw["v2"] + eps) * raw["g2"] + raw["be2"]
    h = jnp.maximum(h, 0.0)
    return h @ raw["w3"] + raw["b3"]


def reference_forward_packed(x, packed):
    """Pure-JAX reference using the same folded bf16 weights (tight check of the
    kernel's tiling/accumulation, independent of bf16 quantization error)."""
    w1, c1, w2, c2, w3, b3 = packed
    B, F = x.shape
    Fp = w1.shape[0]
    xb = x if F == Fp else jnp.zeros((B, Fp), x.dtype).at[:, :F].set(x)
    h = jnp.dot(xb.astype(jnp.bfloat16), w1, preferred_element_type=jnp.float32)
    h = jnp.maximum(h + c1, 0.0)
    h = jnp.dot(h.astype(jnp.bfloat16), w2, preferred_element_type=jnp.float32)
    h = jnp.maximum(h + c2, 0.0)
    o = jnp.dot(h.astype(jnp.bfloat16), w3, preferred_element_type=jnp.float32) + b3
    return o[:, :10]


if __name__ == "__main__":
    INPUT_SIZE = 512
    BATCH = 8

    key = jax.random.PRNGKey(0)
    kx, kp = jax.random.split(key)

    x = jax.random.normal(kx, (BATCH, INPUT_SIZE), jnp.float32)
    packed, raw = make_params(kp, INPUT_SIZE)

    fwd = jax.jit(functools.partial(age_classify_forward, params=packed))
    out = fwd(x)
    jax.block_until_ready(out)
    assert out.shape == (BATCH, 10), out.shape

    # Tight check: same bf16-folded numerics, validates kernel tiling/accumulation.
    ref_packed = reference_forward_packed(x, packed)
    assert jnp.allclose(out, ref_packed, atol=2e-3, rtol=2e-3), \
        float(jnp.max(jnp.abs(out - ref_packed)))

    # Semantic check vs. f32 PyTorch-eval-style reference (bf16-weight tolerance).
    ref = reference_forward(x, raw)
    assert jnp.allclose(out, ref, atol=3e-2, rtol=3e-2), \
        float(jnp.max(jnp.abs(out - ref)))

    print("KERNEL_OK")
</pallas_src>

<mosaic_0001>
module attributes {stable_mosaic.version = 11 : i64} {
  func.func @_age_classify_kernel(%arg0: i32, %arg1: memref<8x512xf32, #tpu.memory_space<vmem>>, %arg2: memref<512x1024xbf16, #tpu.memory_space<vmem>>, %arg3: memref<1x1024xf32, #tpu.memory_space<vmem>>, %arg4: memref<1024x512xbf16, #tpu.memory_space<vmem>>, %arg5: memref<1x512xf32, #tpu.memory_space<vmem>>, %arg6: memref<512x128xbf16, #tpu.memory_space<vmem>>, %arg7: memref<1x128xf32, #tpu.memory_space<vmem>>, %arg8: memref<8x128xf32, #tpu.memory_space<vmem>>, %arg9: memref<8x1024xbf16, #tpu.memory_space<vmem>>) attributes {dimension_semantics = [#tpu.dimension_semantics<arbitrary>], iteration_bounds = array<i64: 2>, scalar_prefetch = 0 : i64, scratch_operands = 1 : i64, tpu.core_type = #tpu.core_type<tc>, window_params = [{pipeline_mode = #tpu.pipeline_mode<synchronous>, transform_indices = @transform_0, window_bounds = array<i64: 8, 512>}, {pipeline_mode = #tpu.pipeline_mode<synchronous>, transform_indices = @transform_1, window_bounds = array<i64: 512, 1024>}, {pipeline_mode = #tpu.pipeline_mode<synchronous>, transform_indices = @transform_2, window_bounds = array<i64: 1, 1024>}, {transform_indices = @transform_3, window_bounds = array<i64: 1024, 512>}, {transform_indices = @transform_4, window_bounds = array<i64: 1, 512>}, {transform_indices = @transform_5, window_bounds = array<i64: 512, 128>}, {pipeline_mode = #tpu.pipeline_mode<synchronous>, transform_indices = @transform_6, window_bounds = array<i64: 1, 128>}, {pipeline_mode = #tpu.pipeline_mode<synchronous>, transform_indices = @transform_7, window_bounds = array<i64: 8, 128>}]} {
    %c0_i32 = arith.constant 0 : i32
    %0 = arith.cmpi eq, %arg0, %c0_i32 : i32
    %1 = arith.extui %0 : i1 to i32
    %c0_i32_0 = arith.constant 0 : i32
    %2 = arith.cmpi ne, %1, %c0_i32_0 : i32
    scf.if %2 {
      %c0_15 = arith.constant 0 : index
      %c0_16 = arith.constant 0 : index
      %20 = vector.load %arg1[%c0_15, %c0_16] : memref<8x512xf32, #tpu.memory_space<vmem>>, vector<8x512xf32>
      %21 = arith.truncf %20 : vector<8x512xf32> to vector<8x512xbf16>
      %c0_17 = arith.constant 0 : index
      %c0_18 = arith.constant 0 : index
      %22 = vector.load %arg2[%c0_17, %c0_18] : memref<512x1024xbf16, #tpu.memory_space<vmem>>, vector<512x1024xbf16>
      %cst_19 = arith.constant dense<0.000000e+00> : vector<8x1024xf32>
      %23 = tpu.matmul %21, %22, %cst_19 {dimension_numbers = #tpu.dot_dimension_numbers<[1], [0], [0], [1], [0, 0, 1, 1], [], []>} : vector<8x512xbf16>, vector<512x1024xbf16>, vector<8x1024xf32> -> vector<8x1024xf32>
      %c0_20 = arith.constant 0 : index
      %c0_21 = arith.constant 0 : index
      %24 = vector.load %arg3[%c0_20, %c0_21] : memref<1x1024xf32, #tpu.memory_space<vmem>>, vector<1x1024xf32>
      %25 = vector.broadcast %24 : vector<1x1024xf32> to vector<8x1024xf32>
      %26 = arith.addf %23, %25 : vector<8x1024xf32>
      %cst_22 = arith.constant 0.000000e+00 : f32
      %27 = vector.broadcast %cst_22 : f32 to vector<8x1024xf32>
      %28 = arith.maximumf %26, %27 : vector<8x1024xf32>
      %29 = arith.truncf %28 : vector<8x1024xf32> to vector<8x1024xbf16>
      %c0_23 = arith.constant 0 : index
      %c0_24 = arith.constant 0 : index
      %30 = vector.load %arg9[%c0_23, %c0_24] : memref<8x1024xbf16, #tpu.memory_space<vmem>>, vector<8x1024xbf16>
      tpu.vector_store %arg9[%c0_23, %c0_24], %29 {strides = array<i32>} : memref<8x1024xbf16, #tpu.memory_space<vmem>>, vector<8x1024xbf16>,
      %cst_25 = arith.constant 0.000000e+00 : f32
      %31 = vector.broadcast %cst_25 : f32 to vector<8x128xf32>
      %c0_26 = arith.constant 0 : index
      %c0_27 = arith.constant 0 : index
      %32 = vector.load %arg8[%c0_26, %c0_27] : memref<8x128xf32, #tpu.memory_space<vmem>>, vector<8x128xf32>
      tpu.vector_store %arg8[%c0_26, %c0_27], %31 {strides = array<i32>} : memref<8x128xf32, #tpu.memory_space<vmem>>, vector<8x128xf32>,
    } else {
    }
    %c0 = arith.constant 0 : index
    %c0_1 = arith.constant 0 : index
    %3 = vector.load %arg9[%c0, %c0_1] : memref<8x1024xbf16, #tpu.memory_space<vmem>>, vector<8x1024xbf16>
    %c0_2 = arith.constant 0 : index
    %c0_3 = arith.constant 0 : index
    %4 = vector.load %arg4[%c0_2, %c0_3] : memref<1024x512xbf16, #tpu.memory_space<vmem>>, vector<1024x512xbf16>
    %cst = arith.constant dense<0.000000e+00> : vector<8x512xf32>
    %5 = tpu.matmul %3, %4, %cst {dimension_numbers = #tpu.dot_dimension_numbers<[1], [0], [0], [1], [0, 0, 1, 1], [], []>} : vector<8x1024xbf16>, vector<1024x512xbf16>, vector<8x512xf32> -> vector<8x512xf32>
    %c0_4 = arith.constant 0 : index
    %c0_5 = arith.constant 0 : index
    %6 = vector.load %arg5[%c0_4, %c0_5] : memref<1x512xf32, #tpu.memory_space<vmem>>, vector<1x512xf32>
    %7 = vector.broadcast %6 : vector<1x512xf32> to vector<8x512xf32>
    %8 = arith.addf %5, %7 : vector<8x512xf32>
    %cst_6 = arith.constant 0.000000e+00 : f32
    %9 = vector.broadcast %cst_6 : f32 to vector<8x512xf32>
    %10 = arith.maximumf %8, %9 : vector<8x512xf32>
    %c0_7 = arith.constant 0 : index
    %c0_8 = arith.constant 0 : index
    %11 = vector.load %arg8[%c0_7, %c0_8] : memref<8x128xf32, #tpu.memory_space<vmem>>, vector<8x128xf32>
    %12 = arith.truncf %10 : vector<8x512xf32> to vector<8x512xbf16>
    %c0_9 = arith.constant 0 : index
    %c0_10 = arith.constant 0 : index
    %13 = vector.load %arg6[%c0_9, %c0_10] : memref<512x128xbf16, #tpu.memory_space<vmem>>, vector<512x128xbf16>
    %cst_11 = arith.constant dense<0.000000e+00> : vector<8x128xf32>
    %14 = tpu.matmul %12, %13, %cst_11 {dimension_numbers = #tpu.dot_dimension_numbers<[1], [0], [0], [1], [0, 0, 1, 1], [], []>} : vector<8x512xbf16>, vector<512x128xbf16>, vector<8x128xf32> -> vector<8x128xf32>
    %15 = arith.addf %11, %14 : vector<8x128xf32>
    %c0_12 = arith.constant 0 : index
    %c0_13 = arith.constant 0 : index
    %16 = vector.load %arg8[%c0_12, %c0_13] : memref<8x128xf32, #tpu.memory_space<vmem>>, vector<8x128xf32>
    tpu.vector_store %arg8[%c0_12, %c0_13], %15 {strides = array<i32>} : memref<8x128xf32, #tpu.memory_space<vmem>>, vector<8x128xf32>,
    %c1_i32 = arith.constant 1 : i32
    %17 = arith.cmpi eq, %arg0, %c1_i32 : i32
    %18 = arith.extui %17 : i1 to i32
    %c0_i32_14 = arith.constant 0 : i32
    %19 = arith.cmpi ne, %18, %c0_i32_14 : i32
    scf.if %19 {
      %c0_15 = arith.constant 0 : index
      %c0_16 = arith.constant 0 : index
      %20 = vector.load %arg8[%c0_15, %c0_16] : memref<8x128xf32, #tpu.memory_space<vmem>>, vector<8x128xf32>
      %c0_17 = arith.constant 0 : index
      %c0_18 = arith.constant 0 : index
      %21 = vector.load %arg7[%c0_17, %c0_18] : memref<1x128xf32, #tpu.memory_space<vmem>>, vector<1x128xf32>
      %22 = vector.broadcast %21 : vector<1x128xf32> to vector<8x128xf32>
      %23 = arith.addf %20, %22 : vector<8x128xf32>
      %c0_19 = arith.constant 0 : index
      %c0_20 = arith.constant 0 : index
      %24 = vector.load %arg8[%c0_19, %c0_20] : memref<8x128xf32, #tpu.memory_space<vmem>>, vector<8x128xf32>
      tpu.vector_store %arg8[%c0_19, %c0_20], %23 {strides = array<i32>} : memref<8x128xf32, #tpu.memory_space<vmem>>, vector<8x128xf32>,
    } else {
    }
    return
  }
  func.func @transform_0(%arg0: i32) -> (i32, i32) {
    %c0_i32 = arith.constant 0 : i32
    %c0_i32_0 = arith.constant 0 : i32
    %c0_i32_1 = arith.constant 0 : i32
    return %c0_i32, %c0_i32_0 : i32, i32
  }
  func.func @transform_1(%arg0: i32) -> (i32, i32) {
    %c0_i32 = arith.constant 0 : i32
    %c0_i32_0 = arith.constant 0 : i32
    %c0_i32_1 = arith.constant 0 : i32
    return %c0_i32, %c0_i32_0 : i32, i32
  }
  func.func @transform_2(%arg0: i32) -> (i32, i32) {
    %c0_i32 = arith.constant 0 : i32
    %c0_i32_0 = arith.constant 0 : i32
    %c0_i32_1 = arith.constant 0 : i32
    return %c0_i32, %c0_i32_0 : i32, i32
  }
  func.func @transform_3(%arg0: i32) -> (i32, i32) {
    %c0_i32 = arith.constant 0 : i32
    %c0_i32_0 = arith.constant 0 : i32
    return %c0_i32, %arg0 : i32, i32
  }
  func.func @transform_4(%arg0: i32) -> (i32, i32) {
    %c0_i32 = arith.constant 0 : i32
    %c0_i32_0 = arith.constant 0 : i32
    return %c0_i32, %arg0 : i32, i32
  }
  func.func @transform_5(%arg0: i32) -> (i32, i32) {
    %c0_i32 = arith.constant 0 : i32
    %c0_i32_0 = arith.constant 0 : i32
    return %arg0, %c0_i32 : i32, i32
  }
  func.func @transform_6(%arg0: i32) -> (i32, i32) {
    %c0_i32 = arith.constant 0 : i32
    %c0_i32_0 = arith.constant 0 : i32
    %c0_i32_1 = arith.constant 0 : i32
    return %c0_i32, %c0_i32_0 : i32, i32
  }
  func.func @transform_7(%arg0: i32) -> (i32, i32) {
    %c0_i32 = arith.constant 0 : i32
    %c0_i32_0 = arith.constant 0 : i32
    %c0_i32_1 = arith.constant 0 : i32
    return %c0_i32, %c0_i32_0 : i32, i32
  }
}

</mosaic_0001>

<bundles_post_ra>
// kernel: age_classify_forward.1
= control target key start
LH: loop header
LB: loop body
LE: loop exit
PB: predicated region body
PF: predicated region fallthrough
CT: control target
= control target key end

     0   :  { %s8984_s0 = inlined_call_operand.hbm [shape: f32[8,512], index: 0, kind: input, shape index: {}]   ;;  %s8985_s1 = inlined_call_operand.hbm [shape: bf16[512,1024], index: 1, kind: input, shape index: {}]   ;;  %s8986_s2 = inlined_call_operand.hbm [shape: f32[1,1024], index: 2, kind: input, shape index: {}]   ;;  %s8987_s3 = inlined_call_operand.hbm [shape: bf16[1024,1024], index: 3, kind: input, shape index: {}]   ;;  %s8988_s4 = inlined_call_operand.hbm [shape: f32[1,1024], index: 4, kind: input, shape index: {}]   ;;  %s8989_s5 = inlined_call_operand.hbm [shape: bf16[1024,128], index: 5, kind: input, shape index: {}]   ;;  %s8990_s6 = inlined_call_operand.hbm [shape: f32[1,128], index: 6, kind: input, shape index: {}]   ;;  %s8991_s7 = inlined_call_operand.hbm [shape: f32[8,128], index: 7, kind: output, shape index: {}]  }
   0x1   :  { %8994 = sst [smem:[#allocation22_spill]] %s8984_s0 }
   0x2   :  { %8995 = sst [smem:[#allocation23_spill]] %s8985_s1 }
   0x3   :  { %8996 = sst [smem:[#allocation24_spill]] %s8987_s3 }
   0x4   :  { %8997 = sst [smem:[#allocation25_spill]] %s8990_s6 }
   0x5   :  { %12 = vsyncpa [#allocation4], 0 }
   0x6   :  { %13 = vsyncpa [#allocation7], 0 }
   0x7   :  { %14 = vsyncpa [#allocation10], 0 }
   0x8   :  { %16 = vsyncpa [#allocation10 + $0x1], 0 }
   0x9   :  { %17 = vsyncpa [#allocation13], 0 }
   0xa   :  { %19 = vsyncpa [#allocation13 + $0x1], 0 }
   0xb   :  { %20 = vsyncpa [#allocation5], 0  ;;  %s8095_s24 = smov 0   ;;  %s8097_s25 = smov 0  }
   0xc   :  { %s8099_s26 = smov 0   ;;  %s8101_s27 = smov 0  }
   0xd LB: > { %s8114_s28 = sadd.s32 4294967295, %s8041_s27   ;;  %p109_p0 = scmp.ne.s32.totalorder %s8033_s25, %s8029_s24  ;;  %s8041_s27 = sphi %s8101_s27, %s9011_s27   ;;  %s8037_s26 = sphi %s8099_s26, %s9010_s26   ;;  %s8033_s25 = sphi %s8097_s25, %s9009_s25   ;;  %s8029_s24 = sphi %s8095_s24, %s9008_s24  }
   0xe   : > { %p110_p1 = scmp.eq.s32.totalorder %s8114_s28, 0  ;;  %p4894_p2 = scmp.ge.s32.totalorder %s8041_s27, 1 }
   0xf   : > { %p214_p3 = scmp.lt.s32.totalorder %s8041_s27, 3  ;;  %p4895_p4 = scmp.ne.s32.totalorder %s8114_s28, 0 }
  0x10   : > { %p8123_p5 = por %p110_p1, %p109_p0  ;;  %s8999_s1 = sld [smem:[#allocation23_spill]] }
  0x11   : > { %p8130_p6 = pnand %p4894_p2, %p214_p3  ;;  %s8043_s11 = smov [#allocation6]  }
  0x12   : > { %s239_s12 = sshll.u32 %s8043_s11, 4  ;;  %s9002_s6 = sld [smem:[#allocation25_spill]]  ;;  %s240_s12 = int_to_ptr.vmem [resolvable:$true] %s239_s12 }
  0x13   : > { %p7670_p7 = pneg %p8130_p6  ;;  %s8992_s17 = smov 512  }
  0x14   : > { %s8045_s18 = smov 32   ;;  %s8046_s19 = smov [#allocation14]  }
  0x15   : > { %p8138_p8 = pnand %p7670_p7, %p110_p1  ;;  %s266_s20 = sshll.u32 %s8046_s19, 4  ;;  %s267_s20 = int_to_ptr.vmem [resolvable:$true] %s266_s20 }
  0x16   : > { %s237_s9 = sshll.u32 %s8999_s1, 4  ;;  %s8152_s21 = sadd.s32 1, %s8041_s27   ;;  %s238_s9 = int_to_ptr.hbm [resolvable:$true] %s237_s9 }
  0x17   : > { %7676 = dma.hbm_to_vmem [thread:$0]  (!%p8138_p8), %s238_s9, 32768, %s240_s12, [#allocation7], %s8992_s17, %s8992_s17, %s8045_s18  }
  0x18   : > { %s264_s16 = sshll.u32 %s9002_s6, 4  ;;  %s96_s22 = sadd.s32 1, %s8037_s26  ;;  %s265_s16 = int_to_ptr.hbm [resolvable:$true] %s264_s16 }
  0x19   : > { %7682 = dma.hbm_to_vmem [thread:$0]  (!%p8138_p8), %s265_s16, 16, %s267_s20, [#allocation13]  }
  0x1a   : > { %s93_s23 = ssub.s32 %s8041_s27, %s8152_s21  ;;  %p103_p9 = scmp.ne.s32.totalorder %s8037_s26, %s8033_s25 }
  0x1b   : > { %p94_p10 = scmp.eq.s32.totalorder %s93_s23, 0  ;;  %p104_p11 = scmp.eq.s32.totalorder %s8041_s27, 0 }
  0x1c   : > { %p7697_p12 = scmp.lt.s32.totalorder %s8041_s27, 2  ;;  %s8993_s24 = sand.u32 1, %s8041_s27  }
  0x1d   : > { %s8163_s30 = scalar_select %p94_p10, %s8037_s26, %s96_s22  }
  0x1e   : > { %p105_p13 = por %p104_p11, %p103_p9  ;;  %s8166_s8 = sand.u32 1, %s8037_s26  }
  0x1f   : > { %s7098_s9 = sshll.u32 %s8041_s27, 4  ;;  %s4900_s11 = sshll.u32 %s8166_s8, 11 }
  0x20   : > { %s9003_s3 = sld [smem:[#allocation24_spill]]  ;;  %s281_s18 = scalar_lea.vmem [#allocation9], %s4900_s11 }
  0x21   : > { %s289_s19 = sshll.u32 %s281_s18, 4  ;;  %p8175_p0 = pnand %p7697_p12, %p105_p13  ;;  %s290_s19 = int_to_ptr.vmem [resolvable:$true] %s289_s19 }
  0x22   : > { %s9005_s0 = sld [smem:[#allocation22_spill]]  ;;  %s8184_s1 = scalar_lea.sflag [#allocation10], %s8993_s24 }
  0x23   : > { %p7813_p3 = pneg %p8175_p0 }
  0x26   : > { %s286_s15 = scalar_lea.hbm %s9003_s3, %s7098_s9 }
  0x27   : > { %s287_s16 = sshll.u32 %s286_s15, 4  ;;  %s7816_s15 = scalar_lea.hbm %s9003_s3, 4096  ;;  %s288_s16 = int_to_ptr.hbm [resolvable:$true] %s287_s16 }
  0x28   : > { %s226_s17 = sshll.u32 %s9005_s0, 4  ;;  %s7809_s9 = sshra.s32 %s288_s16, 4  ;;  %s7810_s9 = int_to_ptr.hbm [resolvable:$true] %s7809_s9  ;;  %s227_s17 = int_to_ptr.hbm [resolvable:$true] %s226_s17 }
  0x29   : > { %s7811_s12 = scalar_lea.hbm %s7810_s9, 2048  ;;  %p7817_p10 = scmp.lt.s32.totalorder %s7810_s9, %s9003_s3 }
  0x2a   : > { %p7812_p2 = scmp.ne.s32.totalorder %s7810_s9, %s7811_s12  ;;  %p7818_p11 = scmp.lt.s32.totalorder %s7816_s15, %s7811_s12 }
  0x2c   : > { %p7814_p7 = pnand %p7813_p3, %p7812_p2  ;;  %p7819_p12 = por %p7818_p11, %p7817_p10 }
  0x2e   : > { %p7815_p9 = pneg %p7814_p7 }
  0x30   : > { %p7820_p13 = pnand %p7819_p12, %p7815_p9 }
  0x32   : > { %7823 = shalt.err (!%p7820_p13)
}
  0x33   : > { %s8047_s23 = smov 256   ;;  %s8048_s24 = smov 16  }
  0x34   : > { %s9006_s0 = smov 512   ;;  %s8049_s11 = smov [#allocation3]  }
  0x35   : > { %7686 = dma.hbm_to_vmem [thread:$0]  (!%p8175_p0), %s288_s16, 32768, %s290_s19, %s8184_s1, %s9006_s0, %s8047_s23, %s8048_s24  }
  0x36   : > { %s228_s14 = sshll.u32 %s8049_s11, 4  ;;  %s252_s12 = sshll.u32 %s8986_s2, 4  ;;  %s229_s14 = int_to_ptr.vmem [resolvable:$true] %s228_s14  ;;  %s253_s12 = int_to_ptr.hbm [resolvable:$true] %s252_s12 }
  0x37   : > { %7673 = dma.hbm_to_vmem [thread:$0]  (!%p8138_p8), %s227_s17, 512, %s229_s14, [#allocation4]  }
  0x38   : > { %s4903_s15 = sshll.u32 %s8166_s8, 2  ;;  %s8050_s22 = smov [#allocation8]  }
  0x39   : > { %s254_s3 = sshll.u32 %s8050_s22, 4  ;;  %s4904_s6 = sshll.u32 %s8041_s27, 2  ;;  %s255_s3 = int_to_ptr.vmem [resolvable:$true] %s254_s3 }
  0x3a   : > { %7679 = dma.hbm_to_vmem [thread:$0]  (!%p8138_p8), %s253_s12, 128, %s255_s3, [#allocation7]  }
  0x3b   : > { %s307_s16 = scalar_lea.hbm %s8988_s4, %s4904_s6  ;;  %s303_s19 = scalar_lea.vmem [#allocation11], %s4903_s15 }
  0x3c   : > { %s311_s23 = sshll.u32 %s303_s19, 4  ;;  %s309_s11 = sshll.u32 %s307_s16, 4  ;;  %s312_s23 = int_to_ptr.vmem [resolvable:$true] %s311_s23  ;;  %s310_s11 = int_to_ptr.hbm [resolvable:$true] %s309_s11 }
  0x3d   : > { %s7899_s18 = sshra.s32 %s310_s11, 4  ;;  %s7906_s3 = scalar_lea.hbm %s8988_s4, 8  ;;  %s7900_s18 = int_to_ptr.hbm [resolvable:$true] %s7899_s18 }
  0x3e   : > { %s7901_s17 = scalar_lea.hbm %s7900_s18, 4  ;;  %p7907_p8 = scmp.lt.s32.totalorder %s7900_s18, %s8988_s4 }
  0x3f   : > { %p7902_p2 = scmp.ne.s32.totalorder %s7900_s18, %s7901_s17  ;;  %p7908_p10 = scmp.lt.s32.totalorder %s7906_s3, %s7901_s17 }
  0x41   : > { %p7904_p7 = pnand %p7902_p2, %p7813_p3  ;;  %p7909_p11 = por %p7908_p10, %p7907_p8 }
  0x43   : > { %p7905_p9 = pneg %p7904_p7 }
  0x45   : > { %p7910_p12 = pnand %p7909_p11, %p7905_p9 }
  0x47   : > { %7913 = shalt.err (!%p7910_p12)
}
  0x48   : > { %7689 = dma.hbm_to_vmem [thread:$0]  (!%p8175_p0), %s310_s11, 64, %s312_s23, %s8184_s1  }
  0x49   : > { %s4905_s6 = sshll.u32 %s8166_s8, 8  ;;  %s7099_s15 = sshll.u32 %s8041_s27, 8 }
  0x4a   : > { %s327_s24 = scalar_lea.hbm %s8989_s5, %s7099_s15  ;;  %s322_s19 = scalar_lea.vmem [#allocation12], %s4905_s6 }
  0x4b   : > { %s328_s16 = sshll.u32 %s327_s24, 4  ;;  %s330_s18 = sshll.u32 %s322_s19, 4  ;;  %s329_s16 = int_to_ptr.hbm [resolvable:$true] %s328_s16  ;;  %s331_s18 = int_to_ptr.vmem [resolvable:$true] %s330_s18 }
  0x4c   : > { %s9007_s17 = sand.u32 1, %s8041_s27   ;;  %s7929_s13 = sshra.s32 %s329_s16, 4  ;;  %s7930_s13 = int_to_ptr.hbm [resolvable:$true] %s7929_s13 }
  0x4d   : > { %s319_s14 = scalar_lea.sflag [#allocation13], %s9007_s17  ;;  %s7931_s3 = scalar_lea.hbm %s7930_s13, 256 }
  0x4e   : > { %p7932_p13 = scmp.ne.s32.totalorder %s7930_s13, %s7931_s3  ;;  %s7936_s23 = scalar_lea.hbm %s8989_s5, 512 }
  0x4f   : > { %p7937_p9 = scmp.lt.s32.totalorder %s7930_s13, %s8989_s5  ;;  %p7938_p8 = scmp.lt.s32.totalorder %s7936_s23, %s7931_s3 }
  0x50   : > { %p7934_p2 = pnand %p7932_p13, %p7813_p3 }
  0x51   : > { %p7939_p10 = por %p7938_p8, %p7937_p9 }
  0x52   : > { %p7935_p7 = pneg %p7934_p2 }
  0x54   : > { %p7940_p11 = pnand %p7939_p10, %p7935_p7 }
  0x56   : > { %7943 = shalt.err (!%p7940_p11)
}
  0x57   : > { %s8051_s27 = smov 64   ;;  %s8052_s12 = smov 4  }
  0x58   : > { %7692 = dma.hbm_to_vmem [thread:$0]  (!%p8175_p0), %s329_s16, 4096, %s331_s18, %s319_s14, %s8051_s27, %s8051_s27, %s8052_s12  }
  0x59   : > { %342 = sbr.rel (%p8130_p6) target bundleno = 1099 (0x44b), region = 48 }
  0x5e   : > { %8004 = dma.done.wait (%p110_p1), [#allocation4], 512  }
  0x5f   : > { %8006 = vsyncadd (%p110_p1), [#allocation4], 4294966784 }
  0x60   : > { %8008 = dma.done.wait (%p110_p1), [#allocation7], 32896  }
  0x61   : > { %8010 = vsyncadd (%p110_p1), [#allocation7], 4294934400  ;;  %s359_s20 = sand.u32 1, %s8114_s28   ;;  %s361_s6 = sand.u32 1, %s8033_s25  }
  0x62   : > { %s4912_s15 = sshll.u32 %s361_s6, 11  ;;  %s360_s10 = scalar_lea.sflag [#allocation10], %s359_s20 }
  0x63   : > { %s8255_s22 = scalar_lea.vmem [#allocation9], %s4912_s15 }
  0x64   : > { %8012 = dma.done.wait (%p8123_p5), %s360_s10, 32832  }
  0x65   : > { %8014 = vsyncadd (%p8123_p5), %s360_s10, 4294934464  ;;  %s4913_s0 = sshll.u32 %s361_s6, 2  ;;  %s4914_s24 = sshll.u32 %s361_s6, 8 }
  0x66   : > { %s8261_s16 = scalar_lea.vmem [#allocation11], %s4913_s0  ;;  %s380_s19 = scalar_lea.sflag [#allocation13], %s359_s20 }
  0x67   : > { %s8263_s18 = scalar_lea.vmem [#allocation12], %s4914_s24 }
  0x68   : > { %8016 = dma.done.wait (%p8123_p5), %s380_s19, 4096  }
  0x69   : > { %8018 = vsyncadd (%p8123_p5), %s380_s19, 4294963200 }
  0x6a   : > { %8020 = dma.done.wait (%p110_p1), [#allocation13], 16  }
  0x6b   : > { %8022 = vsyncadd (%p110_p1), [#allocation13], 4294967280  ;;  %431 = sbr.rel (%p4895_p4) target bundleno = 547 (0x223), region = 80 }
  0x70   : > { %v5143_v0 = vld [vmem:[#allocation6 + $0x1c0] sm:$0xf] }
  0x71   : > { %v7160_v1 = vld [vmem:[#allocation6 + $0x1dc] sm:$0xf0] }
  0x72   : > { %v5399_v2 = vld [vmem:[#allocation6 + $0x3c0] sm:$0xf]  ;;  %v5144_v3 = vor.u32 %v7160_v1, %v5143_v0 }
  0x73   : > { %v7224_v4 = vld [vmem:[#allocation6 + $0x3dc] sm:$0xf0] }
  0x74   : > { %v5655_v5 = vld [vmem:[#allocation6 + $0x5c0] sm:$0xf]  ;;  %v5400_v7 = vor.u32 %v7224_v4, %v5399_v2  ;;  %1994 = vmatpush.bf16.msra.mxu0 %v5144_v3 }
  0x75   : > { %v7288_v6 = vld [vmem:[#allocation6 + $0x5dc] sm:$0xf0] }
  0x76   : > { %v5656_v8 = vor.u32 %v7288_v6, %v5655_v5  ;;  %v5911_v9 = vld [vmem:[#allocation6 + $0x7c0] sm:$0xf]  ;;  %2007 = vmatpush.bf16.msra.mxu1 %v5400_v7 }
  0x77   : > { %v7352_v10 = vld [vmem:[#allocation6 + $0x7dc] sm:$0xf0] }
  0x78   : > { %v5111_v11 = vld [vmem:[#allocation6 + $0x180] sm:$0xf]  ;;  %v5912_v12 = vor.u32 %v7352_v10, %v5911_v9  ;;  %2020 = vmatpush.bf16.msra.mxu2 %v5656_v8 }
  0x79   : > { %v7152_v13 = vld [vmem:[#allocation6 + $0x19c] sm:$0xf0] }
  0x7a   : > { %v5367_v14 = vld [vmem:[#allocation6 + $0x380] sm:$0xf]  ;;  %v5112_v16 = vor.u32 %v7152_v13, %v5111_v11  ;;  %2033 = vmatpush.bf16.msra.mxu3 %v5912_v12 }
  0x7b   : > { %v7216_v15 = vld [vmem:[#allocation6 + $0x39c] sm:$0xf0] }
  0x7c   : > { %v5368_v17 = vor.u32 %v7216_v15, %v5367_v14  ;;  %v5623_v18 = vld [vmem:[#allocation6 + $0x580] sm:$0xf]  ;;  %1995 = vmatpush.bf16.msra.mxu0 %v5112_v16 }
  0x7d   : > { %v7280_v19 = vld [vmem:[#allocation6 + $0x59c] sm:$0xf0] }
  0x7e   : > { %v5879_v20 = vld [vmem:[#allocation6 + $0x780] sm:$0xf]  ;;  %v5624_v21 = vor.u32 %v7280_v19, %v5623_v18  ;;  %2008 = vmatpush.bf16.msra.mxu1 %v5368_v17 }
  0x7f   : > { %v7344_v22 = vld [vmem:[#allocation6 + $0x79c] sm:$0xf0] }
  0x80   : > { %v5079_v23 = vld [vmem:[#allocation6 + $0x140] sm:$0xf]  ;;  %v5880_v25 = vor.u32 %v7344_v22, %v5879_v20  ;;  %2021 = vmatpush.bf16.msra.mxu2 %v5624_v21 }
  0x81   : > { %v7144_v24 = vld [vmem:[#allocation6 + $0x15c] sm:$0xf0] }
  0x82   : > { %v5335_v26 = vld [vmem:[#allocation6 + $0x340] sm:$0xf]  ;;  %v5080_v29 = vor.u32 %v7144_v24, %v5079_v23  ;;  %2034 = vmatpush.bf16.msra.mxu3 %v5880_v25 }
  0x83   : > { %v7208_v27 = vld [vmem:[#allocation6 + $0x35c] sm:$0xf0] }
  0x84   : > { %v5591_v28 = vld [vmem:[#allocation6 + $0x540] sm:$0xf]  ;;  %v5336_v33 = vor.u32 %v7208_v27, %v5335_v26  ;;  %1996 = vmatpush.bf16.msra.mxu0 %v5080_v29  ;;  %v5145_v29 = vld [vmem:[#allocation6 + $0x1e0] sm:$0xf0] }
  0x85   : > { %v7272_v30 = vld [vmem:[#allocation6 + $0x55c] sm:$0xf0] }
  0x86   : > { %v5847_v31 = vld [vmem:[#allocation6 + $0x740] sm:$0xf]  ;;  %v5592_v34 = vor.u32 %v7272_v30, %v5591_v28  ;;  %2009 = vmatpush.bf16.msra.mxu1 %v5336_v33  ;;  %v7156_v28 = vld [vmem:[#allocation6 + $0x1c4] sm:$0xf] }
  0x87   : > { %v7336_v32 = vld [vmem:[#allocation6 + $0x75c] sm:$0xf0]  ;;  %v7220_v30 = vld [vmem:[#allocation6 + $0x3c4] sm:$0xf] }
  0x88   : > { %v5047_v35 = vld [vmem:[#allocation6 + $0x100] sm:$0xf]  ;;  %v5848_v38 = vor.u32 %v7336_v32, %v5847_v31  ;;  %2022 = vmatpush.bf16.msra.mxu2 %v5592_v34  ;;  %v5401_v32 = vld [vmem:[#allocation6 + $0x3e0] sm:$0xf0] }
  0x89   : > { %v7136_v36 = vld [vmem:[#allocation6 + $0x11c] sm:$0xf0]  ;;  %v7284_v33 = vld [vmem:[#allocation6 + $0x5c4] sm:$0xf] }
  0x8a   : > { %v5303_v37 = vld [vmem:[#allocation6 + $0x300] sm:$0xf]  ;;  %v5048_v44 = vor.u32 %v7136_v36, %v5047_v35  ;;  %2035 = vmatpush.bf16.msra.mxu3 %v5848_v38  ;;  %v5657_v34 = vld [vmem:[#allocation6 + $0x5e0] sm:$0xf0] }
  0x8b   : > { %v7200_v39 = vld [vmem:[#allocation6 + $0x31c] sm:$0xf0]  ;;  %v5913_v38 = vld [vmem:[#allocation6 + $0x7e0] sm:$0xf0] }
  0x8c   : > { %v5559_v40 = vld [vmem:[#allocation6 + $0x500] sm:$0xf]  ;;  %v5304_v45 = vor.u32 %v7200_v39, %v5303_v37  ;;  %1997 = vmatpush.bf16.msra.mxu0 %v5048_v44  ;;  %v7348_v37 = vld [vmem:[#allocation6 + $0x7c4] sm:$0xf] }
  0x8d   : > { %v7264_v41 = vld [vmem:[#allocation6 + $0x51c] sm:$0xf0]  ;;  %v5113_v44 = vld [vmem:[#allocation6 + $0x1a0] sm:$0xf0] }
  0x8e   : > { %v5815_v42 = vld [vmem:[#allocation6 + $0x700] sm:$0xf]  ;;  %v5560_v46 = vor.u32 %v7264_v41, %v5559_v40  ;;  %2010 = vmatpush.bf16.msra.mxu1 %v5304_v45  ;;  %v5148_v40 = vor.u32 %v7156_v28, %v5145_v29  ;;  %v5404_v41 = vor.u32 %v7220_v30, %v5401_v32  ;;  %v7212_v45 = vld [vmem:[#allocation6 + $0x384] sm:$0xf] }
  0x8f   : > { %v7328_v43 = vld [vmem:[#allocation6 + $0x71c] sm:$0xf0]  ;;  %v7252_v28 = vld [vmem:[#allocation6 + $0x4c4] sm:$0xf] }
  0x90   : > { %v5015_v47 = vld [vmem:[#allocation6 + $0xc0] sm:$0xf]  ;;  %v5816_v50 = vor.u32 %v7328_v43, %v5815_v42  ;;  %2023 = vmatpush.bf16.msra.mxu2 %v5560_v46  ;;  %v5660_v42 = vor.u32 %v7284_v33, %v5657_v34  ;;  %v7148_v43 = vld [vmem:[#allocation6 + $0x184] sm:$0xf]  ;;  %v5916_v46 = vor.u32 %v7348_v37, %v5913_v38 }
  0x91   : > { %v7128_v48 = vld [vmem:[#allocation6 + $0xdc] sm:$0xf0]  ;;  %v5529_v29 = vld [vmem:[#allocation6 + $0x4e0] sm:$0xf0] }
  0x92   : > { %v5271_v49 = vld [vmem:[#allocation6 + $0x2c0] sm:$0xf]  ;;  %v5016_v56 = vor.u32 %v7128_v48, %v5015_v47  ;;  %2036 = vmatpush.bf16.msra.mxu3 %v5816_v50  ;;  %v5369_v47 = vld [vmem:[#allocation6 + $0x3a0] sm:$0xf0]  ;;  %v5532_v34 = vor.u32 %v7252_v28, %v5529_v29  ;;  %v5631_v28 = vld [vmem:[#allocation6 + $0x588] sm:$0xf] }
  0x93   : > { %v7192_v51 = vld [vmem:[#allocation6 + $0x2dc] sm:$0xf0]  ;;  %v7276_v48 = vld [vmem:[#allocation6 + $0x584] sm:$0xf]  ;;  %v7281_v29 = vld [vmem:[#allocation6 + $0x5a4] sm:$0xf0] }
  0x94   : > { %v5527_v52 = vld [vmem:[#allocation6 + $0x4c0] sm:$0xf]  ;;  %v5272_v57 = vor.u32 %v7192_v51, %v5271_v49  ;;  %1998 = vmatpush.bf16.msra.mxu0 %v5016_v56  ;;  %v5625_v49 = vld [vmem:[#allocation6 + $0x5a0] sm:$0xf0] }
  0x95   : > { %v7256_v53 = vld [vmem:[#allocation6 + $0x4dc] sm:$0xf0]  ;;  %v7340_v50 = vld [vmem:[#allocation6 + $0x784] sm:$0xf] }
  0x96   : > { %v5783_v54 = vld [vmem:[#allocation6 + $0x6c0] sm:$0xf]  ;;  %v5528_v58 = vor.u32 %v7256_v53, %v5527_v52  ;;  %2011 = vmatpush.bf16.msra.mxu1 %v5272_v57  ;;  %v5881_v51 = vld [vmem:[#allocation6 + $0x7a0] sm:$0xf0]  ;;  %v434_v52 = vld [vmem:[#allocation3 + $0x10] sm:$0xff]  ;;  %v5116_v53 = vor.u32 %v7148_v43, %v5113_v44 }
  0x97   : > { %v7320_v55 = vld [vmem:[#allocation6 + $0x6dc] sm:$0xf0]  ;;  %v7204_v56 = vld [vmem:[#allocation6 + $0x344] sm:$0xf]  ;;  %v8275_v57 = vpack.c.bf16 %v434_v52, %v434_v52 }
  0x98   : > { %v4983_v59 = vld [vmem:[#allocation6 + $0x80] sm:$0xf]  ;;  %v5784_v62 = vor.u32 %v7320_v55, %v5783_v54  ;;  %2024 = vmatpush.bf16.msra.mxu2 %v5528_v58  ;;  %v7140_v54 = vld [vmem:[#allocation6 + $0x144] sm:$0xf]  ;;  %v5372_v58 = vor.u32 %v7212_v45, %v5369_v47 }
  0x99   : > { %v7120_v60 = vld [vmem:[#allocation6 + $0x9c] sm:$0xf0]  ;;  %v5081_v55 = vld [vmem:[#allocation6 + $0x160] sm:$0xf0] }
  0x9a   : > { %v5239_v61 = vld [vmem:[#allocation6 + $0x280] sm:$0xf]  ;;  %v4984_v4 = vor.u32 %v7120_v60, %v4983_v59  ;;  %2037 = vmatpush.bf16.msra.mxu3 %v5784_v62  ;;  %v5628_v59 = vor.u32 %v7276_v48, %v5625_v49  ;;  %v5337_v60 = vld [vmem:[#allocation6 + $0x360] sm:$0xf0] }
  0x9b   : > { %v7184_v63 = vld [vmem:[#allocation6 + $0x29c] sm:$0xf0]  ;;  %v5593_v62 = vld [vmem:[#allocation6 + $0x560] sm:$0xf0] }
  0x9c   : > { %v5495_v0 = vld [vmem:[#allocation6 + $0x480] sm:$0xf]  ;;  %v5240_v5 = vor.u32 %v7184_v63, %v5239_v61  ;;  %1999 = vmatpush.bf16.msra.mxu0 %v4984_v4  ;;  %v7268_v61 = vld [vmem:[#allocation6 + $0x544] sm:$0xf]  ;;  %v5884_v63 = vor.u32 %v7340_v50, %v5881_v51 }
  0x9d   : > { %v7248_v1 = vld [vmem:[#allocation6 + $0x49c] sm:$0xf0]  ;;  %v5849_v4 = vld [vmem:[#allocation6 + $0x760] sm:$0xf0] }
  0x9e   : > { %v5751_v2 = vld [vmem:[#allocation6 + $0x680] sm:$0xf]  ;;  %v5496_v6 = vor.u32 %v7248_v1, %v5495_v0  ;;  %2012 = vmatpush.bf16.msra.mxu1 %v5240_v5  ;;  %v435_v1 = vld [vmem:[#allocation3 + $0x18] sm:$0xff]  ;;  %v7316_v30 = vld [vmem:[#allocation6 + $0x6c4] sm:$0xf] }
  0x9f   : > { %v7312_v3 = vld [vmem:[#allocation6 + $0x69c] sm:$0xf0]  ;;  %v7180_v37 = vld [vmem:[#allocation6 + $0x284] sm:$0xf] }
  0xa0   : > { %v4951_v7 = vld [vmem:[#allocation6 + $0x40] sm:$0xf]  ;;  %v5752_v10 = vor.u32 %v7312_v3, %v5751_v2  ;;  %2025 = vmatpush.bf16.msra.mxu2 %v5496_v6  ;;  %v433_v2 = vld [vmem:[#allocation3 + $0x8] sm:$0xff]  ;;  %v7332_v3 = vld [vmem:[#allocation6 + $0x744] sm:$0xf]  ;;  %v8280_v6 = vpack.c.bf16 %v435_v1, %v435_v1 }
  0xa1   : > { %v7112_v8 = vld [vmem:[#allocation6 + $0x5c] sm:$0xf0]  ;;  %v5753_v43 = vld [vmem:[#allocation6 + $0x6a0] sm:$0xf0] }
  0xa2   : > { %v5207_v9 = vld [vmem:[#allocation6 + $0x240] sm:$0xf]  ;;  %v4952_v16 = vor.u32 %v7112_v8, %v4951_v7  ;;  %2038 = vmatpush.bf16.msra.mxu3 %v5752_v10  ;;  %v8282_v7 = vpack.c.bf16 %v433_v2, %v433_v2  ;;  %v5084_v8 = vor.u32 %v7140_v54, %v5081_v55  ;;  %v5596_v10 = vor.u32 %v7268_v61, %v5593_v62  ;;  %v7108_v47 = vld [vmem:[#allocation6 + $0x44] sm:$0xf] }
  0xa3   : > { %v7176_v11 = vld [vmem:[#allocation6 + $0x25c] sm:$0xf0]  ;;  %v4953_v48 = vld [vmem:[#allocation6 + $0x60] sm:$0xf0] }
  0xa4   : > { %v5463_v12 = vld [vmem:[#allocation6 + $0x440] sm:$0xf]  ;;  %v5208_v19 = vor.u32 %v7176_v11, %v5207_v9  ;;  %2000 = vmatpush.bf16.msra.mxu0 %v4952_v16  ;;  %v5340_v9 = vor.u32 %v7204_v56, %v5337_v60  ;;  %v7132_v11 = vld [vmem:[#allocation6 + $0x104] sm:$0xf]  ;;  %v4956_v56 = vor.u32 %v7108_v47, %v4953_v48  ;;  %v5055_v47 = vld [vmem:[#allocation6 + $0x108] sm:$0xf] }
  0xa5   : > { %v7240_v13 = vld [vmem:[#allocation6 + $0x45c] sm:$0xf0]  ;;  %v7260_v16 = vld [vmem:[#allocation6 + $0x504] sm:$0xf]  ;;  %v7137_v48 = vld [vmem:[#allocation6 + $0x124] sm:$0xf0] }
  0xa6   : > { %v5719_v14 = vld [vmem:[#allocation6 + $0x640] sm:$0xf]  ;;  %v5464_v20 = vor.u32 %v7240_v13, %v5463_v12  ;;  %2013 = vmatpush.bf16.msra.mxu1 %v5208_v19  ;;  %v5049_v12 = vld [vmem:[#allocation6 + $0x120] sm:$0xf0] }
  0xa7   : > { %v7304_v15 = vld [vmem:[#allocation6 + $0x65c] sm:$0xf0]  ;;  %v7196_v13 = vld [vmem:[#allocation6 + $0x304] sm:$0xf] }
  0xa8   : > { %v4919_v17 = vld [vmem:[#allocation6] sm:$0xf]  ;;  %v5720_v24 = vor.u32 %v7304_v15, %v5719_v14  ;;  %2026 = vmatpush.bf16.msra.mxu2 %v5464_v20  ;;  %v5852_v14 = vor.u32 %v7332_v3, %v5849_v4  ;;  %v5305_v15 = vld [vmem:[#allocation6 + $0x320] sm:$0xf0]  ;;  %v5052_v20 = vor.u32 %v7132_v11, %v5049_v12  ;;  %v7225_v12 = vld [vmem:[#allocation6 + $0x3e4] sm:$0xf0] }
  0xa9   : > { %v7104_v18 = vld [vmem:[#allocation6 + $0x1c] sm:$0xf0]  ;;  %v5817_v19 = vld [vmem:[#allocation6 + $0x720] sm:$0xf0] }
  0xaa   : > { %v5175_v21 = vld [vmem:[#allocation6 + $0x200] sm:$0xf]  ;;  %v4920_v31 = vor.u32 %v7104_v18, %v4919_v17  ;;  %2039 = vmatpush.bf16.msra.mxu3 %v5720_v24  ;;  %v5561_v17 = vld [vmem:[#allocation6 + $0x520] sm:$0xf0] }
  0xab   : > { %v7168_v22 = vld [vmem:[#allocation6 + $0x21c] sm:$0xf0]  ;;  %v7324_v18 = vld [vmem:[#allocation6 + $0x704] sm:$0xf] }
  0xac   : > { %v5431_v23 = vld [vmem:[#allocation6 + $0x400] sm:$0xf]  ;;  %v5176_v35 = vor.u32 %v7168_v22, %v5175_v21  ;;  %2001 = vmatpush.bf16.msra.mxu0 %v4920_v31  ;;  %v5308_v21 = vor.u32 %v7196_v13, %v5305_v15  ;;  %v5564_v22 = vor.u32 %v7260_v16, %v5561_v17  ;;  %v5017_v24 = vld [vmem:[#allocation6 + $0xe0] sm:$0xf0]  ;;  %v5663_v13 = vld [vmem:[#allocation6 + $0x5c8] sm:$0xf] }
  0xad   : > { %v7232_v25 = vld [vmem:[#allocation6 + $0x41c] sm:$0xf0]  ;;  %v5785_v31 = vld [vmem:[#allocation6 + $0x6e0] sm:$0xf0]  ;;  %v5919_v17 = vld [vmem:[#allocation6 + $0x7c8] sm:$0xf] }
  0xae   : > { %v5687_v26 = vld [vmem:[#allocation6 + $0x600] sm:$0xf]  ;;  %v5432_v36 = vor.u32 %v7232_v25, %v5431_v23  ;;  %2014 = vmatpush.bf16.msra.mxu1 %v5176_v35  ;;  %v7124_v23 = vld [vmem:[#allocation6 + $0xc4] sm:$0xf]  ;;  %v5788_v38 = vor.u32 %v7316_v30, %v5785_v31  ;;  %v5887_v30 = vld [vmem:[#allocation6 + $0x788] sm:$0xf] }
  0xaf   : > { %v7296_v27 = vld [vmem:[#allocation6 + $0x61c] sm:$0xf0]  ;;  %v7188_v25 = vld [vmem:[#allocation6 + $0x2c4] sm:$0xf]  ;;  %v5020_v32 = vor.u32 %v7124_v23, %v5017_v24  ;;  %v5119_v23 = vld [vmem:[#allocation6 + $0x188] sm:$0xf] }
  0xb0   : > { %v5688_v39 = vor.u32 %v7296_v27, %v5687_v26  ;;  %2027 = vmatpush.bf16.msra.mxu2 %v5432_v36  ;;  %2046 = vmatpush.bf16.msrb.mxu0 %v5148_v40  ;;  %v432_v0 = vld [vmem:[#allocation3] sm:$0xff]  ;;  %v5820_v26 = vor.u32 %v7324_v18, %v5817_v19  ;;  %v7353_v18 = vld [vmem:[#allocation6 + $0x7e4] sm:$0xf0] }
  0xb1   : > { %v8278_v5 = vpack.c.bf16 %v432_v0, %v432_v0  ;;  %2015 = vmatmul.bf16.vlgmr.msra.gmra.mxu1 %v8282_v7  ;;  %v5273_v27 = vld [vmem:[#allocation6 + $0x2e0] sm:$0xf0]  ;;  %v7153_v24 = vld [vmem:[#allocation6 + $0x1a4] sm:$0xf0] }
  0xb2   : > { %2040 = vmatpush.bf16.msra.mxu3 %v5688_v39  ;;  %2059 = vmatpush.bf16.msrb.mxu1 %v5404_v41  ;;  %v5276_v33 = vor.u32 %v7188_v25, %v5273_v27  ;;  %v7116_v35 = vld [vmem:[#allocation6 + $0x84] sm:$0xf]  ;;  %v5375_v25 = vld [vmem:[#allocation6 + $0x388] sm:$0xf] }
  0xb3   : > { %2028 = vmatmul.bf16.vlgmr.msra.gmra.mxu2 %v8275_v57  ;;  %2002 = vmatmul.bf16.vlgmr.msra.gmra.mxu0 %v8278_v5  ;;  %v4985_v36 = vld [vmem:[#allocation6 + $0xa0] sm:$0xf0]  ;;  %v7217_v27 = vld [vmem:[#allocation6 + $0x3a4] sm:$0xf0] }
  0xb4   : > { %2072 = vmatpush.bf16.msrb.mxu2 %v5660_v42  ;;  %2047 = vmatpush.bf16.msrb.mxu0 %v5116_v53  ;;  %v5241_v39 = vld [vmem:[#allocation6 + $0x2a0] sm:$0xf0]  ;;  %v4988_v44 = vor.u32 %v7116_v35, %v4985_v36  ;;  %v7345_v31 = vld [vmem:[#allocation6 + $0x7a4] sm:$0xf0] }
  0xb5   : > { %2041 = vmatmul.bf16.vlgmr.msra.gmra.mxu3 %v8280_v6  ;;  %v7244_v40 = vld [vmem:[#allocation6 + $0x484] sm:$0xf]  ;;  %v5244_v45 = vor.u32 %v7180_v37, %v5241_v39  ;;  %v5087_v35 = vld [vmem:[#allocation6 + $0x148] sm:$0xf] }
  0xb6   : > { %2085 = vmatpush.bf16.msrb.mxu3 %v5916_v46  ;;  %2060 = vmatpush.bf16.msrb.mxu1 %v5372_v58  ;;  %v5497_v41 = vld [vmem:[#allocation6 + $0x4a0] sm:$0xf0]  ;;  %v7145_v36 = vld [vmem:[#allocation6 + $0x164] sm:$0xf0] }
  0xb7   : > { %v7308_v42 = vld [vmem:[#allocation6 + $0x684] sm:$0xf]  ;;  %v5500_v46 = vor.u32 %v7244_v40, %v5497_v41  ;;  %v5343_v37 = vld [vmem:[#allocation6 + $0x348] sm:$0xf] }
  0xb8   : > { %2073 = vmatpush.bf16.msrb.mxu2 %v5628_v59  ;;  %2048 = vmatpush.bf16.msrb.mxu0 %v5084_v8  ;;  %v7172_v49 = vld [vmem:[#allocation6 + $0x244] sm:$0xf]  ;;  %v5756_v50 = vor.u32 %v7308_v42, %v5753_v43  ;;  %v5151_v8 = vld [vmem:[#allocation6 + $0x1c8] sm:$0xf] }
  0xb9   : > { %v5209_v51 = vld [vmem:[#allocation6 + $0x260] sm:$0xf0]  ;;  %v7209_v39 = vld [vmem:[#allocation6 + $0x364] sm:$0xf0] }
  0xba   : > { %2086 = vmatpush.bf16.msrb.mxu3 %v5884_v63  ;;  %2061 = vmatpush.bf16.msrb.mxu1 %v5340_v9  ;;  %v7236_v52 = vld [vmem:[#allocation6 + $0x444] sm:$0xf]  ;;  %v5212_v60 = vor.u32 %v7172_v49, %v5209_v51  ;;  %v7161_v9 = vld [vmem:[#allocation6 + $0x1e4] sm:$0xf0] }
  0xbb   : > { %v5465_v53 = vld [vmem:[#allocation6 + $0x460] sm:$0xf0]  ;;  %v5599_v40 = vld [vmem:[#allocation6 + $0x548] sm:$0xf] }
  0xbc   : > { %2074 = vmatpush.bf16.msrb.mxu2 %v5596_v10  ;;  %2049 = vmatpush.bf16.msrb.mxu0 %v5052_v20  ;;  %v7300_v54 = vld [vmem:[#allocation6 + $0x644] sm:$0xf]  ;;  %v5468_v61 = vor.u32 %v7236_v52, %v5465_v53  ;;  %v5407_v10 = vld [vmem:[#allocation6 + $0x3c8] sm:$0xf]  ;;  %v5152_v20 = vor.u32 %v7161_v9, %v5151_v8 }
  0xbd   : > { %v5721_v55 = vld [vmem:[#allocation6 + $0x660] sm:$0xf0]  ;;  %v7273_v41 = vld [vmem:[#allocation6 + $0x564] sm:$0xf0] }
  0xbe   : > { %2087 = vmatpush.bf16.msrb.mxu3 %v5852_v14  ;;  %2062 = vmatpush.bf16.msrb.mxu1 %v5308_v21  ;;  %v7100_v58 = vld [vmem:[#allocation6 + $0x4] sm:$0xf]  ;;  %v5724_v1 = vor.u32 %v7300_v54, %v5721_v55  ;;  %v7289_v14 = vld [vmem:[#allocation6 + $0x5e4] sm:$0xf0]  ;;  %v5408_v21 = vor.u32 %v7225_v12, %v5407_v10 }
  0xbf   : > { %v4921_v59 = vld [vmem:[#allocation6 + $0x20] sm:$0xf0]  ;;  %v5855_v42 = vld [vmem:[#allocation6 + $0x748] sm:$0xf] }
  0xc0   : > { %2075 = vmatpush.bf16.msrb.mxu2 %v5564_v22  ;;  %2050 = vmatpush.bf16.msrb.mxu0 %v5020_v32  ;;  %v7164_v62 = vld [vmem:[#allocation6 + $0x204] sm:$0xf]  ;;  %v4924_v11 = vor.u32 %v7100_v58, %v4921_v59  ;;  %v5664_v22 = vor.u32 %v7289_v14, %v5663_v13  ;;  %v5120_v32 = vor.u32 %v7153_v24, %v5119_v23  ;;  %v7337_v43 = vld [vmem:[#allocation6 + $0x764] sm:$0xf0] }
  0xc1   : > { %v5177_v63 = vld [vmem:[#allocation6 + $0x220] sm:$0xf0]  ;;  %v5311_v49 = vld [vmem:[#allocation6 + $0x308] sm:$0xf] }
  0xc2   : > { %2088 = vmatpush.bf16.msrb.mxu3 %v5820_v26  ;;  %2063 = vmatpush.bf16.msrb.mxu1 %v5276_v33  ;;  %v7228_v0 = vld [vmem:[#allocation6 + $0x404] sm:$0xf]  ;;  %v5180_v15 = vor.u32 %v7164_v62, %v5177_v63  ;;  %v5920_v26 = vor.u32 %v7353_v18, %v5919_v17  ;;  %v5376_v33 = vor.u32 %v7217_v27, %v5375_v25  ;;  %v7201_v51 = vld [vmem:[#allocation6 + $0x324] sm:$0xf0] }
  0xc3   : > { %v5433_v2 = vld [vmem:[#allocation6 + $0x420] sm:$0xf0]  ;;  %v5567_v52 = vld [vmem:[#allocation6 + $0x508] sm:$0xf]  ;;  %v5312_v58 = vor.u32 %v7201_v51, %v5311_v49  ;;  %v7285_v49 = vld [vmem:[#allocation6 + $0x5cc] sm:$0xf] }
  0xc4   : > { %2076 = vmatpush.bf16.msrb.mxu2 %v5532_v34  ;;  %2051 = vmatpush.bf16.msrb.mxu0 %v4988_v44  ;;  %v7292_v3 = vld [vmem:[#allocation6 + $0x604] sm:$0xf]  ;;  %v5436_v16 = vor.u32 %v7228_v0, %v5433_v2  ;;  %v5632_v34 = vor.u32 %v7281_v29, %v5631_v28  ;;  %v5088_v44 = vor.u32 %v7145_v36, %v5087_v35  ;;  %v7265_v53 = vld [vmem:[#allocation6 + $0x524] sm:$0xf0] }
  0xc5   : > { %v5689_v4 = vld [vmem:[#allocation6 + $0x620] sm:$0xf0]  ;;  %v5823_v54 = vld [vmem:[#allocation6 + $0x708] sm:$0xf]  ;;  %v5568_v59 = vor.u32 %v7265_v53, %v5567_v52  ;;  %v7349_v53 = vld [vmem:[#allocation6 + $0x7cc] sm:$0xf] }
  0xc6   : > { %2089 = vmatpush.bf16.msrb.mxu3 %v5788_v38  ;;  %2064 = vmatpush.bf16.msrb.mxu1 %v5244_v45  ;;  %v5692_v19 = vor.u32 %v7292_v3, %v5689_v4  ;;  %v5888_v38 = vor.u32 %v7345_v31, %v5887_v30  ;;  %v5344_v45 = vor.u32 %v7209_v39, %v5343_v37  ;;  %v7329_v55 = vld [vmem:[#allocation6 + $0x724] sm:$0xf0] }
  0xc7   : > { %v5279_v62 = vld [vmem:[#allocation6 + $0x2c8] sm:$0xf]  ;;  %v5824_v63 = vor.u32 %v7329_v55, %v5823_v54  ;;  %v5921_v54 = vld [vmem:[#allocation6 + $0x7e8] sm:$0xf0] }
  0xc8   : > { %2077 = vmatpush.bf16.msrb.mxu2 %v5500_v46  ;;  %2052 = vmatpush.bf16.msrb.mxu0 %v4956_v56  ;;  %v5600_v46 = vor.u32 %v7273_v41, %v5599_v40  ;;  %v5056_v56 = vor.u32 %v7137_v48, %v5055_v47  ;;  %v7193_v0 = vld [vmem:[#allocation6 + $0x2e4] sm:$0xf0]  ;;  %v5409_v48 = vld [vmem:[#allocation6 + $0x3e8] sm:$0xf0] }
  0xc9   : > { %v7257_v2 = vld [vmem:[#allocation6 + $0x4e4] sm:$0xf0]  ;;  %v5280_v9 = vor.u32 %v7193_v0, %v5279_v62  ;;  %v7213_v62 = vld [vmem:[#allocation6 + $0x38c] sm:$0xf] }
  0xca   : > { %2090 = vmatpush.bf16.msrb.mxu3 %v5756_v50  ;;  %2065 = vmatpush.bf16.msrb.mxu1 %v5212_v60  ;;  %v5856_v50 = vor.u32 %v7337_v43, %v5855_v42  ;;  %v5023_v60 = vld [vmem:[#allocation6 + $0xc8] sm:$0xf]  ;;  %v5377_v0 = vld [vmem:[#allocation6 + $0x3a8] sm:$0xf0] }
  0xcb   : > { %v5791_v3 = vld [vmem:[#allocation6 + $0x6c8] sm:$0xf] }
  0xcc   : > { %2078 = vmatpush.bf16.msrb.mxu2 %v5468_v61  ;;  %2053 = vmatpush.bf16.msrb.mxu0 %v4924_v11  ;;  %v7129_v61 = vld [vmem:[#allocation6 + $0xe4] sm:$0xf0] }
  0xcd   : > { %v7321_v4 = vld [vmem:[#allocation6 + $0x6e4] sm:$0xf0]  ;;  %v5024_v8 = vor.u32 %v7129_v61, %v5023_v60  ;;  %v7149_v60 = vld [vmem:[#allocation6 + $0x18c] sm:$0xf] }
  0xce   : > { %2091 = vmatpush.bf16.msrb.mxu3 %v5724_v1  ;;  %2066 = vmatpush.bf16.msrb.mxu1 %v5180_v15  ;;  %v5535_v1 = vld [vmem:[#allocation6 + $0x4c8] sm:$0xf]  ;;  %v5792_v14 = vor.u32 %v7321_v4, %v5791_v3  ;;  %v5121_v61 = vld [vmem:[#allocation6 + $0x1a8] sm:$0xf0] }
  0xcf   : > { %2054 = vmatmul.bf16.vlgmr.msrb.gmra.mxu0 %v8278_v5  ;;  %v5536_v10 = vor.u32 %v7257_v2, %v5535_v1  ;;  %v4991_v11 = vld [vmem:[#allocation6 + $0x88] sm:$0xf]  ;;  %v7277_v1 = vld [vmem:[#allocation6 + $0x58c] sm:$0xf] }
  0xd0   : > { %2079 = vmatpush.bf16.msrb.mxu2 %v5436_v16  ;;  %2098 = vmatpush.bf16.msra.mxu0 %v5152_v20  ;;  %v7121_v12 = vld [vmem:[#allocation6 + $0xa4] sm:$0xf0]  ;;  %v5633_v2 = vld [vmem:[#allocation6 + $0x5a8] sm:$0xf0] }
  0xd1   : > { %2067 = vmatmul.bf16.vlgmr.msrb.gmra.mxu1 %v8282_v7  ;;  %v5247_v13 = vld [vmem:[#allocation6 + $0x288] sm:$0xf]  ;;  %v4992_v20 = vor.u32 %v7121_v12, %v4991_v11  ;;  %v7341_v3 = vld [vmem:[#allocation6 + $0x78c] sm:$0xf] }
  0xd2   : > { %2092 = vmatpush.bf16.msrb.mxu3 %v5692_v19  ;;  %2111 = vmatpush.bf16.msra.mxu1 %v5408_v21  ;;  %v7185_v15 = vld [vmem:[#allocation6 + $0x2a4] sm:$0xf0]  ;;  %v5889_v4 = vld [vmem:[#allocation6 + $0x7a8] sm:$0xf0] }
  0xd3   : > { %2080 = vmatmul.bf16.vlgmr.msrb.gmra.mxu2 %v8275_v57  ;;  %v5503_v16 = vld [vmem:[#allocation6 + $0x488] sm:$0xf]  ;;  %v5248_v21 = vor.u32 %v7185_v15, %v5247_v13  ;;  %v7141_v11 = vld [vmem:[#allocation6 + $0x14c] sm:$0xf] }
  0xd4   : > { %2124 = vmatpush.bf16.msra.mxu2 %v5664_v22  ;;  %2099 = vmatpush.bf16.msra.mxu0 %v5120_v32  ;;  %v7249_v17 = vld [vmem:[#allocation6 + $0x4a4] sm:$0xf0]  ;;  %v5089_v12 = vld [vmem:[#allocation6 + $0x168] sm:$0xf0] }
  0xd5   : > { %2093 = vmatmul.bf16.vlgmr.msrb.gmra.mxu3 %v8280_v6  ;;  %v5759_v18 = vld [vmem:[#allocation6 + $0x688] sm:$0xf]  ;;  %v5504_v22 = vor.u32 %v7249_v17, %v5503_v16  ;;  %v7205_v13 = vld [vmem:[#allocation6 + $0x34c] sm:$0xf] }
  0xd6   : > { %2137 = vmatpush.bf16.msra.mxu3 %v5920_v26  ;;  %2112 = vmatpush.bf16.msra.mxu1 %v5376_v33  ;;  %v7313_v19 = vld [vmem:[#allocation6 + $0x6a4] sm:$0xf0]  ;;  %v5345_v15 = vld [vmem:[#allocation6 + $0x368] sm:$0xf0] }
  0xd7   : > { %v4959_v23 = vld [vmem:[#allocation6 + $0x48] sm:$0xf]  ;;  %v5760_v26 = vor.u32 %v7313_v19, %v5759_v18  ;;  %v7269_v16 = vld [vmem:[#allocation6 + $0x54c] sm:$0xf] }
  0xd8   : > { %2125 = vmatpush.bf16.msra.mxu2 %v5632_v34  ;;  %2100 = vmatpush.bf16.msra.mxu0 %v5088_v44  ;;  %v7113_v24 = vld [vmem:[#allocation6 + $0x64] sm:$0xf0]  ;;  %v7157_v44 = vld [vmem:[#allocation6 + $0x1cc] sm:$0xf] }
  0xd9   : > { %v5215_v25 = vld [vmem:[#allocation6 + $0x248] sm:$0xf]  ;;  %v4960_v32 = vor.u32 %v7113_v24, %v4959_v23  ;;  %v5601_v17 = vld [vmem:[#allocation6 + $0x568] sm:$0xf0] }
  0xda   : > { %2138 = vmatpush.bf16.msra.mxu3 %v5888_v38  ;;  %2113 = vmatpush.bf16.msra.mxu1 %v5344_v45  ;;  %v7177_v27 = vld [vmem:[#allocation6 + $0x264] sm:$0xf0]  ;;  %v5153_v45 = vld [vmem:[#allocation6 + $0x1e8] sm:$0xf0] }
  0xdb   : > { %v5471_v28 = vld [vmem:[#allocation6 + $0x448] sm:$0xf]  ;;  %v5216_v35 = vor.u32 %v7177_v27, %v5215_v25  ;;  %v7333_v18 = vld [vmem:[#allocation6 + $0x74c] sm:$0xf] }
  0xdc   : > { %2126 = vmatpush.bf16.msra.mxu2 %v5600_v46  ;;  %2101 = vmatpush.bf16.msra.mxu0 %v5056_v56  ;;  %v7241_v29 = vld [vmem:[#allocation6 + $0x464] sm:$0xf0]  ;;  %v7221_v46 = vld [vmem:[#allocation6 + $0x3cc] sm:$0xf]  ;;  %v5156_v56 = vor.u32 %v7157_v44, %v5153_v45 }
  0xdd   : > { %v5727_v30 = vld [vmem:[#allocation6 + $0x648] sm:$0xf]  ;;  %v5472_v36 = vor.u32 %v7241_v29, %v5471_v28  ;;  %v5857_v19 = vld [vmem:[#allocation6 + $0x768] sm:$0xf0] }
  0xde   : > { %2139 = vmatpush.bf16.msra.mxu3 %v5856_v50  ;;  %2114 = vmatpush.bf16.msra.mxu1 %v5312_v58  ;;  %v7305_v31 = vld [vmem:[#allocation6 + $0x664] sm:$0xf0]  ;;  %v5665_v50 = vld [vmem:[#allocation6 + $0x5e8] sm:$0xf0]  ;;  %v5412_v58 = vor.u32 %v7221_v46, %v5409_v48 }
  0xdf   : > { %v4927_v33 = vld [vmem:[#allocation6 + $0x8] sm:$0xf]  ;;  %v5728_v40 = vor.u32 %v7305_v31, %v5727_v30  ;;  %v7133_v23 = vld [vmem:[#allocation6 + $0x10c] sm:$0xf] }
  0xe0   : > { %2127 = vmatpush.bf16.msra.mxu2 %v5568_v59  ;;  %2102 = vmatpush.bf16.msra.mxu0 %v5024_v8  ;;  %v7105_v34 = vld [vmem:[#allocation6 + $0x24] sm:$0xf0]  ;;  %v5668_v59 = vor.u32 %v7285_v49, %v5665_v50  ;;  %v5124_v8 = vor.u32 %v7149_v60, %v5121_v61  ;;  %v5057_v24 = vld [vmem:[#allocation6 + $0x128] sm:$0xf0] }
  0xe1   : > { %v5183_v37 = vld [vmem:[#allocation6 + $0x208] sm:$0xf]  ;;  %v4928_v47 = vor.u32 %v7105_v34, %v4927_v33  ;;  %v7197_v25 = vld [vmem:[#allocation6 + $0x30c] sm:$0xf] }
  0xe2   : > { %2140 = vmatpush.bf16.msra.mxu3 %v5824_v63  ;;  %2115 = vmatpush.bf16.msra.mxu1 %v5280_v9  ;;  %v7169_v38 = vld [vmem:[#allocation6 + $0x224] sm:$0xf0]  ;;  %v5924_v63 = vor.u32 %v7349_v53, %v5921_v54  ;;  %v5380_v9 = vor.u32 %v7213_v62, %v5377_v0  ;;  %v5313_v27 = vld [vmem:[#allocation6 + $0x328] sm:$0xf0] }
  0xe3   : > { %v5439_v39 = vld [vmem:[#allocation6 + $0x408] sm:$0xf]  ;;  %v5184_v51 = vor.u32 %v7169_v38, %v5183_v37  ;;  %v7261_v28 = vld [vmem:[#allocation6 + $0x50c] sm:$0xf]  ;;  %v5316_v33 = vor.u32 %v7197_v25, %v5313_v27  ;;  %v5671_v25 = vld [vmem:[#allocation6 + $0x5d0] sm:$0xf] }
  0xe4   : > { %2128 = vmatpush.bf16.msra.mxu2 %v5536_v10  ;;  %2103 = vmatpush.bf16.msra.mxu0 %v4992_v20  ;;  %v7233_v41 = vld [vmem:[#allocation6 + $0x424] sm:$0xf0]  ;;  %v5636_v10 = vor.u32 %v7277_v1, %v5633_v2  ;;  %v5092_v20 = vor.u32 %v7141_v11, %v5089_v12  ;;  %v5569_v29 = vld [vmem:[#allocation6 + $0x528] sm:$0xf0] }
  0xe5   : > { %v5695_v42 = vld [vmem:[#allocation6 + $0x608] sm:$0xf]  ;;  %v5440_v52 = vor.u32 %v7233_v41, %v5439_v39  ;;  %v7325_v30 = vld [vmem:[#allocation6 + $0x70c] sm:$0xf]  ;;  %v5572_v34 = vor.u32 %v7261_v28, %v5569_v29  ;;  %v5927_v29 = vld [vmem:[#allocation6 + $0x7d0] sm:$0xf] }
  0xe6   : > { %2141 = vmatpush.bf16.msra.mxu3 %v5792_v14  ;;  %2116 = vmatpush.bf16.msra.mxu1 %v5248_v21  ;;  %v7297_v43 = vld [vmem:[#allocation6 + $0x624] sm:$0xf0]  ;;  %v5892_v14 = vor.u32 %v7341_v3, %v5889_v4  ;;  %v5348_v21 = vor.u32 %v7205_v13, %v5345_v15  ;;  %v5825_v31 = vld [vmem:[#allocation6 + $0x728] sm:$0xf0] }
  0xe7   : > { %v5696_v55 = vor.u32 %v7297_v43, %v5695_v42  ;;  %v7189_v37 = vld [vmem:[#allocation6 + $0x2cc] sm:$0xf]  ;;  %v5828_v38 = vor.u32 %v7325_v30, %v5825_v31  ;;  %v7354_v30 = vld [vmem:[#allocation6 + $0x7ec] sm:$0xf0] }
  0xe8   : > { %2129 = vmatpush.bf16.msra.mxu2 %v5504_v22  ;;  %2104 = vmatpush.bf16.msra.mxu0 %v4960_v32  ;;  %v5604_v22 = vor.u32 %v7269_v16, %v5601_v17  ;;  %v5060_v32 = vor.u32 %v7133_v23, %v5057_v24  ;;  %v5281_v39 = vld [vmem:[#allocation6 + $0x2e8] sm:$0xf0]  ;;  %v7226_v24 = vld [vmem:[#allocation6 + $0x3ec] sm:$0xf0] }
  0xe9   : > { %v5537_v41 = vld [vmem:[#allocation6 + $0x4e8] sm:$0xf0]  ;;  %v5284_v45 = vor.u32 %v7189_v37, %v5281_v39  ;;  %v5383_v37 = vld [vmem:[#allocation6 + $0x390] sm:$0xf] }
  0xea   : > { %2142 = vmatpush.bf16.msra.mxu3 %v5760_v26  ;;  %2117 = vmatpush.bf16.msra.mxu1 %v5216_v35  ;;  %v5860_v26 = vor.u32 %v7333_v18, %v5857_v19  ;;  %v7125_v35 = vld [vmem:[#allocation6 + $0xcc] sm:$0xf]  ;;  %v7218_v39 = vld [vmem:[#allocation6 + $0x3ac] sm:$0xf0] }
  0xeb   : > { %v7317_v42 = vld [vmem:[#allocation6 + $0x6cc] sm:$0xf] }
  0xec   : > { %2130 = vmatpush.bf16.msra.mxu2 %v5472_v36  ;;  %2105 = vmatpush.bf16.msra.mxu0 %v4928_v47  ;;  %v5025_v36 = vld [vmem:[#allocation6 + $0xe8] sm:$0xf0] }
  0xed   : > { %v5793_v43 = vld [vmem:[#allocation6 + $0x6e8] sm:$0xf0]  ;;  %v5028_v44 = vor.u32 %v7125_v35, %v5025_v36  ;;  %v5127_v35 = vld [vmem:[#allocation6 + $0x190] sm:$0xf] }
  0xee   : > { %2143 = vmatpush.bf16.msra.mxu3 %v5728_v40  ;;  %2118 = vmatpush.bf16.msra.mxu1 %v5184_v51  ;;  %v7253_v40 = vld [vmem:[#allocation6 + $0x4cc] sm:$0xf]  ;;  %v5796_v50 = vor.u32 %v7317_v42, %v5793_v43  ;;  %v7154_v36 = vld [vmem:[#allocation6 + $0x1ac] sm:$0xf0] }
  0xef   : > { %2106 = vmatmul.bf16.vlgmr.msra.gmra.mxu0 %v8278_v5  ;;  %v5540_v46 = vor.u32 %v7253_v40, %v5537_v41  ;;  %v7117_v47 = vld [vmem:[#allocation6 + $0x8c] sm:$0xf]  ;;  %v5639_v40 = vld [vmem:[#allocation6 + $0x590] sm:$0xf] }
  0xf0   : > { %2131 = vmatpush.bf16.msra.mxu2 %v5440_v52  ;;  %2150 = vmatpush.bf16.msrb.mxu0 %v5156_v56  ;;  %v4993_v48 = vld [vmem:[#allocation6 + $0xa8] sm:$0xf0]  ;;  %v7282_v41 = vld [vmem:[#allocation6 + $0x5ac] sm:$0xf0] }
  0xf1   : > { %2119 = vmatmul.bf16.vlgmr.msra.gmra.mxu1 %v8282_v7  ;;  %v7181_v49 = vld [vmem:[#allocation6 + $0x28c] sm:$0xf]  ;;  %v4996_v56 = vor.u32 %v7117_v47, %v4993_v48  ;;  %v5895_v42 = vld [vmem:[#allocation6 + $0x790] sm:$0xf] }
  0xf2   : > { %2144 = vmatpush.bf16.msra.mxu3 %v5696_v55  ;;  %2163 = vmatpush.bf16.msrb.mxu1 %v5412_v58  ;;  %v5249_v51 = vld [vmem:[#allocation6 + $0x2a8] sm:$0xf0]  ;;  %v7346_v43 = vld [vmem:[#allocation6 + $0x7ac] sm:$0xf0] }
  0xf3   : > { %2132 = vmatmul.bf16.vlgmr.msra.gmra.mxu2 %v8275_v57  ;;  %v7245_v52 = vld [vmem:[#allocation6 + $0x48c] sm:$0xf]  ;;  %v5252_v58 = vor.u32 %v7181_v49, %v5249_v51  ;;  %v5095_v47 = vld [vmem:[#allocation6 + $0x150] sm:$0xf] }
  0xf4   : > { %2176 = vmatpush.bf16.msrb.mxu2 %v5668_v59  ;;  %2151 = vmatpush.bf16.msrb.mxu0 %v5124_v8  ;;  %v5505_v53 = vld [vmem:[#allocation6 + $0x4a8] sm:$0xf0]  ;;  %v7146_v48 = vld [vmem:[#allocation6 + $0x16c] sm:$0xf0] }
  0xf5   : > { %2145 = vmatmul.bf16.vlgmr.msra.gmra.mxu3 %v8280_v6  ;;  %v7309_v54 = vld [vmem:[#allocation6 + $0x68c] sm:$0xf]  ;;  %v5508_v59 = vor.u32 %v7245_v52, %v5505_v53  ;;  %v5351_v49 = vld [vmem:[#allocation6 + $0x350] sm:$0xf] }
  0xf6   : > { %2189 = vmatpush.bf16.msrb.mxu3 %v5924_v63  ;;  %2164 = vmatpush.bf16.msrb.mxu1 %v5380_v9  ;;  %v5761_v55 = vld [vmem:[#allocation6 + $0x6a8] sm:$0xf0]  ;;  %v7210_v51 = vld [vmem:[#allocation6 + $0x36c] sm:$0xf0] }
  0xf7   : > { %v7109_v60 = vld [vmem:[#allocation6 + $0x4c] sm:$0xf]  ;;  %v5764_v63 = vor.u32 %v7309_v54, %v5761_v55  ;;  %v5607_v52 = vld [vmem:[#allocation6 + $0x550] sm:$0xf] }
  0xf8   : > { %2177 = vmatpush.bf16.msrb.mxu2 %v5636_v10  ;;  %2152 = vmatpush.bf16.msrb.mxu0 %v5092_v20  ;;  %v4961_v61 = vld [vmem:[#allocation6 + $0x68] sm:$0xf0]  ;;  %v5159_v20 = vld [vmem:[#allocation6 + $0x1d0] sm:$0xf] }
  0xf9   : > { %v7173_v62 = vld [vmem:[#allocation6 + $0x24c] sm:$0xf]  ;;  %v4964_v8 = vor.u32 %v7109_v60, %v4961_v61  ;;  %v7274_v53 = vld [vmem:[#allocation6 + $0x56c] sm:$0xf0] }
  0xfa   : > { %2190 = vmatpush.bf16.msrb.mxu3 %v5892_v14  ;;  %2165 = vmatpush.bf16.msrb.mxu1 %v5348_v21  ;;  %v5217_v0 = vld [vmem:[#allocation6 + $0x268] sm:$0xf0]  ;;  %v7162_v21 = vld [vmem:[#allocation6 + $0x1ec] sm:$0xf0] }
  0xfb   : > { %v7237_v1 = vld [vmem:[#allocation6 + $0x44c] sm:$0xf]  ;;  %v5220_v11 = vor.u32 %v7173_v62, %v5217_v0  ;;  %v5863_v54 = vld [vmem:[#allocation6 + $0x750] sm:$0xf] }
  0xfc   : > { %2178 = vmatpush.bf16.msrb.mxu2 %v5604_v22  ;;  %2153 = vmatpush.bf16.msrb.mxu0 %v5060_v32  ;;  %v5473_v2 = vld [vmem:[#allocation6 + $0x468] sm:$0xf0]  ;;  %v5415_v22 = vld [vmem:[#allocation6 + $0x3d0] sm:$0xf]  ;;  %v5160_v32 = vor.u32 %v7162_v21, %v5159_v20 }
  0xfd   : > { %v7301_v3 = vld [vmem:[#allocation6 + $0x64c] sm:$0xf]  ;;  %v5476_v12 = vor.u32 %v7237_v1, %v5473_v2  ;;  %v7338_v55 = vld [vmem:[#allocation6 + $0x76c] sm:$0xf0] }
  0xfe   : > { %2191 = vmatpush.bf16.msrb.mxu3 %v5860_v26  ;;  %2166 = vmatpush.bf16.msrb.mxu1 %v5316_v33  ;;  %v5729_v4 = vld [vmem:[#allocation6 + $0x668] sm:$0xf0]  ;;  %v7290_v26 = vld [vmem:[#allocation6 + $0x5ec] sm:$0xf0]  ;;  %v5416_v33 = vor.u32 %v7226_v24, %v5415_v22 }
  0xff   : > { %v7101_v9 = vld [vmem:[#allocation6 + $0xc] sm:$0xf]  ;;  %v5732_v16 = vor.u32 %v7301_v3, %v5729_v4  ;;  %v5063_v60 = vld [vmem:[#allocation6 + $0x110] sm:$0xf] }
 0x100   : > { %2179 = vmatpush.bf16.msrb.mxu2 %v5572_v34  ;;  %2154 = vmatpush.bf16.msrb.mxu0 %v5028_v44  ;;  %v4929_v10 = vld [vmem:[#allocation6 + $0x28] sm:$0xf0]  ;;  %v5672_v34 = vor.u32 %v7290_v26, %v5671_v25  ;;  %v5128_v44 = vor.u32 %v7154_v36, %v5127_v35  ;;  %v7138_v61 = vld [vmem:[#allocation6 + $0x12c] sm:$0xf0] }
 0x101   : > { %v7165_v13 = vld [vmem:[#allocation6 + $0x20c] sm:$0xf]  ;;  %v4932_v23 = vor.u32 %v7101_v9, %v4929_v10  ;;  %v5319_v62 = vld [vmem:[#allocation6 + $0x310] sm:$0xf] }
 0x102   : > { %2192 = vmatpush.bf16.msrb.mxu3 %v5828_v38  ;;  %2167 = vmatpush.bf16.msrb.mxu1 %v5284_v45  ;;  %v5185_v14 = vld [vmem:[#allocation6 + $0x228] sm:$0xf0]  ;;  %v5928_v38 = vor.u32 %v7354_v30, %v5927_v29  ;;  %v5384_v45 = vor.u32 %v7218_v39, %v5383_v37  ;;  %v7202_v0 = vld [vmem:[#allocation6 + $0x32c] sm:$0xf0] }
 0x103   : > { %v7229_v15 = vld [vmem:[#allocation6 + $0x40c] sm:$0xf]  ;;  %v5188_v27 = vor.u32 %v7165_v13, %v5185_v14  ;;  %v5575_v1 = vld [vmem:[#allocation6 + $0x510] sm:$0xf]  ;;  %v5320_v9 = vor.u32 %v7202_v0, %v5319_v62  ;;  %v7286_v62 = vld [vmem:[#allocation6 + $0x5d4] sm:$0xf] }
 0x104   : > { %2180 = vmatpush.bf16.msrb.mxu2 %v5540_v46  ;;  %2155 = vmatpush.bf16.msrb.mxu0 %v4996_v56  ;;  %v5441_v17 = vld [vmem:[#allocation6 + $0x428] sm:$0xf0]  ;;  %v5640_v46 = vor.u32 %v7282_v41, %v5639_v40  ;;  %v5096_v56 = vor.u32 %v7146_v48, %v5095_v47  ;;  %v7266_v2 = vld [vmem:[#allocation6 + $0x52c] sm:$0xf0] }
 0x105   : > { %v7293_v18 = vld [vmem:[#allocation6 + $0x60c] sm:$0xf]  ;;  %v5444_v28 = vor.u32 %v7229_v15, %v5441_v17  ;;  %v5831_v3 = vld [vmem:[#allocation6 + $0x710] sm:$0xf]  ;;  %v5576_v10 = vor.u32 %v7266_v2, %v5575_v1  ;;  %v7350_v2 = vld [vmem:[#allocation6 + $0x7d4] sm:$0xf] }
 0x106   : > { %2193 = vmatpush.bf16.msrb.mxu3 %v5796_v50  ;;  %2168 = vmatpush.bf16.msrb.mxu1 %v5252_v58  ;;  %v5697_v19 = vld [vmem:[#allocation6 + $0x628] sm:$0xf0]  ;;  %v5896_v50 = vor.u32 %v7346_v43, %v5895_v42  ;;  %v5352_v58 = vor.u32 %v7210_v51, %v5351_v49  ;;  %v7330_v4 = vld [vmem:[#allocation6 + $0x72c] sm:$0xf0] }
 0x107   : > { %v5700_v31 = vor.u32 %v7293_v18, %v5697_v19  ;;  %v5287_v13 = vld [vmem:[#allocation6 + $0x2d0] sm:$0xf]  ;;  %v5832_v14 = vor.u32 %v7330_v4, %v5831_v3  ;;  %v5929_v3 = vld [vmem:[#allocation6 + $0x7f0] sm:$0xf0] }
 0x108   : > { %2181 = vmatpush.bf16.msrb.mxu2 %v5508_v59  ;;  %2156 = vmatpush.bf16.msrb.mxu0 %v4964_v8  ;;  %v5608_v59 = vor.u32 %v7274_v53, %v5607_v52  ;;  %v5064_v8 = vor.u32 %v7138_v61, %v5063_v60  ;;  %v7194_v15 = vld [vmem:[#allocation6 + $0x2ec] sm:$0xf0]  ;;  %v5417_v61 = vld [vmem:[#allocation6 + $0x3f0] sm:$0xf0] }
 0x109   : > { %v7258_v17 = vld [vmem:[#allocation6 + $0x4ec] sm:$0xf0]  ;;  %v5288_v21 = vor.u32 %v7194_v15, %v5287_v13  ;;  %v7214_v13 = vld [vmem:[#allocation6 + $0x394] sm:$0xf] }
 0x10a   : > { %2194 = vmatpush.bf16.msrb.mxu3 %v5764_v63  ;;  %2169 = vmatpush.bf16.msrb.mxu1 %v5220_v11  ;;  %v5864_v63 = vor.u32 %v7338_v55, %v5863_v54  ;;  %v5031_v11 = vld [vmem:[#allocation6 + $0xd0] sm:$0xf]  ;;  %v5385_v15 = vld [vmem:[#allocation6 + $0x3b0] sm:$0xf0] }
 0x10b   : > { %v5799_v18 = vld [vmem:[#allocation6 + $0x6d0] sm:$0xf] }
 0x10c   : > { %2182 = vmatpush.bf16.msrb.mxu2 %v5476_v12  ;;  %2157 = vmatpush.bf16.msrb.mxu0 %v4932_v23  ;;  %v7130_v12 = vld [vmem:[#allocation6 + $0xec] sm:$0xf0] }
 0x10d   : > { %v7322_v19 = vld [vmem:[#allocation6 + $0x6ec] sm:$0xf0]  ;;  %v5032_v20 = vor.u32 %v7130_v12, %v5031_v11  ;;  %v7150_v11 = vld [vmem:[#allocation6 + $0x194] sm:$0xf] }
 0x10e   : > { %2195 = vmatpush.bf16.msrb.mxu3 %v5732_v16  ;;  %2170 = vmatpush.bf16.msrb.mxu1 %v5188_v27  ;;  %v5543_v16 = vld [vmem:[#allocation6 + $0x4d0] sm:$0xf]  ;;  %v5800_v26 = vor.u32 %v7322_v19, %v5799_v18  ;;  %v5129_v12 = vld [vmem:[#allocation6 + $0x1b0] sm:$0xf0] }
 0x10f   : > { %2158 = vmatmul.bf16.vlgmr.msrb.gmra.mxu0 %v8278_v5  ;;  %v5544_v22 = vor.u32 %v7258_v17, %v5543_v16  ;;  %v4999_v23 = vld [vmem:[#allocation6 + $0x90] sm:$0xf]  ;;  %v7278_v16 = vld [vmem:[#allocation6 + $0x594] sm:$0xf] }
 0x110   : > { %2183 = vmatpush.bf16.msrb.mxu2 %v5444_v28  ;;  %2202 = vmatpush.bf16.msra.mxu0 %v5160_v32  ;;  %v7122_v24 = vld [vmem:[#allocation6 + $0xac] sm:$0xf0]  ;;  %v5641_v17 = vld [vmem:[#allocation6 + $0x5b0] sm:$0xf0] }
 0x111   : > { %2171 = vmatmul.bf16.vlgmr.msrb.gmra.mxu1 %v8282_v7  ;;  %v5255_v25 = vld [vmem:[#allocation6 + $0x290] sm:$0xf]  ;;  %v5000_v32 = vor.u32 %v7122_v24, %v4999_v23  ;;  %v7342_v18 = vld [vmem:[#allocation6 + $0x794] sm:$0xf] }
 0x112   : > { %2196 = vmatpush.bf16.msrb.mxu3 %v5700_v31  ;;  %2215 = vmatpush.bf16.msra.mxu1 %v5416_v33  ;;  %v7186_v27 = vld [vmem:[#allocation6 + $0x2ac] sm:$0xf0]  ;;  %v5897_v19 = vld [vmem:[#allocation6 + $0x7b0] sm:$0xf0] }
 0x113   : > { %2184 = vmatmul.bf16.vlgmr.msrb.gmra.mxu2 %v8275_v57  ;;  %v5511_v28 = vld [vmem:[#allocation6 + $0x490] sm:$0xf]  ;;  %v5256_v33 = vor.u32 %v7186_v27, %v5255_v25  ;;  %v7142_v23 = vld [vmem:[#allocation6 + $0x154] sm:$0xf] }
 0x114   : > { %2228 = vmatpush.bf16.msra.mxu2 %v5672_v34  ;;  %2203 = vmatpush.bf16.msra.mxu0 %v5128_v44  ;;  %v7250_v29 = vld [vmem:[#allocation6 + $0x4ac] sm:$0xf0]  ;;  %v5097_v24 = vld [vmem:[#allocation6 + $0x170] sm:$0xf0] }
 0x115   : > { %2197 = vmatmul.bf16.vlgmr.msrb.gmra.mxu3 %v8280_v6  ;;  %v5767_v30 = vld [vmem:[#allocation6 + $0x690] sm:$0xf]  ;;  %v5512_v34 = vor.u32 %v7250_v29, %v5511_v28  ;;  %v7206_v25 = vld [vmem:[#allocation6 + $0x354] sm:$0xf] }
 0x116   : > { %2241 = vmatpush.bf16.msra.mxu3 %v5928_v38  ;;  %2216 = vmatpush.bf16.msra.mxu1 %v5384_v45  ;;  %v7314_v31 = vld [vmem:[#allocation6 + $0x6ac] sm:$0xf0]  ;;  %v5353_v27 = vld [vmem:[#allocation6 + $0x370] sm:$0xf0] }
 0x117   : > { %v4967_v35 = vld [vmem:[#allocation6 + $0x50] sm:$0xf]  ;;  %v5768_v38 = vor.u32 %v7314_v31, %v5767_v30  ;;  %v7270_v28 = vld [vmem:[#allocation6 + $0x554] sm:$0xf] }
 0x118   : > { %2229 = vmatpush.bf16.msra.mxu2 %v5640_v46  ;;  %2204 = vmatpush.bf16.msra.mxu0 %v5096_v56  ;;  %v7114_v36 = vld [vmem:[#allocation6 + $0x6c] sm:$0xf0]  ;;  %v7158_v56 = vld [vmem:[#allocation6 + $0x1d4] sm:$0xf] }
 0x119   : > { %v5223_v37 = vld [vmem:[#allocation6 + $0x250] sm:$0xf]  ;;  %v4968_v44 = vor.u32 %v7114_v36, %v4967_v35  ;;  %v5609_v29 = vld [vmem:[#allocation6 + $0x570] sm:$0xf0] }
 0x11a   : > { %2242 = vmatpush.bf16.msra.mxu3 %v5896_v50  ;;  %2217 = vmatpush.bf16.msra.mxu1 %v5352_v58  ;;  %v7178_v39 = vld [vmem:[#allocation6 + $0x26c] sm:$0xf0]  ;;  %v5161_v58 = vld [vmem:[#allocation6 + $0x1f0] sm:$0xf0] }
 0x11b   : > { %v5479_v40 = vld [vmem:[#allocation6 + $0x450] sm:$0xf]  ;;  %v5224_v47 = vor.u32 %v7178_v39, %v5223_v37  ;;  %v7334_v30 = vld [vmem:[#allocation6 + $0x754] sm:$0xf] }
 0x11c   : > { %2230 = vmatpush.bf16.msra.mxu2 %v5608_v59  ;;  %2205 = vmatpush.bf16.msra.mxu0 %v5064_v8  ;;  %v7242_v41 = vld [vmem:[#allocation6 + $0x46c] sm:$0xf0]  ;;  %v7222_v59 = vld [vmem:[#allocation6 + $0x3d4] sm:$0xf]  ;;  %v5164_v8 = vor.u32 %v7158_v56, %v5161_v58 }
 0x11d   : > { %v5735_v42 = vld [vmem:[#allocation6 + $0x650] sm:$0xf]  ;;  %v5480_v48 = vor.u32 %v7242_v41, %v5479_v40  ;;  %v5865_v31 = vld [vmem:[#allocation6 + $0x770] sm:$0xf0] }
 0x11e   : > { %2243 = vmatpush.bf16.msra.mxu3 %v5864_v63  ;;  %2218 = vmatpush.bf16.msra.mxu1 %v5320_v9  ;;  %v7306_v43 = vld [vmem:[#allocation6 + $0x66c] sm:$0xf0]  ;;  %v5673_v63 = vld [vmem:[#allocation6 + $0x5f0] sm:$0xf0]  ;;  %v5420_v9 = vor.u32 %v7222_v59, %v5417_v61 }
 0x11f   : > { %v4935_v45 = vld [vmem:[#allocation6 + $0x10] sm:$0xf]  ;;  %v5736_v52 = vor.u32 %v7306_v43, %v5735_v42  ;;  %v7134_v35 = vld [vmem:[#allocation6 + $0x114] sm:$0xf] }
 0x120   : > { %2231 = vmatpush.bf16.msra.mxu2 %v5576_v10  ;;  %2206 = vmatpush.bf16.msra.mxu0 %v5032_v20  ;;  %v7106_v46 = vld [vmem:[#allocation6 + $0x2c] sm:$0xf0]  ;;  %v5676_v10 = vor.u32 %v7286_v62, %v5673_v63  ;;  %v5132_v20 = vor.u32 %v7150_v11, %v5129_v12  ;;  %v5065_v36 = vld [vmem:[#allocation6 + $0x130] sm:$0xf0] }
 0x121   : > { %v5191_v49 = vld [vmem:[#allocation6 + $0x210] sm:$0xf]  ;;  %v4936_v60 = vor.u32 %v7106_v46, %v4935_v45  ;;  %v7198_v37 = vld [vmem:[#allocation6 + $0x314] sm:$0xf] }
 0x122   : > { %2244 = vmatpush.bf16.msra.mxu3 %v5832_v14  ;;  %2219 = vmatpush.bf16.msra.mxu1 %v5288_v21  ;;  %v7170_v50 = vld [vmem:[#allocation6 + $0x22c] sm:$0xf0]  ;;  %v5932_v14 = vor.u32 %v7350_v2, %v5929_v3  ;;  %v5388_v21 = vor.u32 %v7214_v13, %v5385_v15  ;;  %v5321_v39 = vld [vmem:[#allocation6 + $0x330] sm:$0xf0] }
 0x123   : > { %v5447_v51 = vld [vmem:[#allocation6 + $0x410] sm:$0xf]  ;;  %v5192_v0 = vor.u32 %v7170_v50, %v5191_v49  ;;  %v7262_v40 = vld [vmem:[#allocation6 + $0x514] sm:$0xf]  ;;  %v5324_v45 = vor.u32 %v7198_v37, %v5321_v39 }
 0x124   : > { %2232 = vmatpush.bf16.msra.mxu2 %v5544_v22  ;;  %2207 = vmatpush.bf16.msra.mxu0 %v5000_v32  ;;  %v7234_v53 = vld [vmem:[#allocation6 + $0x42c] sm:$0xf0]  ;;  %v5644_v22 = vor.u32 %v7278_v16, %v5641_v17  ;;  %v5100_v32 = vor.u32 %v7142_v23, %v5097_v24  ;;  %v5577_v41 = vld [vmem:[#allocation6 + $0x530] sm:$0xf0] }
 0x125   : > { %v5703_v54 = vld [vmem:[#allocation6 + $0x610] sm:$0xf]  ;;  %v5448_v1 = vor.u32 %v7234_v53, %v5447_v51  ;;  %v7326_v42 = vld [vmem:[#allocation6 + $0x714] sm:$0xf]  ;;  %v5580_v46 = vor.u32 %v7262_v40, %v5577_v41  ;;  %v5167_v40 = vld [vmem:[#allocation6 + $0x1d8] sm:$0xf] }
 0x126   : > { %2245 = vmatpush.bf16.msra.mxu3 %v5800_v26  ;;  %2220 = vmatpush.bf16.msra.mxu1 %v5256_v33  ;;  %v7298_v55 = vld [vmem:[#allocation6 + $0x62c] sm:$0xf0]  ;;  %v5900_v26 = vor.u32 %v7342_v18, %v5897_v19  ;;  %v5356_v33 = vor.u32 %v7206_v25, %v5353_v27  ;;  %v5833_v43 = vld [vmem:[#allocation6 + $0x730] sm:$0xf0]  ;;  %v7163_v41 = vld [vmem:[#allocation6 + $0x1f4] sm:$0xf0] }
 0x127   : > { %v5704_v4 = vor.u32 %v7298_v55, %v5703_v54  ;;  %v7190_v49 = vld [vmem:[#allocation6 + $0x2d4] sm:$0xf]  ;;  %v5836_v50 = vor.u32 %v7326_v42, %v5833_v43  ;;  %v5423_v42 = vld [vmem:[#allocation6 + $0x3d8] sm:$0xf] }
 0x128   : > { %2233 = vmatpush.bf16.msra.mxu2 %v5512_v34  ;;  %2208 = vmatpush.bf16.msra.mxu0 %v4968_v44  ;;  %v5612_v34 = vor.u32 %v7270_v28, %v5609_v29  ;;  %v5068_v44 = vor.u32 %v7134_v35, %v5065_v36  ;;  %v5289_v51 = vld [vmem:[#allocation6 + $0x2f0] sm:$0xf0] }
 0x129   : > { %v5545_v53 = vld [vmem:[#allocation6 + $0x4f0] sm:$0xf0] }
 0x12a   : > { %2246 = vmatpush.bf16.msra.mxu3 %v5768_v38  ;;  %2221 = vmatpush.bf16.msra.mxu1 %v5224_v47  ;;  %v5868_v38 = vor.u32 %v7334_v30, %v5865_v31  ;;  %v7126_v47 = vld [vmem:[#allocation6 + $0xd4] sm:$0xf]  ;;  %v8311_v31 = vld [vmem:[#allocation8] sm:$0xff] }
 0x12b   : > { %v7318_v54 = vld [vmem:[#allocation6 + $0x6d4] sm:$0xf] }
 0x12c   : > { %2234 = vmatpush.bf16.msra.mxu2 %v5480_v48  ;;  %2209 = vmatpush.bf16.msra.mxu0 %v4936_v60  ;;  %v5033_v48 = vld [vmem:[#allocation6 + $0xf0] sm:$0xf0]  ;;  %v5292_v60 = vor.u32 %v7190_v49, %v5289_v51  ;;  %v5935_v49 = vld [vmem:[#allocation6 + $0x7d8] sm:$0xf]  ;;  %v698_v51 = vperm.slane %v8311_v31, 0 }
 0x12d   : > { %v5801_v55 = vld [vmem:[#allocation6 + $0x6f0] sm:$0xf0]  ;;  %v5036_v58 = vor.u32 %v7126_v47, %v5033_v48 }
 0x12e   : > { %2247 = vmatpush.bf16.msra.mxu3 %v5736_v52  ;;  %2222 = vmatpush.bf16.msra.mxu1 %v5192_v0  ;;  %v7254_v52 = vld [vmem:[#allocation6 + $0x4d4] sm:$0xf]  ;;  %v8305_v59 = vpop.f32.mrf.mxu1  ;;  %v5804_v2 = vor.u32 %v7318_v54, %v5801_v55 }
 0x12f   : > { %2210 = vmatmul.bf16.vlgmr.msra.gmra.mxu0 %v8278_v5  ;;  %v5548_v61 = vor.u32 %v7254_v52, %v5545_v53  ;;  %v7118_v62 = vld [vmem:[#allocation6 + $0x94] sm:$0xf]  ;;  %v5168_v53 = vor.u32 %v7163_v41, %v5167_v40 }
 0x130   : > { %2235 = vmatpush.bf16.msra.mxu2 %v5448_v1  ;;  %2254 = vmatpush.bf16.msrb.mxu0 %v5164_v8  ;;  %v8303_v56 = vpop.f32.mrf.mxu0  ;;  %v5001_v63 = vld [vmem:[#allocation6 + $0xb0] sm:$0xf0] }
 0x131   : > { %2223 = vmatmul.bf16.vlgmr.msra.gmra.mxu1 %v8282_v7  ;;  %v7182_v0 = vld [vmem:[#allocation6 + $0x294] sm:$0xf]  ;;  %v5004_v11 = vor.u32 %v7118_v62, %v5001_v63  ;;  %v5391_v62 = vld [vmem:[#allocation6 + $0x398] sm:$0xf] }
 0x132   : > { %2248 = vmatpush.bf16.msra.mxu3 %v5704_v4  ;;  %2267 = vmatpush.bf16.msrb.mxu1 %v5420_v9  ;;  %v5257_v3 = vld [vmem:[#allocation6 + $0x2b0] sm:$0xf0] }
 0x133   : > { %2236 = vmatmul.bf16.vlgmr.msra.gmra.mxu2 %v8275_v57  ;;  %v7246_v4 = vld [vmem:[#allocation6 + $0x494] sm:$0xf]  ;;  %v5260_v12 = vor.u32 %v7182_v0, %v5257_v3  ;;  %v7219_v0 = vld [vmem:[#allocation6 + $0x3b4] sm:$0xf0] }
 0x134   : > { %2280 = vmatpush.bf16.msrb.mxu2 %v5676_v10  ;;  %2255 = vmatpush.bf16.msrb.mxu0 %v5132_v20  ;;  %v5513_v8 = vld [vmem:[#allocation6 + $0x4b0] sm:$0xf0]  ;;  %v7283_v3 = vld [vmem:[#allocation6 + $0x5b4] sm:$0xf0] }
 0x135   : > { %2249 = vmatmul.bf16.vlgmr.msra.gmra.mxu3 %v8280_v6  ;;  %v7310_v9 = vld [vmem:[#allocation6 + $0x694] sm:$0xf]  ;;  %v5516_v13 = vor.u32 %v7246_v4, %v5513_v8  ;;  %v5903_v4 = vld [vmem:[#allocation6 + $0x798] sm:$0xf] }
 0x136   : > { %2293 = vmatpush.bf16.msrb.mxu3 %v5932_v14  ;;  %2268 = vmatpush.bf16.msrb.mxu1 %v5388_v21  ;;  %v8307_v1 = vpop.f32.mrf.mxu2  ;;  %v5769_v10 = vld [vmem:[#allocation6 + $0x6b0] sm:$0xf0]  ;;  %v2018_v28 = vpop.f32.mrf.mxu1  ;;  %v7347_v8 = vld [vmem:[#allocation6 + $0x7b4] sm:$0xf0] }
 0x137   : > { %v7110_v14 = vld [vmem:[#allocation6 + $0x54] sm:$0xf]  ;;  %v5772_v17 = vor.u32 %v7310_v9, %v5769_v10  ;;  %v5392_v10 = vor.u32 %v7219_v0, %v5391_v62  ;;  %v699_v28 = vperm.slane %v8311_v31, 1  ;;  %v5263_v62 = vld [vmem:[#allocation6 + $0x298] sm:$0xf] }
 0x138   : > { %2281 = vmatpush.bf16.msrb.mxu2 %v5644_v22  ;;  %2256 = vmatpush.bf16.msrb.mxu0 %v5100_v32  ;;  %v4969_v15 = vld [vmem:[#allocation6 + $0x70] sm:$0xf0]  ;;  %v8309_v21 = vpop.f32.mrf.mxu3  ;;  %v2005_v24 = vpop.f32.mrf.mxu0 }
 0x139   : > { %v7174_v16 = vld [vmem:[#allocation6 + $0x254] sm:$0xf]  ;;  %v4972_v25 = vor.u32 %v7110_v14, %v4969_v15  ;;  %v5359_v14 = vld [vmem:[#allocation6 + $0x358] sm:$0xf]  ;;  %v2004_v15 = vadd.f32 %v8303_v56, %v698_v51 }
 0x13a   : > { %2294 = vmatpush.bf16.msrb.mxu3 %v5900_v26  ;;  %2269 = vmatpush.bf16.msrb.mxu1 %v5356_v33  ;;  %v5225_v18 = vld [vmem:[#allocation6 + $0x270] sm:$0xf0]  ;;  %v5071_v24 = vld [vmem:[#allocation6 + $0x118] sm:$0xf] }
 0x13b   : > { %v7238_v19 = vld [vmem:[#allocation6 + $0x454] sm:$0xf]  ;;  %v5228_v29 = vor.u32 %v7174_v16, %v5225_v18  ;;  %v5904_v16 = vor.u32 %v7347_v8, %v5903_v4  ;;  %v5615_v18 = vld [vmem:[#allocation6 + $0x558] sm:$0xf] }
 0x13c   : > { %2282 = vmatpush.bf16.msrb.mxu2 %v5612_v34  ;;  %2257 = vmatpush.bf16.msrb.mxu0 %v5068_v44  ;;  %v5481_v20 = vld [vmem:[#allocation6 + $0x470] sm:$0xf0]  ;;  %v7227_v44 = vld [vmem:[#allocation6 + $0x3f4] sm:$0xf0] }
 0x13d   : > { %v7302_v22 = vld [vmem:[#allocation6 + $0x654] sm:$0xf]  ;;  %v5484_v30 = vor.u32 %v7238_v19, %v5481_v20  ;;  %v5424_v55 = vor.u32 %v7227_v44, %v5423_v42  ;;  %v7275_v19 = vld [vmem:[#allocation6 + $0x574] sm:$0xf0] }
 0x13e   : > { %2295 = vmatpush.bf16.msrb.mxu3 %v5868_v38  ;;  %2270 = vmatpush.bf16.msrb.mxu1 %v5324_v45  ;;  %v5737_v23 = vld [vmem:[#allocation6 + $0x670] sm:$0xf0]  ;;  %v2031_v35 = vpop.f32.mrf.mxu2  ;;  %v5679_v45 = vld [vmem:[#allocation6 + $0x5d8] sm:$0xf] }
 0x13f   : > { %v7102_v26 = vld [vmem:[#allocation6 + $0x14] sm:$0xf]  ;;  %v5740_v36 = vor.u32 %v7302_v22, %v5737_v23  ;;  %v5871_v20 = vld [vmem:[#allocation6 + $0x758] sm:$0xf] }
 0x140   : > { %2283 = vmatpush.bf16.msrb.mxu2 %v5580_v46  ;;  %2258 = vmatpush.bf16.msrb.mxu0 %v5036_v58  ;;  %v4937_v27 = vld [vmem:[#allocation6 + $0x30] sm:$0xf0]  ;;  %v7291_v46 = vld [vmem:[#allocation6 + $0x5f4] sm:$0xf0]  ;;  %v2044_v54 = vpop.f32.mrf.mxu3 }
 0x141   : > { %v7166_v32 = vld [vmem:[#allocation6 + $0x214] sm:$0xf]  ;;  %v4940_v43 = vor.u32 %v7102_v26, %v4937_v27  ;;  %v5680_v58 = vor.u32 %v7291_v46, %v5679_v45  ;;  %v7339_v22 = vld [vmem:[#allocation6 + $0x774] sm:$0xf0] }
 0x142   : > { %2296 = vmatpush.bf16.msrb.mxu3 %v5836_v50  ;;  %2271 = vmatpush.bf16.msrb.mxu1 %v5292_v60  ;;  %v5193_v33 = vld [vmem:[#allocation6 + $0x230] sm:$0xf0]  ;;  %v7355_v50 = vld [vmem:[#allocation6 + $0x7f4] sm:$0xf0] }
 0x143   : > { %v7230_v34 = vld [vmem:[#allocation6 + $0x414] sm:$0xf]  ;;  %v5196_v47 = vor.u32 %v7166_v32, %v5193_v33  ;;  %v5135_v60 = vld [vmem:[#allocation6 + $0x198] sm:$0xf]  ;;  %v5936_v63 = vor.u32 %v7355_v50, %v5935_v49 }
 0x144   : > { %2284 = vmatpush.bf16.msrb.mxu2 %v5548_v61  ;;  %2259 = vmatpush.bf16.msrb.mxu0 %v5004_v11  ;;  %v5449_v37 = vld [vmem:[#allocation6 + $0x430] sm:$0xf0]  ;;  %v7155_v61 = vld [vmem:[#allocation6 + $0x1b4] sm:$0xf0] }
 0x145   : > { %v7294_v38 = vld [vmem:[#allocation6 + $0x614] sm:$0xf]  ;;  %v5452_v48 = vor.u32 %v7230_v34, %v5449_v37  ;;  %v5136_v9 = vor.u32 %v7155_v61, %v5135_v60  ;;  %v7139_v26 = vld [vmem:[#allocation6 + $0x134] sm:$0xf0] }
 0x146   : > { %2297 = vmatpush.bf16.msrb.mxu3 %v5804_v2  ;;  %2272 = vmatpush.bf16.msrb.mxu1 %v5260_v12  ;;  %v5705_v39 = vld [vmem:[#allocation6 + $0x630] sm:$0xf0]  ;;  %v5647_v2 = vld [vmem:[#allocation6 + $0x598] sm:$0xf]  ;;  %v5072_v37 = vor.u32 %v7139_v26, %v5071_v24 }
 0x147   : > { %v5708_v52 = vor.u32 %v7294_v38, %v5705_v39  ;;  %v5648_v11 = vor.u32 %v7283_v3, %v5647_v2  ;;  %v5103_v12 = vld [vmem:[#allocation6 + $0x158] sm:$0xf] }
 0x148   : > { %2285 = vmatpush.bf16.msrb.mxu2 %v5516_v13  ;;  %2260 = vmatpush.bf16.msrb.mxu0 %v4972_v25  ;;  %v7147_v13 = vld [vmem:[#allocation6 + $0x174] sm:$0xf0]  ;;  %v5616_v25 = vor.u32 %v7275_v19, %v5615_v18 }
 0x149   : > { %v5104_v23 = vor.u32 %v7147_v13, %v5103_v12  ;;  %v5327_v27 = vld [vmem:[#allocation6 + $0x318] sm:$0xf] }
 0x14a   : > { %2298 = vmatpush.bf16.msrb.mxu3 %v5772_v17  ;;  %2273 = vmatpush.bf16.msrb.mxu1 %v5228_v29  ;;  %v7211_v17 = vld [vmem:[#allocation6 + $0x374] sm:$0xf0]  ;;  %v2017_v29 = vadd.f32 %v8305_v59, %v2004_v15 }
 0x14b   : > { %v5360_v56 = vor.u32 %v7211_v17, %v5359_v14  ;;  %v7203_v32 = vld [vmem:[#allocation6 + $0x334] sm:$0xf0] }
 0x14c   : > { %2286 = vmatpush.bf16.msrb.mxu2 %v5484_v30  ;;  %2261 = vmatpush.bf16.msrb.mxu0 %v4940_v43  ;;  %v5872_v30 = vor.u32 %v7339_v22, %v5871_v20  ;;  %v5583_v33 = vld [vmem:[#allocation6 + $0x518] sm:$0xf]  ;;  %v2055_v38 = vpop.f32.mrf.mxu0  ;;  %v5328_v39 = vor.u32 %v7203_v32, %v5327_v27  ;;  %v2030_v59 = vadd.f32 %v8307_v1, %v2017_v29 }
 0x14d   : > { %v7267_v34 = vld [vmem:[#allocation6 + $0x534] sm:$0xf0]  ;;  %v2056_v41 = vadd.f32 %v2055_v38, %v699_v28 }
 0x14e   : > { %2299 = vmatpush.bf16.msrb.mxu3 %v5740_v36  ;;  %2274 = vmatpush.bf16.msrb.mxu1 %v5196_v47  ;;  %v5839_v35 = vld [vmem:[#allocation6 + $0x718] sm:$0xf]  ;;  %v5584_v40 = vor.u32 %v7267_v34, %v5583_v33  ;;  %v2068_v42 = vpop.f32.mrf.mxu1  ;;  %v2043_v1 = vadd.f32 %v8309_v21, %v2030_v59 }
 0x14f   : > { %2262 = vmatmul.bf16.vlgmr.msrb.gmra.mxu0 %v8278_v5  ;;  %v7331_v36 = vld [vmem:[#allocation6 + $0x734] sm:$0xf0]  ;;  %v2069_v50 = vadd.f32 %v2068_v42, %v2056_v41 }
 0x150   : > { %2287 = vmatpush.bf16.msrb.mxu2 %v5452_v48  ;;  %2306 = vmatpush.bf16.msra.mxu0 %v5168_v53  ;;  %v5039_v43 = vld [vmem:[#allocation6 + $0xd8] sm:$0xf]  ;;  %v5840_v46 = vor.u32 %v7331_v36, %v5839_v35  ;;  %v2410_v20 = vmax.f32 %v2043_v1, 0.0 }
 0x151   : > { %2275 = vmatmul.bf16.vlgmr.msrb.gmra.mxu1 %v8282_v7  ;;  %v7131_v44 = vld [vmem:[#allocation6 + $0xf4] sm:$0xf0] }
 0x152   : > { %2300 = vmatpush.bf16.msrb.mxu3 %v5708_v52  ;;  %2319 = vmatpush.bf16.msra.mxu1 %v5424_v55  ;;  %v5295_v45 = vld [vmem:[#allocation6 + $0x2d8] sm:$0xf]  ;;  %v5040_v53 = vor.u32 %v7131_v44, %v5039_v43  ;;  %v7159_v43 = vld [vmem:[#allocation6 + $0x1dc] sm:$0xf] }
 0x153   : > { %2288 = vmatmul.bf16.vlgmr.msrb.gmra.mxu2 %v8275_v57  ;;  %v7195_v47 = vld [vmem:[#allocation6 + $0x2f4] sm:$0xf0]  ;;  %v5169_v44 = vld [vmem:[#allocation6 + $0x1f8] sm:$0xf0] }
 0x154   : > { %2332 = vmatpush.bf16.msra.mxu2 %v5680_v58  ;;  %2307 = vmatpush.bf16.msra.mxu0 %v5136_v9  ;;  %v5551_v48 = vld [vmem:[#allocation6 + $0x4d8] sm:$0xf]  ;;  %v5296_v54 = vor.u32 %v7195_v47, %v5295_v45  ;;  %v2057_v14 = vpop.f32.mrf.mxu0  ;;  %v7223_v45 = vld [vmem:[#allocation6 + $0x3dc] sm:$0xf] }
 0x155   : > { %2301 = vmatmul.bf16.vlgmr.msrb.gmra.mxu3 %v8280_v6  ;;  %v7259_v49 = vld [vmem:[#allocation6 + $0x4f4] sm:$0xf0]  ;;  %v7287_v47 = vld [vmem:[#allocation6 + $0x5dc] sm:$0xf] }
 0x156   : > { %2345 = vmatpush.bf16.msra.mxu3 %v5936_v63  ;;  %2320 = vmatpush.bf16.msra.mxu1 %v5392_v10  ;;  %v5807_v51 = vld [vmem:[#allocation6 + $0x6d8] sm:$0xf]  ;;  %v5552_v55 = vor.u32 %v7259_v49, %v5551_v48  ;;  %v2081_v58 = vpop.f32.mrf.mxu2  ;;  %v2070_v19 = vpop.f32.mrf.mxu1  ;;  %v5681_v48 = vld [vmem:[#allocation6 + $0x5f8] sm:$0xf0] }
 0x157   : > { %v7323_v52 = vld [vmem:[#allocation6 + $0x6f4] sm:$0xf0]  ;;  %v2082_v0 = vadd.f32 %v2081_v58, %v2069_v50  ;;  %v5684_v58 = vor.u32 %v7287_v47, %v5681_v48  ;;  %v7119_v48 = vld [vmem:[#allocation6 + $0x9c] sm:$0xf] }
 0x158   : > { %2333 = vmatpush.bf16.msra.mxu2 %v5648_v11  ;;  %2308 = vmatpush.bf16.msra.mxu0 %v5104_v23  ;;  %v5007_v60 = vld [vmem:[#allocation6 + $0x98] sm:$0xf]  ;;  %v5808_v63 = vor.u32 %v7323_v52, %v5807_v51  ;;  %v2094_v2 = vpop.f32.mrf.mxu3  ;;  %v7351_v51 = vld [vmem:[#allocation6 + $0x7dc] sm:$0xf] }
 0x159   : > { %v7123_v61 = vld [vmem:[#allocation6 + $0xb4] sm:$0xf0]  ;;  %v2095_v11 = vadd.f32 %v2094_v2, %v2082_v0  ;;  %v5937_v52 = vld [vmem:[#allocation6 + $0x7f8] sm:$0xf0] }
 0x15a   : > { %2346 = vmatpush.bf16.msra.mxu3 %v5904_v16  ;;  %2321 = vmatpush.bf16.msra.mxu1 %v5360_v56  ;;  %v7187_v3 = vld [vmem:[#allocation6 + $0x2b4] sm:$0xf0]  ;;  %v5008_v12 = vor.u32 %v7123_v61, %v5007_v60  ;;  %v7151_v60 = vld [vmem:[#allocation6 + $0x19c] sm:$0xf]  ;;  %v5940_v1 = vor.u32 %v7351_v51, %v5937_v52 }
 0x15b   : > { %v5519_v4 = vld [vmem:[#allocation6 + $0x498] sm:$0xf]  ;;  %v5264_v15 = vor.u32 %v7187_v3, %v5263_v62  ;;  %v2411_v22 = vmax.f32 %v2095_v11, 0.0  ;;  %v5137_v61 = vld [vmem:[#allocation6 + $0x1b8] sm:$0xf0] }
 0x15c   : > { %2334 = vmatpush.bf16.msra.mxu2 %v5616_v25  ;;  %2309 = vmatpush.bf16.msra.mxu0 %v5072_v37  ;;  %v7251_v8 = vld [vmem:[#allocation6 + $0x4b4] sm:$0xf0]  ;;  %v7215_v62 = vld [vmem:[#allocation6 + $0x39c] sm:$0xf] }
 0x15d   : > { %v5775_v9 = vld [vmem:[#allocation6 + $0x698] sm:$0xf]  ;;  %v5520_v16 = vor.u32 %v7251_v8, %v5519_v4  ;;  %v2418_v27 = vpack.c.bf16 %v2411_v22, %v2410_v20  ;;  %v7279_v0 = vld [vmem:[#allocation6 + $0x59c] sm:$0xf]  ;;  %v5140_v8 = vor.u32 %v7151_v60, %v5137_v61 }
 0x15e   : > { %2347 = vmatpush.bf16.msra.mxu3 %v5872_v30  ;;  %2322 = vmatpush.bf16.msra.mxu1 %v5328_v39  ;;  %v7315_v10 = vld [vmem:[#allocation6 + $0x6b4] sm:$0xf0]  ;;  %v2083_v38 = vpop.f32.mrf.mxu2  ;;  %v5649_v2 = vld [vmem:[#allocation6 + $0x5b8] sm:$0xf0] }
 0x15f   : > { %v4975_v13 = vld [vmem:[#allocation6 + $0x58] sm:$0xf]  ;;  %v5776_v23 = vor.u32 %v7315_v10, %v5775_v9  ;;  %2422 = vst [vmem:[#allocation2 + $0x10] sm:$0xff] %v2418_v27  ;;  %v7343_v3 = vld [vmem:[#allocation6 + $0x79c] sm:$0xf]  ;;  %v5652_v10 = vor.u32 %v7279_v0, %v5649_v2 }
 0x160   : > { %2335 = vmatpush.bf16.msra.mxu2 %v5584_v40  ;;  %2310 = vmatpush.bf16.msra.mxu0 %v5040_v53  ;;  %v7115_v17 = vld [vmem:[#allocation6 + $0x74] sm:$0xf0]  ;;  %v2096_v42 = vpop.f32.mrf.mxu3  ;;  %v5905_v4 = vld [vmem:[#allocation6 + $0x7b8] sm:$0xf0] }
 0x161   : > { %v5231_v21 = vld [vmem:[#allocation6 + $0x258] sm:$0xf]  ;;  %v4976_v28 = vor.u32 %v7115_v17, %v4975_v13  ;;  %v7143_v11 = vld [vmem:[#allocation6 + $0x15c] sm:$0xf]  ;;  %v5908_v14 = vor.u32 %v7343_v3, %v5905_v4 }
 0x162   : > { %2348 = vmatpush.bf16.msra.mxu3 %v5840_v46  ;;  %2323 = vmatpush.bf16.msra.mxu1 %v5296_v54  ;;  %v7179_v18 = vld [vmem:[#allocation6 + $0x274] sm:$0xf0]  ;;  %v5425_v46 = vld [vmem:[#allocation6 + $0x3f8] sm:$0xf0]  ;;  %v5172_v54 = vor.u32 %v7159_v43, %v5169_v44 }
 0x163   : > { %v5487_v24 = vld [vmem:[#allocation6 + $0x458] sm:$0xf]  ;;  %v5232_v33 = vor.u32 %v7179_v18, %v5231_v21  ;;  %v7207_v13 = vld [vmem:[#allocation6 + $0x35c] sm:$0xf] }
 0x164   : > { %2336 = vmatpush.bf16.msra.mxu2 %v5552_v55  ;;  %v7243_v56 = vld [vmem:[#allocation6 + $0x474] sm:$0xf0]  ;;  %2311 = vmatpush.bf16.msra.mxu0 %v5008_v12  ;;  %v5428_v55 = vor.u32 %v7223_v45, %v5425_v46  ;;  %v5105_v12 = vld [vmem:[#allocation6 + $0x178] sm:$0xf0] }
 0x165   : > { %v5743_v25 = vld [vmem:[#allocation6 + $0x658] sm:$0xf]  ;;  %v5488_v34 = vor.u32 %v7243_v56, %v5487_v24  ;;  %v5617_v17 = vld [vmem:[#allocation6 + $0x578] sm:$0xf0]  ;;  %v5108_v19 = vor.u32 %v7143_v11, %v5105_v12 }
 0x166   : > { %2349 = vmatpush.bf16.msra.mxu3 %v5808_v63  ;;  %v7307_v26 = vld [vmem:[#allocation6 + $0x674] sm:$0xf0]  ;;  %2324 = vmatpush.bf16.msra.mxu1 %v5264_v15  ;;  %v5393_v63 = vld [vmem:[#allocation6 + $0x3b8] sm:$0xf0] }
 0x167   : > { %v4943_v29 = vld [vmem:[#allocation6 + $0x18] sm:$0xf]  ;;  %v5744_v39 = vor.u32 %v7307_v26, %v5743_v25  ;;  %v5396_v9 = vor.u32 %v7215_v62, %v5393_v63  ;;  %v5361_v15 = vld [vmem:[#allocation6 + $0x378] sm:$0xf0] }
 0x168   : > { %v7107_v30 = vld [vmem:[#allocation6 + $0x34] sm:$0xf0]  ;;  %2337 = vmatpush.bf16.msra.mxu2 %v5520_v16  ;;  %2312 = vmatpush.bf16.msra.mxu0 %v4976_v28  ;;  %v7271_v16 = vld [vmem:[#allocation6 + $0x55c] sm:$0xf]  ;;  %v5364_v20 = vor.u32 %v7207_v13, %v5361_v15 }
 0x169   : > { %v5199_v32 = vld [vmem:[#allocation6 + $0x218] sm:$0xf]  ;;  %v4944_v59 = vor.u32 %v7107_v30, %v4943_v29  ;;  %v7335_v21 = vld [vmem:[#allocation6 + $0x75c] sm:$0xf]  ;;  %v5620_v22 = vor.u32 %v7271_v16, %v5617_v17 }
 0x16a   : > { %v7171_v35 = vld [vmem:[#allocation6 + $0x234] sm:$0xf0]  ;;  %2350 = vmatpush.bf16.msra.mxu3 %v5776_v23  ;;  %2325 = vmatpush.bf16.msra.mxu1 %v5232_v33  ;;  %v5873_v18 = vld [vmem:[#allocation6 + $0x778] sm:$0xf0] }
 0x16b   : > { %v5455_v36 = vld [vmem:[#allocation6 + $0x418] sm:$0xf]  ;;  %v5200_v49 = vor.u32 %v7171_v35, %v5199_v32  ;;  %v7135_v23 = vld [vmem:[#allocation6 + $0x11c] sm:$0xf]  ;;  %v5876_v25 = vor.u32 %v7335_v21, %v5873_v18 }
 0x16c   : > { %v7235_v37 = vld [vmem:[#allocation6 + $0x434] sm:$0xf0]  ;;  %2338 = vmatpush.bf16.msra.mxu2 %v5488_v34  ;;  %2313 = vmatpush.bf16.msra.mxu0 %v4944_v59  ;;  %v5073_v24 = vld [vmem:[#allocation6 + $0x138] sm:$0xf0]  ;;  %v8327_v33 = vpop.f32.mrf.mxu0 }
 0x16d   : > { %v5711_v40 = vld [vmem:[#allocation6 + $0x618] sm:$0xf]  ;;  %v5456_v50 = vor.u32 %v7235_v37, %v5455_v36  ;;  %v7199_v56 = vld [vmem:[#allocation6 + $0x31c] sm:$0xf]  ;;  %v5076_v32 = vor.u32 %v7135_v23, %v5073_v24 }
 0x16e   : > { %v7299_v41 = vld [vmem:[#allocation6 + $0x634] sm:$0xf0]  ;;  %2351 = vmatpush.bf16.msra.mxu3 %v5744_v39  ;;  %2326 = vmatpush.bf16.msra.mxu1 %v5200_v49  ;;  %v5329_v26 = vld [vmem:[#allocation6 + $0x338] sm:$0xf0]  ;;  %v8329_v39 = vpop.f32.mrf.mxu1 }
 0x16f   : > { %v5712_v53 = vor.u32 %v7299_v41, %v5711_v40  ;;  %2314 = vmatmul.bf16.vlgmr.msra.gmra.mxu0 %v8278_v5  ;;  %v7263_v27 = vld [vmem:[#allocation6 + $0x51c] sm:$0xf]  ;;  %v5332_v34 = vor.u32 %v7199_v56, %v5329_v26 }
 0x170   : > { %2339 = vmatpush.bf16.msra.mxu2 %v5456_v50  ;;  %2358 = vmatpush.bf16.msrb.mxu0 %v5172_v54  ;;  %v5585_v28 = vld [vmem:[#allocation6 + $0x538] sm:$0xf0] }
 0x171   : > { %2327 = vmatmul.bf16.vlgmr.msra.gmra.mxu1 %v8282_v7  ;;  %v7327_v29 = vld [vmem:[#allocation6 + $0x71c] sm:$0xf]  ;;  %v5588_v35 = vor.u32 %v7263_v27, %v5585_v28 }
 0x172   : > { %2352 = vmatpush.bf16.msra.mxu3 %v5712_v53  ;;  %2371 = vmatpush.bf16.msrb.mxu1 %v5428_v55  ;;  %v5841_v30 = vld [vmem:[#allocation6 + $0x738] sm:$0xf0] }
 0x173   : > { %2340 = vmatmul.bf16.vlgmr.msra.gmra.mxu2 %v8275_v57  ;;  %v7127_v36 = vld [vmem:[#allocation6 + $0xdc] sm:$0xf]  ;;  %v5844_v40 = vor.u32 %v7327_v29, %v5841_v30 }
 0x174   : > { %2384 = vmatpush.bf16.msrb.mxu2 %v5684_v58  ;;  %2359 = vmatpush.bf16.msrb.mxu0 %v5140_v8  ;;  %v5041_v37 = vld [vmem:[#allocation6 + $0xf8] sm:$0xf0] }
 0x175   : > { %2353 = vmatmul.bf16.vlgmr.msra.gmra.mxu3 %v8280_v6  ;;  %v7191_v38 = vld [vmem:[#allocation6 + $0x2dc] sm:$0xf]  ;;  %v5044_v59 = vor.u32 %v7127_v36, %v5041_v37  ;;  %v701_v36 = vperm.slane %v8311_v31, 3 }
 0x176   : > { %2397 = vmatpush.bf16.msrb.mxu3 %v5940_v1  ;;  %2372 = vmatpush.bf16.msrb.mxu1 %v5396_v9  ;;  %v5297_v41 = vld [vmem:[#allocation6 + $0x2f8] sm:$0xf0]  ;;  %v8331_v51 = vpop.f32.mrf.mxu2  ;;  %v2109_v1 = vpop.f32.mrf.mxu0 }
 0x177   : > { %v7255_v42 = vld [vmem:[#allocation6 + $0x4dc] sm:$0xf]  ;;  %v5300_v46 = vor.u32 %v7191_v38, %v5297_v41  ;;  %v2122_v8 = vpop.f32.mrf.mxu1 }
 0x178   : > { %2385 = vmatpush.bf16.msrb.mxu2 %v5652_v10  ;;  %2360 = vmatpush.bf16.msrb.mxu0 %v5108_v19  ;;  %v5553_v43 = vld [vmem:[#allocation6 + $0x4f8] sm:$0xf0]  ;;  %v8333_v58 = vpop.f32.mrf.mxu3 }
 0x179   : > { %v7319_v44 = vld [vmem:[#allocation6 + $0x6dc] sm:$0xf]  ;;  %v5556_v47 = vor.u32 %v7255_v42, %v5553_v43 }
 0x17a   : > { %2398 = vmatpush.bf16.msrb.mxu3 %v5908_v14  ;;  %2373 = vmatpush.bf16.msrb.mxu1 %v5364_v20  ;;  %v5809_v45 = vld [vmem:[#allocation6 + $0x6f8] sm:$0xf0] }
 0x17b   : > { %v5009_v49 = vld [vmem:[#allocation6 + $0xb8] sm:$0xf0]  ;;  %v5812_v52 = vor.u32 %v7319_v44, %v5809_v45 }
 0x17c   : > { %2386 = vmatpush.bf16.msrb.mxu2 %v5620_v22  ;;  %2361 = vmatpush.bf16.msrb.mxu0 %v5076_v32  ;;  %v7183_v50 = vld [vmem:[#allocation6 + $0x29c] sm:$0xf]  ;;  %v5012_v62 = vor.u32 %v7119_v48, %v5009_v49 }
 0x17d   : > { %v5265_v53 = vld [vmem:[#allocation6 + $0x2b8] sm:$0xf0] }
 0x17e   : > { %2399 = vmatpush.bf16.msrb.mxu3 %v5876_v25  ;;  %2374 = vmatpush.bf16.msrb.mxu1 %v5332_v34  ;;  %v7247_v54 = vld [vmem:[#allocation6 + $0x49c] sm:$0xf]  ;;  %v5268_v63 = vor.u32 %v7183_v50, %v5265_v53  ;;  %v2135_v20 = vpop.f32.mrf.mxu2  ;;  %v700_v34 = vperm.slane %v8311_v31, 2 }
 0x17f   : > { %v5521_v55 = vld [vmem:[#allocation6 + $0x4b8] sm:$0xf0] }
 0x180   : > { %2387 = vmatpush.bf16.msrb.mxu2 %v5588_v35  ;;  %v7311_v60 = vld [vmem:[#allocation6 + $0x69c] sm:$0xf]  ;;  %2362 = vmatpush.bf16.msrb.mxu0 %v5044_v59  ;;  %v5524_v0 = vor.u32 %v7247_v54, %v5521_v55  ;;  %v2148_v25 = vpop.f32.mrf.mxu3  ;;  %v2108_v35 = vadd.f32 %v8327_v33, %v700_v34 }
 0x181   : > { %v5777_v61 = vld [vmem:[#allocation6 + $0x6b8] sm:$0xf0] }
 0x182   : > { %2400 = vmatpush.bf16.msrb.mxu3 %v5844_v40  ;;  %2375 = vmatpush.bf16.msrb.mxu1 %v5300_v46  ;;  %v7111_v2 = vld [vmem:[#allocation6 + $0x5c] sm:$0xf]  ;;  %v5780_v9 = vor.u32 %v7311_v60, %v5777_v61  ;;  %v2121_v37 = vadd.f32 %v8329_v39, %v2108_v35 }
 0x183   : > { %v4977_v3 = vld [vmem:[#allocation6 + $0x78] sm:$0xf0] }
 0x184   : > { %2388 = vmatpush.bf16.msrb.mxu2 %v5556_v47  ;;  %v7175_v4 = vld [vmem:[#allocation6 + $0x25c] sm:$0xf]  ;;  %2363 = vmatpush.bf16.msrb.mxu0 %v5012_v62  ;;  %v4980_v15 = vor.u32 %v7111_v2, %v4977_v3  ;;  %v2134_v42 = vadd.f32 %v8331_v51, %v2121_v37  ;;  %v703_v62 = vperm.slane %v8311_v31, 5 }
 0x185   : > { %v5233_v10 = vld [vmem:[#allocation6 + $0x278] sm:$0xf0] }
 0x186   : > { %2401 = vmatpush.bf16.msrb.mxu3 %v5812_v52  ;;  %v7239_v11 = vld [vmem:[#allocation6 + $0x45c] sm:$0xf]  ;;  %2376 = vmatpush.bf16.msrb.mxu1 %v5268_v63  ;;  %v5236_v16 = vor.u32 %v7175_v4, %v5233_v10 }
 0x187   : > { %v5489_v12 = vld [vmem:[#allocation6 + $0x478] sm:$0xf0] }
 0x188   : > { %v7303_v13 = vld [vmem:[#allocation6 + $0x65c] sm:$0xf]  ;;  %2389 = vmatpush.bf16.msrb.mxu2 %v5524_v0  ;;  %v5492_v17 = vor.u32 %v7239_v11, %v5489_v12  ;;  %2364 = vmatpush.bf16.msrb.mxu0 %v4980_v15 }
 0x189   : > { %v5745_v14 = vld [vmem:[#allocation6 + $0x678] sm:$0xf0] }
 0x18a   : > { %v7103_v21 = vld [vmem:[#allocation6 + $0x1c] sm:$0xf]  ;;  %2402 = vmatpush.bf16.msrb.mxu3 %v5780_v9  ;;  %v5748_v22 = vor.u32 %v7303_v13, %v5745_v14  ;;  %2377 = vmatpush.bf16.msrb.mxu1 %v5236_v16 }
 0x18b   : > { %v4945_v18 = vld [vmem:[#allocation6 + $0x38] sm:$0xf0] }
 0x18c   : > { %v7167_v19 = vld [vmem:[#allocation6 + $0x21c] sm:$0xf]  ;;  %v4948_v28 = vor.u32 %v7103_v21, %v4945_v18  ;;  %2390 = vmatpush.bf16.msrb.mxu2 %v5492_v17  ;;  %v2159_v38 = vpop.f32.mrf.mxu0 }
 0x18d   : > { %v5201_v23 = vld [vmem:[#allocation6 + $0x238] sm:$0xf0]  ;;  %v2160_v40 = vadd.f32 %v2159_v38, %v701_v36 }
 0x18e   : > { %v7231_v24 = vld [vmem:[#allocation6 + $0x41c] sm:$0xf]  ;;  %v5204_v29 = vor.u32 %v7167_v19, %v5201_v23  ;;  %2403 = vmatpush.bf16.msrb.mxu3 %v5748_v22  ;;  %2365 = vmatpush.bf16.msrb.mxu0 %v4948_v28  ;;  %v2172_v41 = vpop.f32.mrf.mxu1  ;;  %v704_v28 = vperm.slane %v8311_v31, 6 }
 0x18f   : > { %v5457_v56 = vld [vmem:[#allocation6 + $0x438] sm:$0xf0]  ;;  %v2173_v43 = vadd.f32 %v2172_v41, %v2160_v40 }
 0x190   : > { %v7295_v26 = vld [vmem:[#allocation6 + $0x61c] sm:$0xf]  ;;  %v5460_v30 = vor.u32 %v7231_v24, %v5457_v56  ;;  %2378 = vmatpush.bf16.msrb.mxu1 %v5204_v29 }
 0x191   : > { %v5713_v27 = vld [vmem:[#allocation6 + $0x638] sm:$0xf0]  ;;  %2366 = vmatmul.bf16.vlgmr.msrb.gmra.mxu0 %v8278_v5  ;;  %v2147_v5 = vadd.f32 %v8333_v58, %v2134_v42  ;;  %v702_v58 = vperm.slane %v8311_v31, 4 }
 0x192   : > { %v5716_v32 = vor.u32 %v7295_v26, %v5713_v27  ;;  %2391 = vmatpush.bf16.msrb.mxu2 %v5460_v30  ;;  %v8053_v26 = vmov 0.0   ;;  %v705_v30 = vperm.slane %v8311_v31, 7 }
 0x193   : > { %2379 = vmatmul.bf16.vlgmr.msrb.gmra.mxu1 %v8282_v7  ;;  %v2412_v46 = vmax.f32 %v2147_v5, 0.0  ;;  %2426 = vst [vmem:[#allocation15] sm:$0xff] %v8053_v26 }
 0x194   : > { %2404 = vmatpush.bf16.msrb.mxu3 %v5716_v32  ;;  %v2161_v59 = vpop.f32.mrf.mxu0 }
 0x195   : > { %2392 = vmatmul.bf16.vlgmr.msrb.gmra.mxu2 %v8275_v57 }
 0x196   : > { %v2185_v44 = vpop.f32.mrf.mxu2  ;;  %v2174_v57 = vpop.f32.mrf.mxu1 }
 0x197   : > { %2405 = vmatmul.bf16.vlgmr.msrb.gmra.mxu3 %v8280_v6  ;;  %v2186_v33 = vadd.f32 %v2185_v44, %v2173_v43 }
 0x198   : > { %v2198_v45 = vpop.f32.mrf.mxu3 }
 0x199   : > { %v2199_v7 = vadd.f32 %v2198_v45, %v2186_v33 }
 0x19b   : > { %v2413_v6 = vmax.f32 %v2199_v7, 0.0 }
 0x19d   : > { %v2419_v47 = vpack.c.bf16 %v2413_v6, %v2412_v46 }
 0x19e   : > { %v2187_v48 = vpop.f32.mrf.mxu2 }
 0x19f   : > { %2423 = vst [vmem:[#allocation2] sm:$0xff] %v2419_v47 }
 0x1a0   : > { %v2200_v39 = vpop.f32.mrf.mxu3 }
 0x1ac   : > { %v2211_v49 = vpop.f32.mrf.mxu0 }
 0x1ad   : > { %v2212_v61 = vadd.f32 %v2211_v49, %v702_v58 }
 0x1ae   : > { %v2224_v50 = vpop.f32.mrf.mxu1 }
 0x1af   : > { %v2225_v1 = vadd.f32 %v2224_v50, %v2212_v61 }
 0x1b4   : > { %v2213_v51 = vpop.f32.mrf.mxu0 }
 0x1b6   : > { %v2237_v52 = vpop.f32.mrf.mxu2  ;;  %v2226_v54 = vpop.f32.mrf.mxu1 }
 0x1b7   : > { %v2238_v3 = vadd.f32 %v2237_v52, %v2225_v1 }
 0x1b8   : > { %v2250_v53 = vpop.f32.mrf.mxu3 }
 0x1b9   : > { %v2251_v9 = vadd.f32 %v2250_v53, %v2238_v3 }
 0x1bb   : > { %v2414_v15 = vmax.f32 %v2251_v9, 0.0 }
 0x1be   : > { %v2239_v55 = vpop.f32.mrf.mxu2 }
 0x1c0   : > { %v2252_v60 = vpop.f32.mrf.mxu3 }
 0x1cc   : > { %v2263_v63 = vpop.f32.mrf.mxu0 }
 0x1cd   : > { %v2264_v0 = vadd.f32 %v2263_v63, %v703_v62 }
 0x1ce   : > { %v2276_v2 = vpop.f32.mrf.mxu1 }
 0x1cf   : > { %v2277_v4 = vadd.f32 %v2276_v2, %v2264_v0 }
 0x1d4   : > { %v2265_v13 = vpop.f32.mrf.mxu0 }
 0x1d6   : > { %v2289_v8 = vpop.f32.mrf.mxu2  ;;  %v2278_v14 = vpop.f32.mrf.mxu1 }
 0x1d7   : > { %v2290_v10 = vadd.f32 %v2289_v8, %v2277_v4 }
 0x1d8   : > { %v2302_v11 = vpop.f32.mrf.mxu3 }
 0x1d9   : > { %v2303_v12 = vadd.f32 %v2302_v11, %v2290_v10 }
 0x1db   : > { %v2415_v16 = vmax.f32 %v2303_v12, 0.0 }
 0x1dd   : > { %v2420_v17 = vpack.c.bf16 %v2415_v16, %v2414_v15 }
 0x1de   : > { %v2291_v21 = vpop.f32.mrf.mxu2 }
 0x1df   : > { %2424 = vst [vmem:[#allocation2 + $0x18] sm:$0xff] %v2420_v17 }
 0x1e0   : > { %v2304_v18 = vpop.f32.mrf.mxu3 }
 0x1ec   : > { %v2315_v19 = vpop.f32.mrf.mxu0 }
 0x1ed   : > { %v2316_v29 = vadd.f32 %v2315_v19, %v704_v28 }
 0x1ee   : > { %v2328_v20 = vpop.f32.mrf.mxu1 }
 0x1ef   : > { %v2329_v32 = vadd.f32 %v2328_v20, %v2316_v29 }
 0x1f4   : > { %v2317_v24 = vpop.f32.mrf.mxu0 }
 0x1f6   : > { %v2341_v22 = vpop.f32.mrf.mxu2  ;;  %v2330_v56 = vpop.f32.mrf.mxu1 }
 0x1f7   : > { %v2342_v37 = vadd.f32 %v2341_v22, %v2329_v32 }
 0x1f8   : > { %v2354_v23 = vpop.f32.mrf.mxu3 }
 0x1f9   : > { %v2355_v41 = vadd.f32 %v2354_v23, %v2342_v37 }
 0x1fb   : > { %v2416_v45 = vmax.f32 %v2355_v41, 0.0 }
 0x1fe   : > { %v2343_v25 = vpop.f32.mrf.mxu2 }
 0x200   : > { %v2356_v27 = vpop.f32.mrf.mxu3 }
 0x20e   : > { %v2367_v34 = vpop.f32.mrf.mxu0 }
 0x20f   : > { %v2368_v35 = vadd.f32 %v2367_v34, %v705_v30 }
 0x210   : > { %v2380_v36 = vpop.f32.mrf.mxu1 }
 0x211   : > { %v2381_v38 = vadd.f32 %v2380_v36, %v2368_v35 }
 0x216   : > { %v2369_v44 = vpop.f32.mrf.mxu0 }
 0x218   : > { %v2393_v40 = vpop.f32.mrf.mxu2  ;;  %v2382_v5 = vpop.f32.mrf.mxu1 }
 0x219   : > { %v2394_v42 = vadd.f32 %v2393_v40, %v2381_v38 }
 0x21a   : > { %v2406_v43 = vpop.f32.mrf.mxu3 }
 0x21b   : > { %v2407_v33 = vadd.f32 %v2406_v43, %v2394_v42 }
 0x21d   : > { %v2417_v7 = vmax.f32 %v2407_v33, 0.0 }
 0x21f   : > { %v2421_v59 = vpack.c.bf16 %v2417_v7, %v2416_v45 }
 0x220   : > { %v2395_v57 = vpop.f32.mrf.mxu2 }
 0x221   : > { %2425 = vst [vmem:[#allocation2 + $0x8] sm:$0xff] %v2421_v59 }
 0x222   : > { %v2408_v46 = vpop.f32.mrf.mxu3 }
 0x223 PF: > { %v6055_v31 = vld [vmem:[%s8255_s22 + $0xe0] sm:$0xf]  ;;  %v7386_v6 = vld [vmem:[%s8255_s22 + $0xec] sm:$0xf0]  ;;  %p7093_p1 = scmp.ne.s32.totalorder %s8114_s28, 1 }
 0x224   : > { %v6183_v47 = vld [vmem:[%s8255_s22 + $0x1e0] sm:$0xf]  ;;  %v6056_v48 = vor.u32 %v7386_v6, %v6055_v31  ;;  %v7418_v39 = vld [vmem:[%s8255_s22 + $0x1ec] sm:$0xf0] }
 0x225   : > { %v6311_v49 = vld [vmem:[%s8255_s22 + $0x2e0] sm:$0xf]  ;;  %v7450_v50 = vld [vmem:[%s8255_s22 + $0x2ec] sm:$0xf0]  ;;  %v6184_v52 = vor.u32 %v7418_v39, %v6183_v47 }
 0x226   : > { %v6312_v53 = vor.u32 %v7450_v50, %v6311_v49  ;;  %v6439_v51 = vld [vmem:[%s8255_s22 + $0x3e0] sm:$0xf]  ;;  %v7482_v54 = vld [vmem:[%s8255_s22 + $0x3ec] sm:$0xf0]  ;;  %4005 = vmatpush.bf16.msra.mxu0 %v6056_v48 }
 0x227   : > { %v6039_v55 = vld [vmem:[%s8255_s22 + $0xc0] sm:$0xf]  ;;  %v6440_v60 = vor.u32 %v7482_v54, %v6439_v51  ;;  %v7382_v58 = vld [vmem:[%s8255_s22 + $0xcc] sm:$0xf0]  ;;  %4018 = vmatpush.bf16.msra.mxu1 %v6184_v52 }
 0x228   : > { %v6167_v61 = vld [vmem:[%s8255_s22 + $0x1c0] sm:$0xf]  ;;  %v7414_v62 = vld [vmem:[%s8255_s22 + $0x1cc] sm:$0xf0]  ;;  %4031 = vmatpush.bf16.msra.mxu2 %v6312_v53  ;;  %v6040_v1 = vor.u32 %v7382_v58, %v6039_v55 }
 0x229   : > { %v6168_v63 = vor.u32 %v7414_v62, %v6167_v61  ;;  %v6295_v0 = vld [vmem:[%s8255_s22 + $0x2c0] sm:$0xf]  ;;  %v7446_v2 = vld [vmem:[%s8255_s22 + $0x2cc] sm:$0xf0]  ;;  %4044 = vmatpush.bf16.msra.mxu3 %v6440_v60 }
 0x22a   : > { %v6423_v3 = vld [vmem:[%s8255_s22 + $0x3c0] sm:$0xf]  ;;  %v6296_v4 = vor.u32 %v7446_v2, %v6295_v0  ;;  %v7478_v8 = vld [vmem:[%s8255_s22 + $0x3cc] sm:$0xf0]  ;;  %4006 = vmatpush.bf16.msra.mxu0 %v6040_v1 }
 0x22b   : > { %v6023_v9 = vld [vmem:[%s8255_s22 + $0xa0] sm:$0xf]  ;;  %v7378_v10 = vld [vmem:[%s8255_s22 + $0xac] sm:$0xf0]  ;;  %v6424_v11 = vor.u32 %v7478_v8, %v6423_v3  ;;  %4019 = vmatpush.bf16.msra.mxu1 %v6168_v63 }
 0x22c   : > { %v6151_v12 = vld [vmem:[%s8255_s22 + $0x1a0] sm:$0xf]  ;;  %v7410_v13 = vld [vmem:[%s8255_s22 + $0x1ac] sm:$0xf0]  ;;  %v6024_v15 = vor.u32 %v7378_v10, %v6023_v9  ;;  %4032 = vmatpush.bf16.msra.mxu2 %v6296_v4 }
 0x22d   : > { %v6279_v14 = vld [vmem:[%s8255_s22 + $0x2a0] sm:$0xf]  ;;  %v7442_v16 = vld [vmem:[%s8255_s22 + $0x2ac] sm:$0xf0]  ;;  %v6152_v18 = vor.u32 %v7410_v13, %v6151_v12  ;;  %4045 = vmatpush.bf16.msra.mxu3 %v6424_v11 }
 0x22e   : > { %v6407_v17 = vld [vmem:[%s8255_s22 + $0x3a0] sm:$0xf]  ;;  %v7474_v21 = vld [vmem:[%s8255_s22 + $0x3ac] sm:$0xf0]  ;;  %v6280_v19 = vor.u32 %v7442_v16, %v6279_v14  ;;  %4007 = vmatpush.bf16.msra.mxu0 %v6024_v15 }
 0x22f   : > { %v6007_v20 = vld [vmem:[%s8255_s22 + $0x80] sm:$0xf]  ;;  %v7374_v22 = vld [vmem:[%s8255_s22 + $0x8c] sm:$0xf0]  ;;  %v6408_v24 = vor.u32 %v7474_v21, %v6407_v17  ;;  %4020 = vmatpush.bf16.msra.mxu1 %v6152_v18 }
 0x230   : > { %v6135_v23 = vld [vmem:[%s8255_s22 + $0x180] sm:$0xf]  ;;  %v7406_v56 = vld [vmem:[%s8255_s22 + $0x18c] sm:$0xf0]  ;;  %v6008_v29 = vor.u32 %v7374_v22, %v6007_v20  ;;  %4033 = vmatpush.bf16.msra.mxu2 %v6280_v19 }
 0x231   : > { %v6263_v25 = vld [vmem:[%s8255_s22 + $0x280] sm:$0xf]  ;;  %v7438_v26 = vld [vmem:[%s8255_s22 + $0x28c] sm:$0xf0]  ;;  %v6136_v30 = vor.u32 %v7406_v56, %v6135_v23  ;;  %4046 = vmatpush.bf16.msra.mxu3 %v6408_v24 }
 0x232   : > { %v6391_v27 = vld [vmem:[%s8255_s22 + $0x380] sm:$0xf]  ;;  %v7470_v28 = vld [vmem:[%s8255_s22 + $0x38c] sm:$0xf0]  ;;  %v6264_v32 = vor.u32 %v7438_v26, %v6263_v25  ;;  %4008 = vmatpush.bf16.msra.mxu0 %v6008_v29 }
 0x233   : > { %v5991_v34 = vld [vmem:[%s8255_s22 + $0x60] sm:$0xf]  ;;  %v7370_v35 = vld [vmem:[%s8255_s22 + $0x6c] sm:$0xf0]  ;;  %v6392_v37 = vor.u32 %v7470_v28, %v6391_v27  ;;  %4021 = vmatpush.bf16.msra.mxu1 %v6136_v30 }
 0x234   : > { %v6119_v36 = vld [vmem:[%s8255_s22 + $0x160] sm:$0xf]  ;;  %v7402_v38 = vld [vmem:[%s8255_s22 + $0x16c] sm:$0xf0]  ;;  %v5992_v44 = vor.u32 %v7370_v35, %v5991_v34  ;;  %4034 = vmatpush.bf16.msra.mxu2 %v6264_v32 }
 0x235   : > { %v6247_v40 = vld [vmem:[%s8255_s22 + $0x260] sm:$0xf]  ;;  %v7434_v41 = vld [vmem:[%s8255_s22 + $0x26c] sm:$0xf0]  ;;  %v6120_v5 = vor.u32 %v7402_v38, %v6119_v36  ;;  %4047 = vmatpush.bf16.msra.mxu3 %v6392_v37 }
 0x236   : > { %v6375_v42 = vld [vmem:[%s8255_s22 + $0x360] sm:$0xf]  ;;  %v7466_v43 = vld [vmem:[%s8255_s22 + $0x36c] sm:$0xf0]  ;;  %v6248_v33 = vor.u32 %v7434_v41, %v6247_v40  ;;  %4009 = vmatpush.bf16.msra.mxu0 %v5992_v44 }
 0x237   : > { %v5975_v45 = vld [vmem:[%s8255_s22 + $0x40] sm:$0xf]  ;;  %v7366_v7 = vld [vmem:[%s8255_s22 + $0x4c] sm:$0xf0]  ;;  %v6376_v57 = vor.u32 %v7466_v43, %v6375_v42  ;;  %4022 = vmatpush.bf16.msra.mxu1 %v6120_v5 }
 0x238   : > { %v6103_v59 = vld [vmem:[%s8255_s22 + $0x140] sm:$0xf]  ;;  %v7398_v46 = vld [vmem:[%s8255_s22 + $0x14c] sm:$0xf0]  ;;  %v5976_v39 = vor.u32 %v7366_v7, %v5975_v45  ;;  %4035 = vmatpush.bf16.msra.mxu2 %v6248_v33 }
 0x239   : > { %v6231_v31 = vld [vmem:[%s8255_s22 + $0x240] sm:$0xf]  ;;  %v7430_v6 = vld [vmem:[%s8255_s22 + $0x24c] sm:$0xf0]  ;;  %v6104_v49 = vor.u32 %v7398_v46, %v6103_v59  ;;  %4048 = vmatpush.bf16.msra.mxu3 %v6376_v57 }
 0x23a   : > { %v6359_v47 = vld [vmem:[%s8255_s22 + $0x340] sm:$0xf]  ;;  %v7462_v48 = vld [vmem:[%s8255_s22 + $0x34c] sm:$0xf0]  ;;  %v6232_v50 = vor.u32 %v7430_v6, %v6231_v31  ;;  %4010 = vmatpush.bf16.msra.mxu0 %v5976_v39 }
 0x23b   : > { %v5959_v52 = vld [vmem:[%s8255_s22 + $0x20] sm:$0xf]  ;;  %v7362_v53 = vld [vmem:[%s8255_s22 + $0x2c] sm:$0xf0]  ;;  %v6360_v54 = vor.u32 %v7462_v48, %v6359_v47  ;;  %4023 = vmatpush.bf16.msra.mxu1 %v6104_v49  ;;  %v2428_v47 = vld [vmem:[#allocation2] sm:$0xff] }
 0x23c   : > { %v6087_v51 = vld [vmem:[%s8255_s22 + $0x120] sm:$0xf]  ;;  %v7394_v55 = vld [vmem:[%s8255_s22 + $0x12c] sm:$0xf0]  ;;  %v5960_v1 = vor.u32 %v7362_v53, %v5959_v52  ;;  %4036 = vmatpush.bf16.msra.mxu2 %v6232_v50  ;;  %v2427_v48 = vld [vmem:[#allocation2 + $0x10] sm:$0xff]  ;;  %v2703_v53 = vunpack.c.l.b16 %v2428_v47 }
 0x23d   : > { %v6215_v60 = vld [vmem:[%s8255_s22 + $0x220] sm:$0xf]  ;;  %v7426_v58 = vld [vmem:[%s8255_s22 + $0x22c] sm:$0xf0]  ;;  %v6088_v2 = vor.u32 %v7394_v55, %v6087_v51  ;;  %4049 = vmatpush.bf16.msra.mxu3 %v6360_v54  ;;  %v2701_v51 = vunpack.c.l.b16 %v2427_v48  ;;  %v2704_v54 = vunpack.c.h.b16 %v2428_v47 }
 0x23e   : > { %v6343_v61 = vld [vmem:[%s8255_s22 + $0x320] sm:$0xf]  ;;  %v7458_v62 = vld [vmem:[%s8255_s22 + $0x32c] sm:$0xf0]  ;;  %v6216_v3 = vor.u32 %v7426_v58, %v6215_v60  ;;  %4011 = vmatpush.bf16.msra.mxu0 %v5960_v1 }
 0x23f   : > { %v5943_v63 = vld [vmem:[%s8255_s22] sm:$0xf]  ;;  %v7358_v0 = vld [vmem:[%s8255_s22 + $0xc] sm:$0xf0]  ;;  %v6344_v10 = vor.u32 %v7458_v62, %v6343_v61  ;;  %4024 = vmatpush.bf16.msra.mxu1 %v6088_v2  ;;  %v2702_v62 = vunpack.c.h.b16 %v2427_v48  ;;  %v8447_v2 = vpack.c.b16 %v2701_v51, %v2701_v51  ;;  %v6057_v51 = vld [vmem:[%s8255_s22 + $0xf0] sm:$0xf0] }
 0x240   : > { %v6071_v4 = vld [vmem:[%s8255_s22 + $0x100] sm:$0xf]  ;;  %v7390_v8 = vld [vmem:[%s8255_s22 + $0x10c] sm:$0xf0]  ;;  %v5944_v17 = vor.u32 %v7358_v0, %v5943_v63  ;;  %4037 = vmatpush.bf16.msra.mxu2 %v6216_v3  ;;  %v8445_v0 = vpack.c.b16 %v2703_v53, %v2703_v53  ;;  %v8449_v3 = vpack.c.b16 %v2704_v54, %v2704_v54  ;;  %v7384_v53 = vld [vmem:[%s8255_s22 + $0xe4] sm:$0xf] }
 0x241   : > { %v6199_v9 = vld [vmem:[%s8255_s22 + $0x200] sm:$0xf]  ;;  %v7422_v11 = vld [vmem:[%s8255_s22 + $0x20c] sm:$0xf0]  ;;  %v6072_v20 = vor.u32 %v7390_v8, %v6071_v4  ;;  %4050 = vmatpush.bf16.msra.mxu3 %v6344_v10  ;;  %v8451_v8 = vpack.c.b16 %v2702_v62, %v2702_v62  ;;  %v7416_v54 = vld [vmem:[%s8255_s22 + $0x1e4] sm:$0xf] }
 0x242   : > { %v6327_v12 = vld [vmem:[%s8255_s22 + $0x300] sm:$0xf]  ;;  %v7454_v13 = vld [vmem:[%s8255_s22 + $0x30c] sm:$0xf0]  ;;  %v6200_v22 = vor.u32 %v7422_v11, %v6199_v9  ;;  %4012 = vmatpush.bf16.msra.mxu0 %v5944_v17 }
 0x243   : > { %v6567_v14 = vld [vmem:[%s8255_s22 + $0x4e0] sm:$0xf]  ;;  %v7514_v15 = vld [vmem:[%s8255_s22 + $0x4ec] sm:$0xf0]  ;;  %v6328_v56 = vor.u32 %v7454_v13, %v6327_v12  ;;  %4025 = vmatpush.bf16.msra.mxu1 %v6072_v20 }
 0x244   : > { %v6695_v16 = vld [vmem:[%s8255_s22 + $0x5e0] sm:$0xf]  ;;  %v7546_v21 = vld [vmem:[%s8255_s22 + $0x5ec] sm:$0xf0]  ;;  %v6568_v25 = vor.u32 %v7514_v15, %v6567_v14  ;;  %4038 = vmatpush.bf16.msra.mxu2 %v6200_v22 }
 0x245   : > { %v6823_v18 = vld [vmem:[%s8255_s22 + $0x6e0] sm:$0xf]  ;;  %v7578_v19 = vld [vmem:[%s8255_s22 + $0x6ec] sm:$0xf0]  ;;  %v6696_v26 = vor.u32 %v7546_v21, %v6695_v16  ;;  %4051 = vmatpush.bf16.msra.mxu3 %v6328_v56  ;;  %4013 = vmatmul.bf16.vlgmr.msra.gmra.mxu0 %v8447_v2 }
 0x246   : > { %v6951_v23 = vld [vmem:[%s8255_s22 + $0x7e0] sm:$0xf]  ;;  %v7610_v24 = vld [vmem:[%s8255_s22 + $0x7ec] sm:$0xf0]  ;;  %v6824_v27 = vor.u32 %v7578_v19, %v6823_v18  ;;  %4057 = vmatpush.bf16.msrb.mxu0 %v6568_v25  ;;  %4026 = vmatmul.bf16.vlgmr.msra.gmra.mxu1 %v8451_v8 }
 0x247   : > { %v6551_v28 = vld [vmem:[%s8255_s22 + $0x4c0] sm:$0xf]  ;;  %v7510_v29 = vld [vmem:[%s8255_s22 + $0x4cc] sm:$0xf0]  ;;  %v6952_v32 = vor.u32 %v7610_v24, %v6951_v23  ;;  %4070 = vmatpush.bf16.msrb.mxu1 %v6696_v26  ;;  %4039 = vmatmul.bf16.vlgmr.msra.gmra.mxu2 %v8445_v0 }
 0x248   : > { %v6679_v30 = vld [vmem:[%s8255_s22 + $0x5c0] sm:$0xf]  ;;  %v7542_v34 = vld [vmem:[%s8255_s22 + $0x5cc] sm:$0xf0]  ;;  %v6552_v40 = vor.u32 %v7510_v29, %v6551_v28  ;;  %4083 = vmatpush.bf16.msrb.mxu2 %v6824_v27  ;;  %4052 = vmatmul.bf16.vlgmr.msra.gmra.mxu3 %v8449_v3 }
 0x249   : > { %v6807_v35 = vld [vmem:[%s8255_s22 + $0x6c0] sm:$0xf]  ;;  %v7574_v36 = vld [vmem:[%s8255_s22 + $0x6cc] sm:$0xf0]  ;;  %v6680_v42 = vor.u32 %v7542_v34, %v6679_v30  ;;  %4096 = vmatpush.bf16.msrb.mxu3 %v6952_v32 }
 0x24a   : > { %v6935_v37 = vld [vmem:[%s8255_s22 + $0x7c0] sm:$0xf]  ;;  %v7606_v38 = vld [vmem:[%s8255_s22 + $0x7cc] sm:$0xf0]  ;;  %v6808_v43 = vor.u32 %v7574_v36, %v6807_v35  ;;  %4058 = vmatpush.bf16.msrb.mxu0 %v6552_v40 }
 0x24b   : > { %v6535_v41 = vld [vmem:[%s8255_s22 + $0x4a0] sm:$0xf]  ;;  %v7506_v44 = vld [vmem:[%s8255_s22 + $0x4ac] sm:$0xf0]  ;;  %v6936_v45 = vor.u32 %v7606_v38, %v6935_v37  ;;  %4071 = vmatpush.bf16.msrb.mxu1 %v6680_v42 }
 0x24c   : > { %v6663_v5 = vld [vmem:[%s8255_s22 + $0x5a0] sm:$0xf]  ;;  %v7538_v33 = vld [vmem:[%s8255_s22 + $0x5ac] sm:$0xf0]  ;;  %v6536_v31 = vor.u32 %v7506_v44, %v6535_v41  ;;  %4084 = vmatpush.bf16.msrb.mxu2 %v6808_v43 }
 0x24d   : > { %v6791_v7 = vld [vmem:[%s8255_s22 + $0x6a0] sm:$0xf]  ;;  %v7570_v59 = vld [vmem:[%s8255_s22 + $0x6ac] sm:$0xf0]  ;;  %v6664_v6 = vor.u32 %v7538_v33, %v6663_v5  ;;  %4097 = vmatpush.bf16.msrb.mxu3 %v6936_v45 }
 0x24e   : > { %v6919_v57 = vld [vmem:[%s8255_s22 + $0x7a0] sm:$0xf]  ;;  %v7602_v46 = vld [vmem:[%s8255_s22 + $0x7ac] sm:$0xf0]  ;;  %v6792_v39 = vor.u32 %v7570_v59, %v6791_v7  ;;  %4059 = vmatpush.bf16.msrb.mxu0 %v6536_v31 }
 0x24f   : > { %v6519_v49 = vld [vmem:[%s8255_s22 + $0x480] sm:$0xf]  ;;  %v7502_v50 = vld [vmem:[%s8255_s22 + $0x48c] sm:$0xf0]  ;;  %v6920_v55 = vor.u32 %v7602_v46, %v6919_v57  ;;  %4072 = vmatpush.bf16.msrb.mxu1 %v6664_v6 }
 0x250   : > { %v6647_v52 = vld [vmem:[%s8255_s22 + $0x580] sm:$0xf]  ;;  %v7534_v60 = vld [vmem:[%s8255_s22 + $0x58c] sm:$0xf0]  ;;  %v6520_v4 = vor.u32 %v7502_v50, %v6519_v49  ;;  %4085 = vmatpush.bf16.msrb.mxu2 %v6792_v39 }
 0x251   : > { %v6775_v58 = vld [vmem:[%s8255_s22 + $0x680] sm:$0xf]  ;;  %v7566_v61 = vld [vmem:[%s8255_s22 + $0x68c] sm:$0xf0]  ;;  %v6648_v9 = vor.u32 %v7534_v60, %v6647_v52  ;;  %4098 = vmatpush.bf16.msrb.mxu3 %v6920_v55  ;;  %v6185_v60 = vld [vmem:[%s8255_s22 + $0x1f0] sm:$0xf0] }
 0x252   : > { %v6903_v1 = vld [vmem:[%s8255_s22 + $0x780] sm:$0xf]  ;;  %v7598_v63 = vld [vmem:[%s8255_s22 + $0x78c] sm:$0xf0]  ;;  %v6776_v10 = vor.u32 %v7566_v61, %v6775_v58  ;;  %4060 = vmatpush.bf16.msrb.mxu0 %v6520_v4  ;;  %v7448_v58 = vld [vmem:[%s8255_s22 + $0x2e4] sm:$0xf] }
 0x253   : > { %v6503_v11 = vld [vmem:[%s8255_s22 + $0x460] sm:$0xf]  ;;  %v7498_v12 = vld [vmem:[%s8255_s22 + $0x46c] sm:$0xf0]  ;;  %v6904_v14 = vor.u32 %v7598_v63, %v6903_v1  ;;  %4073 = vmatpush.bf16.msrb.mxu1 %v6648_v9  ;;  %v6313_v61 = vld [vmem:[%s8255_s22 + $0x2f0] sm:$0xf0] }
 0x254   : > { %v6631_v13 = vld [vmem:[%s8255_s22 + $0x560] sm:$0xf]  ;;  %v7530_v15 = vld [vmem:[%s8255_s22 + $0x56c] sm:$0xf0]  ;;  %v6504_v19 = vor.u32 %v7498_v12, %v6503_v11  ;;  %4086 = vmatpush.bf16.msrb.mxu2 %v6776_v10  ;;  %v7480_v4 = vld [vmem:[%s8255_s22 + $0x3e4] sm:$0xf] }
 0x255   : > { %v6759_v16 = vld [vmem:[%s8255_s22 + $0x660] sm:$0xf]  ;;  %v7562_v17 = vld [vmem:[%s8255_s22 + $0x66c] sm:$0xf0]  ;;  %v6632_v20 = vor.u32 %v7530_v15, %v6631_v13  ;;  %4099 = vmatpush.bf16.msrb.mxu3 %v6904_v14  ;;  %v6441_v9 = vld [vmem:[%s8255_s22 + $0x3f0] sm:$0xf0]  ;;  %v6060_v13 = vor.u32 %v7384_v53, %v6057_v51  ;;  %v6188_v15 = vor.u32 %v7416_v54, %v6185_v60 }
 0x256   : > { %v6887_v21 = vld [vmem:[%s8255_s22 + $0x760] sm:$0xf]  ;;  %v7594_v18 = vld [vmem:[%s8255_s22 + $0x76c] sm:$0xf0]  ;;  %v6760_v22 = vor.u32 %v7562_v17, %v6759_v16  ;;  %4061 = vmatpush.bf16.msrb.mxu0 %v6504_v19  ;;  %v6316_v16 = vor.u32 %v7448_v58, %v6313_v61  ;;  %v7380_v17 = vld [vmem:[%s8255_s22 + $0xc4] sm:$0xf]  ;;  %v6444_v19 = vor.u32 %v7480_v4, %v6441_v9 }
 0x257   : > { %v6487_v23 = vld [vmem:[%s8255_s22 + $0x440] sm:$0xf]  ;;  %v7494_v24 = vld [vmem:[%s8255_s22 + $0x44c] sm:$0xf0]  ;;  %v6888_v25 = vor.u32 %v7594_v18, %v6887_v21  ;;  %4074 = vmatpush.bf16.msrb.mxu1 %v6632_v20  ;;  %v6041_v21 = vld [vmem:[%s8255_s22 + $0xd0] sm:$0xf0] }
 0x258   : > { %v6615_v56 = vld [vmem:[%s8255_s22 + $0x540] sm:$0xf]  ;;  %v7526_v26 = vld [vmem:[%s8255_s22 + $0x54c] sm:$0xf0]  ;;  %v6488_v32 = vor.u32 %v7494_v24, %v6487_v23  ;;  %4087 = vmatpush.bf16.msrb.mxu2 %v6760_v22  ;;  %v7412_v18 = vld [vmem:[%s8255_s22 + $0x1c4] sm:$0xf] }
 0x259   : > { %v6743_v27 = vld [vmem:[%s8255_s22 + $0x640] sm:$0xf]  ;;  %v7558_v28 = vld [vmem:[%s8255_s22 + $0x64c] sm:$0xf0]  ;;  %v6616_v34 = vor.u32 %v7526_v26, %v6615_v56  ;;  %4100 = vmatpush.bf16.msrb.mxu3 %v6888_v25  ;;  %v6169_v20 = vld [vmem:[%s8255_s22 + $0x1d0] sm:$0xf0] }
 0x25a   : > { %v6871_v29 = vld [vmem:[%s8255_s22 + $0x740] sm:$0xf]  ;;  %v7590_v30 = vld [vmem:[%s8255_s22 + $0x74c] sm:$0xf0]  ;;  %v6744_v35 = vor.u32 %v7558_v28, %v6743_v27  ;;  %4062 = vmatpush.bf16.msrb.mxu0 %v6488_v32  ;;  %v7444_v22 = vld [vmem:[%s8255_s22 + $0x2c4] sm:$0xf]  ;;  %v6044_v28 = vor.u32 %v7380_v17, %v6041_v21 }
 0x25b   : > { %v6471_v36 = vld [vmem:[%s8255_s22 + $0x420] sm:$0xf]  ;;  %v7490_v37 = vld [vmem:[%s8255_s22 + $0x42c] sm:$0xf0]  ;;  %v6872_v40 = vor.u32 %v7590_v30, %v6871_v29  ;;  %4075 = vmatpush.bf16.msrb.mxu1 %v6616_v34  ;;  %v6297_v23 = vld [vmem:[%s8255_s22 + $0x2d0] sm:$0xf0]  ;;  %v6172_v30 = vor.u32 %v7412_v18, %v6169_v20 }
 0x25c   : > { %v6599_v38 = vld [vmem:[%s8255_s22 + $0x520] sm:$0xf]  ;;  %v7522_v41 = vld [vmem:[%s8255_s22 + $0x52c] sm:$0xf0]  ;;  %v6472_v45 = vor.u32 %v7490_v37, %v6471_v36  ;;  %4088 = vmatpush.bf16.msrb.mxu2 %v6744_v35  ;;  %v7476_v56 = vld [vmem:[%s8255_s22 + $0x3c4] sm:$0xf]  ;;  %v6300_v32 = vor.u32 %v7444_v22, %v6297_v23 }
 0x25d   : > { %v6727_v42 = vld [vmem:[%s8255_s22 + $0x620] sm:$0xf]  ;;  %v7554_v43 = vld [vmem:[%s8255_s22 + $0x62c] sm:$0xf0]  ;;  %v6600_v46 = vor.u32 %v7522_v41, %v6599_v38  ;;  %4101 = vmatpush.bf16.msrb.mxu3 %v6872_v40  ;;  %v6425_v25 = vld [vmem:[%s8255_s22 + $0x3d0] sm:$0xf0] }
 0x25e   : > { %v6855_v44 = vld [vmem:[%s8255_s22 + $0x720] sm:$0xf]  ;;  %v7586_v5 = vld [vmem:[%s8255_s22 + $0x72c] sm:$0xf0]  ;;  %v6728_v31 = vor.u32 %v7554_v43, %v6727_v42  ;;  %4063 = vmatpush.bf16.msrb.mxu0 %v6472_v45  ;;  %v7376_v34 = vld [vmem:[%s8255_s22 + $0xa4] sm:$0xf]  ;;  %v6428_v37 = vor.u32 %v7476_v56, %v6425_v25 }
 0x25f   : > { %v6455_v33 = vld [vmem:[%s8255_s22 + $0x400] sm:$0xf]  ;;  %v7486_v7 = vld [vmem:[%s8255_s22 + $0x40c] sm:$0xf0]  ;;  %v6856_v39 = vor.u32 %v7586_v5, %v6855_v44  ;;  %4076 = vmatpush.bf16.msrb.mxu1 %v6600_v46  ;;  %v6025_v35 = vld [vmem:[%s8255_s22 + $0xb0] sm:$0xf0] }
 0x260   : > { %v6583_v59 = vld [vmem:[%s8255_s22 + $0x500] sm:$0xf]  ;;  %v7518_v57 = vld [vmem:[%s8255_s22 + $0x50c] sm:$0xf0]  ;;  %v6456_v55 = vor.u32 %v7486_v7, %v6455_v33  ;;  %4089 = vmatpush.bf16.msrb.mxu2 %v6728_v31  ;;  %v7408_v36 = vld [vmem:[%s8255_s22 + $0x1a4] sm:$0xf]  ;;  %v6028_v44 = vor.u32 %v7376_v34, %v6025_v35 }
 0x261   : > { %v6711_v6 = vld [vmem:[%s8255_s22 + $0x600] sm:$0xf]  ;;  %v7550_v47 = vld [vmem:[%s8255_s22 + $0x60c] sm:$0xf0]  ;;  %v6584_v1 = vor.u32 %v7518_v57, %v6583_v59  ;;  %4102 = vmatpush.bf16.msrb.mxu3 %v6856_v39  ;;  %v6153_v38 = vld [vmem:[%s8255_s22 + $0x1b0] sm:$0xf0] }
 0x262   : > { %v2430_v48 = vld [vmem:[#allocation2 + $0x8] sm:$0xff]  ;;  %v7582_v50 = vld [vmem:[%s8255_s22 + $0x70c] sm:$0xf0]  ;;  %v6712_v63 = vor.u32 %v7550_v47, %v6711_v6  ;;  %4064 = vmatpush.bf16.msrb.mxu0 %v6456_v55  ;;  %v6281_v41 = vld [vmem:[%s8255_s22 + $0x2b0] sm:$0xf0]  ;;  %v6156_v5 = vor.u32 %v7408_v36, %v6153_v38 }
 0x263   : > { %v6839_v49 = vld [vmem:[%s8255_s22 + $0x700] sm:$0xf]  ;;  %v2429_v52 = vld [vmem:[#allocation2 + $0x18] sm:$0xff]  ;;  %v2707_v62 = vunpack.c.l.b16 %v2430_v48  ;;  %v2708_v11 = vunpack.c.h.b16 %v2430_v48  ;;  %4077 = vmatpush.bf16.msrb.mxu1 %v6584_v1  ;;  %v7440_v40 = vld [vmem:[%s8255_s22 + $0x2a4] sm:$0xf] }
 0x264   : > { %v2705_v10 = vunpack.c.l.b16 %v2429_v52  ;;  %v6840_v12 = vor.u32 %v7582_v50, %v6839_v49  ;;  %v2706_v14 = vunpack.c.h.b16 %v2429_v52  ;;  %4090 = vmatpush.bf16.msrb.mxu2 %v6712_v63  ;;  %v7472_v42 = vld [vmem:[%s8255_s22 + $0x3a4] sm:$0xf]  ;;  %v6409_v43 = vld [vmem:[%s8255_s22 + $0x3b0] sm:$0xf0]  ;;  %v6284_v33 = vor.u32 %v7440_v40, %v6281_v41 }
 0x265   : > { %v8503_v24 = vpack.c.b16 %v2707_v62, %v2707_v62  ;;  %v8509_v27 = vpack.c.b16 %v2708_v11, %v2708_v11  ;;  %v7372_v45 = vld [vmem:[%s8255_s22 + $0x84] sm:$0xf]  ;;  %v6009_v7 = vld [vmem:[%s8255_s22 + $0x90] sm:$0xf0]  ;;  %v6412_v57 = vor.u32 %v7472_v42, %v6409_v43 }
 0x266   : > { %v8507_v26 = vpack.c.b16 %v2705_v10, %v2705_v10  ;;  %4103 = vmatpush.bf16.msrb.mxu3 %v6840_v12  ;;  %4109 = vmatpush.bf16.msra.mxu0 %v6060_v13  ;;  %v8511_v29 = vpack.c.b16 %v2706_v14, %v2706_v14  ;;  %v7404_v59 = vld [vmem:[%s8255_s22 + $0x184] sm:$0xf]  ;;  %v6137_v46 = vld [vmem:[%s8255_s22 + $0x190] sm:$0xf0]  ;;  %v6012_v39 = vor.u32 %v7372_v45, %v6009_v7 }
 0x267   : > { %4122 = vmatpush.bf16.msra.mxu1 %v6188_v15  ;;  %4091 = vmatmul.bf16.vlgmr.msrb.gmra.mxu2 %v8503_v24  ;;  %v7436_v31 = vld [vmem:[%s8255_s22 + $0x284] sm:$0xf]  ;;  %v6265_v6 = vld [vmem:[%s8255_s22 + $0x290] sm:$0xf0]  ;;  %v6140_v49 = vor.u32 %v7404_v59, %v6137_v46 }
 0x268   : > { %4135 = vmatpush.bf16.msra.mxu2 %v6316_v16  ;;  %4065 = vmatmul.bf16.vlgmr.msrb.gmra.mxu0 %v8507_v26  ;;  %v7468_v47 = vld [vmem:[%s8255_s22 + $0x384] sm:$0xf]  ;;  %v6393_v48 = vld [vmem:[%s8255_s22 + $0x390] sm:$0xf0]  ;;  %v6268_v50 = vor.u32 %v7436_v31, %v6265_v6 }
 0x269   : > { %4104 = vmatmul.bf16.vlgmr.msrb.gmra.mxu3 %v8509_v27  ;;  %4078 = vmatmul.bf16.vlgmr.msrb.gmra.mxu1 %v8511_v29  ;;  %v7368_v52 = vld [vmem:[%s8255_s22 + $0x64] sm:$0xf]  ;;  %v5993_v53 = vld [vmem:[%s8255_s22 + $0x70] sm:$0xf0]  ;;  %v6396_v54 = vor.u32 %v7468_v47, %v6393_v48 }
 0x26a   : > { %4148 = vmatpush.bf16.msra.mxu3 %v6444_v19  ;;  %4110 = vmatpush.bf16.msra.mxu0 %v6044_v28  ;;  %v7400_v51 = vld [vmem:[%s8255_s22 + $0x164] sm:$0xf]  ;;  %v6121_v55 = vld [vmem:[%s8255_s22 + $0x170] sm:$0xf0]  ;;  %v5996_v1 = vor.u32 %v7368_v52, %v5993_v53 }
 0x26b   : > { %4123 = vmatpush.bf16.msra.mxu1 %v6172_v30  ;;  %v7432_v60 = vld [vmem:[%s8255_s22 + $0x264] sm:$0xf]  ;;  %v6249_v58 = vld [vmem:[%s8255_s22 + $0x270] sm:$0xf0]  ;;  %v6124_v63 = vor.u32 %v7400_v51, %v6121_v55 }
 0x26c   : > { %4136 = vmatpush.bf16.msra.mxu2 %v6300_v32  ;;  %v7464_v61 = vld [vmem:[%s8255_s22 + $0x364] sm:$0xf]  ;;  %v6377_v62 = vld [vmem:[%s8255_s22 + $0x370] sm:$0xf0]  ;;  %v6252_v4 = vor.u32 %v7432_v60, %v6249_v58 }
 0x26d   : > { %v7364_v9 = vld [vmem:[%s8255_s22 + $0x44] sm:$0xf]  ;;  %v5977_v10 = vld [vmem:[%s8255_s22 + $0x50] sm:$0xf0]  ;;  %v6380_v12 = vor.u32 %v7464_v61, %v6377_v62 }
 0x26e   : > { %4149 = vmatpush.bf16.msra.mxu3 %v6428_v37  ;;  %4111 = vmatpush.bf16.msra.mxu0 %v6028_v44  ;;  %v7396_v11 = vld [vmem:[%s8255_s22 + $0x144] sm:$0xf]  ;;  %v6105_v13 = vld [vmem:[%s8255_s22 + $0x150] sm:$0xf0]  ;;  %v5980_v21 = vor.u32 %v7364_v9, %v5977_v10 }
 0x26f   : > { %4124 = vmatpush.bf16.msra.mxu1 %v6156_v5  ;;  %v7428_v14 = vld [vmem:[%s8255_s22 + $0x244] sm:$0xf]  ;;  %v6233_v15 = vld [vmem:[%s8255_s22 + $0x250] sm:$0xf0]  ;;  %v6108_v18 = vor.u32 %v7396_v11, %v6105_v13 }
 0x270   : > { %4137 = vmatpush.bf16.msra.mxu2 %v6284_v33  ;;  %v7460_v16 = vld [vmem:[%s8255_s22 + $0x344] sm:$0xf]  ;;  %v6361_v17 = vld [vmem:[%s8255_s22 + $0x350] sm:$0xf0]  ;;  %v6236_v19 = vor.u32 %v7428_v14, %v6233_v15 }
 0x271   : > { %v7360_v20 = vld [vmem:[%s8255_s22 + $0x24] sm:$0xf]  ;;  %v5961_v22 = vld [vmem:[%s8255_s22 + $0x30] sm:$0xf0]  ;;  %v6364_v56 = vor.u32 %v7460_v16, %v6361_v17 }
 0x272   : > { %4150 = vmatpush.bf16.msra.mxu3 %v6412_v57  ;;  %4112 = vmatpush.bf16.msra.mxu0 %v6012_v39  ;;  %v7392_v23 = vld [vmem:[%s8255_s22 + $0x124] sm:$0xf]  ;;  %v6089_v25 = vld [vmem:[%s8255_s22 + $0x130] sm:$0xf0]  ;;  %v5964_v35 = vor.u32 %v7360_v20, %v5961_v22 }
 0x273   : > { %4125 = vmatpush.bf16.msra.mxu1 %v6140_v49  ;;  %v7424_v28 = vld [vmem:[%s8255_s22 + $0x224] sm:$0xf]  ;;  %v6217_v30 = vld [vmem:[%s8255_s22 + $0x230] sm:$0xf0]  ;;  %v6092_v38 = vor.u32 %v7392_v23, %v6089_v25 }
 0x274   : > { %4138 = vmatpush.bf16.msra.mxu2 %v6268_v50  ;;  %v7456_v32 = vld [vmem:[%s8255_s22 + $0x324] sm:$0xf]  ;;  %v6345_v34 = vld [vmem:[%s8255_s22 + $0x330] sm:$0xf0]  ;;  %v6220_v40 = vor.u32 %v7424_v28, %v6217_v30 }
 0x275   : > { %v7356_v36 = vld [vmem:[%s8255_s22 + $0x4] sm:$0xf]  ;;  %v5945_v37 = vld [vmem:[%s8255_s22 + $0x10] sm:$0xf0]  ;;  %v6348_v44 = vor.u32 %v7456_v32, %v6345_v34 }
 0x276   : > { %4151 = vmatpush.bf16.msra.mxu3 %v6396_v54  ;;  %4113 = vmatpush.bf16.msra.mxu0 %v5996_v1  ;;  %v7388_v41 = vld [vmem:[%s8255_s22 + $0x104] sm:$0xf]  ;;  %v6073_v42 = vld [vmem:[%s8255_s22 + $0x110] sm:$0xf0]  ;;  %v5948_v46 = vor.u32 %v7356_v36, %v5945_v37 }
 0x277   : > { %4126 = vmatpush.bf16.msra.mxu1 %v6124_v63  ;;  %v7420_v43 = vld [vmem:[%s8255_s22 + $0x204] sm:$0xf]  ;;  %v6201_v5 = vld [vmem:[%s8255_s22 + $0x210] sm:$0xf0]  ;;  %v6076_v48 = vor.u32 %v7388_v41, %v6073_v42 }
 0x278   : > { %4139 = vmatpush.bf16.msra.mxu2 %v6252_v4  ;;  %v7452_v33 = vld [vmem:[%s8255_s22 + $0x304] sm:$0xf]  ;;  %v6329_v45 = vld [vmem:[%s8255_s22 + $0x310] sm:$0xf0]  ;;  %v6204_v39 = vor.u32 %v7420_v43, %v6201_v5 }
 0x279   : > { %v7512_v7 = vld [vmem:[%s8255_s22 + $0x4e4] sm:$0xf]  ;;  %v6569_v59 = vld [vmem:[%s8255_s22 + $0x4f0] sm:$0xf0]  ;;  %v6332_v52 = vor.u32 %v7452_v33, %v6329_v45 }
 0x27a   : > { %4152 = vmatpush.bf16.msra.mxu3 %v6380_v12  ;;  %4114 = vmatpush.bf16.msra.mxu0 %v5980_v21  ;;  %v7544_v57 = vld [vmem:[%s8255_s22 + $0x5e4] sm:$0xf]  ;;  %v6697_v31 = vld [vmem:[%s8255_s22 + $0x5f0] sm:$0xf0]  ;;  %v6572_v53 = vor.u32 %v7512_v7, %v6569_v59 }
 0x27b   : > { %4127 = vmatpush.bf16.msra.mxu1 %v6108_v18  ;;  %v7576_v6 = vld [vmem:[%s8255_s22 + $0x6e4] sm:$0xf]  ;;  %v6825_v47 = vld [vmem:[%s8255_s22 + $0x6f0] sm:$0xf0]  ;;  %v6700_v51 = vor.u32 %v7544_v57, %v6697_v31 }
 0x27c   : > { %4140 = vmatpush.bf16.msra.mxu2 %v6236_v19  ;;  %v7608_v49 = vld [vmem:[%s8255_s22 + $0x7e4] sm:$0xf]  ;;  %v6953_v50 = vld [vmem:[%s8255_s22 + $0x7f0] sm:$0xf0]  ;;  %v6828_v54 = vor.u32 %v7576_v6, %v6825_v47 }
 0x27d   : > { %v7508_v55 = vld [vmem:[%s8255_s22 + $0x4c4] sm:$0xf]  ;;  %v6553_v60 = vld [vmem:[%s8255_s22 + $0x4d0] sm:$0xf0]  ;;  %v6956_v61 = vor.u32 %v7608_v49, %v6953_v50 }
 0x27e   : > { %4153 = vmatpush.bf16.msra.mxu3 %v6364_v56  ;;  %4115 = vmatpush.bf16.msra.mxu0 %v5964_v35  ;;  %v7540_v58 = vld [vmem:[%s8255_s22 + $0x5c4] sm:$0xf]  ;;  %v6681_v62 = vld [vmem:[%s8255_s22 + $0x5d0] sm:$0xf0]  ;;  %v6556_v10 = vor.u32 %v7508_v55, %v6553_v60 }
 0x27f   : > { %4128 = vmatpush.bf16.msra.mxu1 %v6092_v38  ;;  %v7572_v1 = vld [vmem:[%s8255_s22 + $0x6c4] sm:$0xf]  ;;  %v6809_v63 = vld [vmem:[%s8255_s22 + $0x6d0] sm:$0xf0]  ;;  %v6684_v11 = vor.u32 %v7540_v58, %v6681_v62 }
 0x280   : > { %4141 = vmatpush.bf16.msra.mxu2 %v6220_v40  ;;  %v7604_v4 = vld [vmem:[%s8255_s22 + $0x7c4] sm:$0xf]  ;;  %v6937_v9 = vld [vmem:[%s8255_s22 + $0x7d0] sm:$0xf0]  ;;  %v6812_v12 = vor.u32 %v7572_v1, %v6809_v63 }
 0x281   : > { %v7504_v13 = vld [vmem:[%s8255_s22 + $0x4a4] sm:$0xf]  ;;  %v6537_v14 = vld [vmem:[%s8255_s22 + $0x4b0] sm:$0xf0]  ;;  %v6940_v16 = vor.u32 %v7604_v4, %v6937_v9 }
 0x282   : > { %4154 = vmatpush.bf16.msra.mxu3 %v6348_v44  ;;  %4116 = vmatpush.bf16.msra.mxu0 %v5948_v46  ;;  %v7536_v15 = vld [vmem:[%s8255_s22 + $0x5a4] sm:$0xf]  ;;  %v6665_v17 = vld [vmem:[%s8255_s22 + $0x5b0] sm:$0xf0]  ;;  %v6540_v22 = vor.u32 %v7504_v13, %v6537_v14 }
 0x283   : > { %4129 = vmatpush.bf16.msra.mxu1 %v6076_v48  ;;  %v7568_v21 = vld [vmem:[%s8255_s22 + $0x6a4] sm:$0xf]  ;;  %v6793_v18 = vld [vmem:[%s8255_s22 + $0x6b0] sm:$0xf0]  ;;  %v6668_v23 = vor.u32 %v7536_v15, %v6665_v17 }
 0x284   : > { %4142 = vmatpush.bf16.msra.mxu2 %v6204_v39  ;;  %v7600_v19 = vld [vmem:[%s8255_s22 + $0x7a4] sm:$0xf]  ;;  %v6921_v20 = vld [vmem:[%s8255_s22 + $0x7b0] sm:$0xf0]  ;;  %v6796_v56 = vor.u32 %v7568_v21, %v6793_v18 }
 0x285   : > { %4117 = vmatmul.bf16.vlgmr.msra.gmra.mxu0 %v8447_v2  ;;  %v7500_v25 = vld [vmem:[%s8255_s22 + $0x484] sm:$0xf]  ;;  %v6521_v28 = vld [vmem:[%s8255_s22 + $0x490] sm:$0xf0]  ;;  %v6924_v32 = vor.u32 %v7600_v19, %v6921_v20 }
 0x286   : > { %4155 = vmatpush.bf16.msra.mxu3 %v6332_v52  ;;  %4161 = vmatpush.bf16.msrb.mxu0 %v6572_v53  ;;  %v7532_v30 = vld [vmem:[%s8255_s22 + $0x584] sm:$0xf]  ;;  %v6649_v34 = vld [vmem:[%s8255_s22 + $0x590] sm:$0xf0]  ;;  %v6524_v40 = vor.u32 %v7500_v25, %v6521_v28  ;;  %v6063_v28 = vld [vmem:[%s8255_s22 + $0xe8] sm:$0xf] }
 0x287   : > { %4174 = vmatpush.bf16.msrb.mxu1 %v6700_v51  ;;  %4143 = vmatmul.bf16.vlgmr.msra.gmra.mxu2 %v8445_v0  ;;  %v7564_v35 = vld [vmem:[%s8255_s22 + $0x684] sm:$0xf]  ;;  %v6777_v36 = vld [vmem:[%s8255_s22 + $0x690] sm:$0xf0]  ;;  %v6652_v41 = vor.u32 %v7532_v30, %v6649_v34  ;;  %v7387_v30 = vld [vmem:[%s8255_s22 + $0xf4] sm:$0xf0] }
 0x288   : > { %4187 = vmatpush.bf16.msrb.mxu2 %v6828_v54  ;;  %4130 = vmatmul.bf16.vlgmr.msra.gmra.mxu1 %v8451_v8  ;;  %v7596_v37 = vld [vmem:[%s8255_s22 + $0x784] sm:$0xf]  ;;  %v6905_v38 = vld [vmem:[%s8255_s22 + $0x790] sm:$0xf0]  ;;  %v6780_v42 = vor.u32 %v7564_v35, %v6777_v36  ;;  %v7419_v35 = vld [vmem:[%s8255_s22 + $0x1f4] sm:$0xf0] }
 0x289   : > { %4156 = vmatmul.bf16.vlgmr.msra.gmra.mxu3 %v8449_v3  ;;  %v7496_v43 = vld [vmem:[%s8255_s22 + $0x464] sm:$0xf]  ;;  %v6505_v44 = vld [vmem:[%s8255_s22 + $0x470] sm:$0xf0]  ;;  %v6908_v33 = vor.u32 %v7596_v37, %v6905_v38  ;;  %v6319_v36 = vld [vmem:[%s8255_s22 + $0x2e8] sm:$0xf] }
 0x28a   : > { %4200 = vmatpush.bf16.msrb.mxu3 %v6956_v61  ;;  %4162 = vmatpush.bf16.msrb.mxu0 %v6556_v10  ;;  %v7528_v5 = vld [vmem:[%s8255_s22 + $0x564] sm:$0xf]  ;;  %v6633_v45 = vld [vmem:[%s8255_s22 + $0x570] sm:$0xf0]  ;;  %v6508_v31 = vor.u32 %v7496_v43, %v6505_v44  ;;  %v7451_v37 = vld [vmem:[%s8255_s22 + $0x2f4] sm:$0xf0]  ;;  %v6064_v44 = vor.u32 %v7387_v30, %v6063_v28 }
 0x28b   : > { %4175 = vmatpush.bf16.msrb.mxu1 %v6684_v11  ;;  %v7560_v7 = vld [vmem:[%s8255_s22 + $0x664] sm:$0xf]  ;;  %v6761_v59 = vld [vmem:[%s8255_s22 + $0x670] sm:$0xf0]  ;;  %v6636_v6 = vor.u32 %v7528_v5, %v6633_v45  ;;  %v6047_v45 = vld [vmem:[%s8255_s22 + $0xc8] sm:$0xf] }
 0x28c   : > { %4188 = vmatpush.bf16.msrb.mxu2 %v6812_v12  ;;  %v7592_v57 = vld [vmem:[%s8255_s22 + $0x764] sm:$0xf]  ;;  %v6889_v46 = vld [vmem:[%s8255_s22 + $0x770] sm:$0xf0]  ;;  %v6764_v47 = vor.u32 %v7560_v7, %v6761_v59  ;;  %v7383_v7 = vld [vmem:[%s8255_s22 + $0xd4] sm:$0xf0] }
 0x28d   : > { %v7492_v48 = vld [vmem:[%s8255_s22 + $0x444] sm:$0xf]  ;;  %v6489_v39 = vld [vmem:[%s8255_s22 + $0x450] sm:$0xf0]  ;;  %v6892_v50 = vor.u32 %v7592_v57, %v6889_v46  ;;  %v6175_v59 = vld [vmem:[%s8255_s22 + $0x1c8] sm:$0xf] }
 0x28e   : > { %4201 = vmatpush.bf16.msrb.mxu3 %v6940_v16  ;;  %4163 = vmatpush.bf16.msrb.mxu0 %v6540_v22  ;;  %v7524_v49 = vld [vmem:[%s8255_s22 + $0x544] sm:$0xf]  ;;  %v6617_v52 = vld [vmem:[%s8255_s22 + $0x550] sm:$0xf0]  ;;  %v6492_v60 = vor.u32 %v7492_v48, %v6489_v39  ;;  %v7415_v46 = vld [vmem:[%s8255_s22 + $0x1d4] sm:$0xf0]  ;;  %v6048_v39 = vor.u32 %v7383_v7, %v6047_v45 }
 0x28f   : > { %4176 = vmatpush.bf16.msrb.mxu1 %v6668_v23  ;;  %v7556_v53 = vld [vmem:[%s8255_s22 + $0x644] sm:$0xf]  ;;  %v6745_v51 = vld [vmem:[%s8255_s22 + $0x650] sm:$0xf0]  ;;  %v6620_v58 = vor.u32 %v7524_v49, %v6617_v52  ;;  %v7479_v48 = vld [vmem:[%s8255_s22 + $0x3d4] sm:$0xf0]  ;;  %v6176_v49 = vor.u32 %v7415_v46, %v6175_v59 }
 0x290   : > { %4189 = vmatpush.bf16.msrb.mxu2 %v6796_v56  ;;  %v7588_v54 = vld [vmem:[%s8255_s22 + $0x744] sm:$0xf]  ;;  %v6873_v55 = vld [vmem:[%s8255_s22 + $0x750] sm:$0xf0]  ;;  %v6748_v61 = vor.u32 %v7556_v53, %v6745_v51  ;;  %v6031_v52 = vld [vmem:[%s8255_s22 + $0xa8] sm:$0xf] }
 0x291   : > { %v7488_v62 = vld [vmem:[%s8255_s22 + $0x424] sm:$0xf]  ;;  %v6473_v1 = vld [vmem:[%s8255_s22 + $0x430] sm:$0xf0]  ;;  %v6876_v4 = vor.u32 %v7588_v54, %v6873_v55  ;;  %v7379_v53 = vld [vmem:[%s8255_s22 + $0xb4] sm:$0xf0] }
 0x292   : > { %4202 = vmatpush.bf16.msrb.mxu3 %v6924_v32  ;;  %4164 = vmatpush.bf16.msrb.mxu0 %v6524_v40  ;;  %v7520_v63 = vld [vmem:[%s8255_s22 + $0x524] sm:$0xf]  ;;  %v6601_v9 = vld [vmem:[%s8255_s22 + $0x530] sm:$0xf0]  ;;  %v6476_v14 = vor.u32 %v7488_v62, %v6473_v1  ;;  %v6191_v32 = vld [vmem:[%s8255_s22 + $0x1e8] sm:$0xf]  ;;  %v6032_v1 = vor.u32 %v7379_v53, %v6031_v52 }
 0x293   : > { %4177 = vmatpush.bf16.msrb.mxu1 %v6652_v41  ;;  %v7552_v10 = vld [vmem:[%s8255_s22 + $0x624] sm:$0xf]  ;;  %v6729_v11 = vld [vmem:[%s8255_s22 + $0x630] sm:$0xf0]  ;;  %v6604_v17 = vor.u32 %v7520_v63, %v6601_v9  ;;  %v6447_v41 = vld [vmem:[%s8255_s22 + $0x3e8] sm:$0xf]  ;;  %v6192_v5 = vor.u32 %v7419_v35, %v6191_v32 }
 0x294   : > { %4190 = vmatpush.bf16.msrb.mxu2 %v6780_v42  ;;  %v7584_v12 = vld [vmem:[%s8255_s22 + $0x724] sm:$0xf]  ;;  %v6857_v13 = vld [vmem:[%s8255_s22 + $0x730] sm:$0xf0]  ;;  %v6732_v21 = vor.u32 %v7552_v10, %v6729_v11  ;;  %v7483_v42 = vld [vmem:[%s8255_s22 + $0x3f4] sm:$0xf0] }
 0x295   : > { %v7484_v15 = vld [vmem:[%s8255_s22 + $0x404] sm:$0xf]  ;;  %v6457_v16 = vld [vmem:[%s8255_s22 + $0x410] sm:$0xf0]  ;;  %v6860_v22 = vor.u32 %v7584_v12, %v6857_v13  ;;  %v6448_v57 = vor.u32 %v7483_v42, %v6447_v41  ;;  %v6159_v51 = vld [vmem:[%s8255_s22 + $0x1a8] sm:$0xf] }
 0x296   : > { %4203 = vmatpush.bf16.msrb.mxu3 %v6908_v33  ;;  %4165 = vmatpush.bf16.msrb.mxu0 %v6508_v31  ;;  %v7516_v18 = vld [vmem:[%s8255_s22 + $0x504] sm:$0xf]  ;;  %v6585_v19 = vld [vmem:[%s8255_s22 + $0x510] sm:$0xf0]  ;;  %v6460_v34 = vor.u32 %v7484_v15, %v6457_v16  ;;  %v6320_v33 = vor.u32 %v7451_v37, %v6319_v36  ;;  %v6303_v31 = vld [vmem:[%s8255_s22 + $0x2c8] sm:$0xf] }
 0x297   : > { %4178 = vmatpush.bf16.msrb.mxu1 %v6636_v6  ;;  %v7548_v20 = vld [vmem:[%s8255_s22 + $0x604] sm:$0xf]  ;;  %v6713_v23 = vld [vmem:[%s8255_s22 + $0x610] sm:$0xf0]  ;;  %v6588_v38 = vor.u32 %v7516_v18, %v6585_v19  ;;  %v7447_v6 = vld [vmem:[%s8255_s22 + $0x2d4] sm:$0xf0] }
 0x298   : > { %4191 = vmatpush.bf16.msrb.mxu2 %v6764_v47  ;;  %v7580_v56 = vld [vmem:[%s8255_s22 + $0x704] sm:$0xf]  ;;  %v6841_v25 = vld [vmem:[%s8255_s22 + $0x710] sm:$0xf0]  ;;  %v6716_v40 = vor.u32 %v7548_v20, %v6713_v23  ;;  %v6431_v47 = vld [vmem:[%s8255_s22 + $0x3c8] sm:$0xf] }
 0x299   : > { %v6844_v43 = vor.u32 %v7580_v56, %v6841_v25  ;;  %v6432_v54 = vor.u32 %v7479_v48, %v6431_v47  ;;  %v7411_v55 = vld [vmem:[%s8255_s22 + $0x1b4] sm:$0xf0]  ;;  %v6015_v9 = vld [vmem:[%s8255_s22 + $0x88] sm:$0xf] }
 0x29a   : > { %4204 = vmatpush.bf16.msrb.mxu3 %v6892_v50  ;;  %4166 = vmatpush.bf16.msrb.mxu0 %v6492_v60  ;;  %v6304_v50 = vor.u32 %v7447_v6, %v6303_v31  ;;  %v6287_v60 = vld [vmem:[%s8255_s22 + $0x2a8] sm:$0xf]  ;;  %v7475_v62 = vld [vmem:[%s8255_s22 + $0x3b4] sm:$0xf0]  ;;  %v6160_v63 = vor.u32 %v7411_v55, %v6159_v51 }
 0x29b   : > { %4179 = vmatpush.bf16.msrb.mxu1 %v6620_v58  ;;  %v7443_v58 = vld [vmem:[%s8255_s22 + $0x2b4] sm:$0xf0]  ;;  %v6143_v11 = vld [vmem:[%s8255_s22 + $0x188] sm:$0xf] }
 0x29c   : > { %4192 = vmatpush.bf16.msrb.mxu2 %v6748_v61  ;;  %v6415_v61 = vld [vmem:[%s8255_s22 + $0x3a8] sm:$0xf]  ;;  %v7375_v10 = vld [vmem:[%s8255_s22 + $0x94] sm:$0xf0] }
 0x29d   : > { %v6416_v12 = vor.u32 %v7475_v62, %v6415_v61  ;;  %v7407_v13 = vld [vmem:[%s8255_s22 + $0x194] sm:$0xf0]  ;;  %v6399_v16 = vld [vmem:[%s8255_s22 + $0x388] sm:$0xf] }
 0x29e   : > { %4205 = vmatpush.bf16.msrb.mxu3 %v6876_v4  ;;  %4167 = vmatpush.bf16.msrb.mxu0 %v6476_v14  ;;  %v6288_v4 = vor.u32 %v7443_v58, %v6287_v60  ;;  %v6271_v14 = vld [vmem:[%s8255_s22 + $0x288] sm:$0xf]  ;;  %v7439_v15 = vld [vmem:[%s8255_s22 + $0x294] sm:$0xf0]  ;;  %v6144_v18 = vor.u32 %v7407_v13, %v6143_v11 }
 0x29f   : > { %4180 = vmatpush.bf16.msrb.mxu1 %v6604_v17  ;;  %v7471_v17 = vld [vmem:[%s8255_s22 + $0x394] sm:$0xf0]  ;;  %v6272_v19 = vor.u32 %v7439_v15, %v6271_v14  ;;  %v5999_v20 = vld [vmem:[%s8255_s22 + $0x68] sm:$0xf] }
 0x2a0   : > { %4193 = vmatpush.bf16.msrb.mxu2 %v6732_v21  ;;  %v6016_v21 = vor.u32 %v7375_v10, %v6015_v9  ;;  %v6127_v23 = vld [vmem:[%s8255_s22 + $0x168] sm:$0xf]  ;;  %v6400_v56 = vor.u32 %v7471_v17, %v6399_v16  ;;  %v7403_v25 = vld [vmem:[%s8255_s22 + $0x174] sm:$0xf0] }
 0x2a1   : > { %v6255_v28 = vld [vmem:[%s8255_s22 + $0x268] sm:$0xf]  ;;  %v7435_v30 = vld [vmem:[%s8255_s22 + $0x274] sm:$0xf0]  ;;  %v6128_v36 = vor.u32 %v7403_v25, %v6127_v23 }
 0x2a2   : > { %4206 = vmatpush.bf16.msrb.mxu3 %v6860_v22  ;;  %4168 = vmatpush.bf16.msrb.mxu0 %v6460_v34  ;;  %v7371_v22 = vld [vmem:[%s8255_s22 + $0x74] sm:$0xf0]  ;;  %v6383_v32 = vld [vmem:[%s8255_s22 + $0x368] sm:$0xf]  ;;  %v6256_v37 = vor.u32 %v7435_v30, %v6255_v28 }
 0x2a3   : > { %4181 = vmatpush.bf16.msrb.mxu1 %v6588_v38  ;;  %v7467_v34 = vld [vmem:[%s8255_s22 + $0x374] sm:$0xf0]  ;;  %v6000_v35 = vor.u32 %v7371_v22, %v5999_v20  ;;  %v5983_v38 = vld [vmem:[%s8255_s22 + $0x48] sm:$0xf] }
 0x2a4   : > { %4194 = vmatpush.bf16.msrb.mxu2 %v6716_v40  ;;  %v7367_v40 = vld [vmem:[%s8255_s22 + $0x54] sm:$0xf0]  ;;  %v6111_v41 = vld [vmem:[%s8255_s22 + $0x148] sm:$0xf]  ;;  %v6384_v42 = vor.u32 %v7467_v34, %v6383_v32 }
 0x2a5   : > { %4169 = vmatmul.bf16.vlgmr.msrb.gmra.mxu0 %v8507_v26  ;;  %v7463_v45 = vld [vmem:[%s8255_s22 + $0x354] sm:$0xf0]  ;;  %v5984_v7 = vor.u32 %v7367_v40, %v5983_v38  ;;  %v5967_v46 = vld [vmem:[%s8255_s22 + $0x28] sm:$0xf] }
 0x2a6   : > { %4207 = vmatpush.bf16.msrb.mxu3 %v6844_v43  ;;  %4213 = vmatpush.bf16.msra.mxu0 %v6064_v44  ;;  %v7399_v43 = vld [vmem:[%s8255_s22 + $0x154] sm:$0xf0]  ;;  %v6239_v44 = vld [vmem:[%s8255_s22 + $0x248] sm:$0xf] }
 0x2a7   : > { %4226 = vmatpush.bf16.msra.mxu1 %v6192_v5  ;;  %4195 = vmatmul.bf16.vlgmr.msrb.gmra.mxu2 %v8503_v24  ;;  %v7431_v5 = vld [vmem:[%s8255_s22 + $0x254] sm:$0xf0]  ;;  %v6112_v59 = vor.u32 %v7399_v43, %v6111_v41  ;;  %v6095_v6 = vld [vmem:[%s8255_s22 + $0x128] sm:$0xf] }
 0x2a8   : > { %4239 = vmatpush.bf16.msra.mxu2 %v6320_v33  ;;  %4182 = vmatmul.bf16.vlgmr.msrb.gmra.mxu1 %v8511_v29  ;;  %v6367_v33 = vld [vmem:[%s8255_s22 + $0x348] sm:$0xf]  ;;  %v7363_v31 = vld [vmem:[%s8255_s22 + $0x34] sm:$0xf0] }
 0x2a9   : > { %4208 = vmatmul.bf16.vlgmr.msrb.gmra.mxu3 %v8509_v27  ;;  %v6368_v47 = vor.u32 %v7463_v45, %v6367_v33  ;;  %v7395_v48 = vld [vmem:[%s8255_s22 + $0x134] sm:$0xf0]  ;;  %v5968_v53 = vor.u32 %v7363_v31, %v5967_v46  ;;  %v5951_v51 = vld [vmem:[%s8255_s22 + $0x8] sm:$0xf] }
 0x2aa   : > { %4252 = vmatpush.bf16.msra.mxu3 %v6448_v57  ;;  %4214 = vmatpush.bf16.msra.mxu0 %v6048_v39  ;;  %v6240_v57 = vor.u32 %v7431_v5, %v6239_v44  ;;  %v6223_v39 = vld [vmem:[%s8255_s22 + $0x228] sm:$0xf]  ;;  %v7459_v52 = vld [vmem:[%s8255_s22 + $0x334] sm:$0xf0]  ;;  %v6096_v55 = vor.u32 %v7395_v48, %v6095_v6 }
 0x2ab   : > { %4227 = vmatpush.bf16.msra.mxu1 %v6176_v49  ;;  %v7427_v49 = vld [vmem:[%s8255_s22 + $0x234] sm:$0xf0]  ;;  %v6079_v58 = vld [vmem:[%s8255_s22 + $0x108] sm:$0xf] }
 0x2ac   : > { %4240 = vmatpush.bf16.msra.mxu2 %v6304_v50  ;;  %v6351_v50 = vld [vmem:[%s8255_s22 + $0x328] sm:$0xf]  ;;  %v6224_v60 = vor.u32 %v7427_v49, %v6223_v39  ;;  %v7391_v61 = vld [vmem:[%s8255_s22 + $0x114] sm:$0xf0] }
 0x2ad   : > { %v6207_v62 = vld [vmem:[%s8255_s22 + $0x208] sm:$0xf]  ;;  %v7455_v9 = vld [vmem:[%s8255_s22 + $0x314] sm:$0xf0]  ;;  %v6080_v17 = vor.u32 %v7391_v61, %v6079_v58 }
 0x2ae   : > { %4253 = vmatpush.bf16.msra.mxu3 %v6432_v54  ;;  %4215 = vmatpush.bf16.msra.mxu0 %v6032_v1  ;;  %v7359_v54 = vld [vmem:[%s8255_s22 + $0x14] sm:$0xf0]  ;;  %v6352_v1 = vor.u32 %v7459_v52, %v6351_v50  ;;  %v6575_v10 = vld [vmem:[%s8255_s22 + $0x4e8] sm:$0xf] }
 0x2af   : > { %4228 = vmatpush.bf16.msra.mxu1 %v6160_v63  ;;  %v7423_v63 = vld [vmem:[%s8255_s22 + $0x214] sm:$0xf0]  ;;  %v5952_v13 = vor.u32 %v7359_v54, %v5951_v51  ;;  %v6831_v15 = vld [vmem:[%s8255_s22 + $0x6e8] sm:$0xf] }
 0x2b0   : > { %4241 = vmatpush.bf16.msra.mxu2 %v6288_v4  ;;  %v6335_v4 = vld [vmem:[%s8255_s22 + $0x308] sm:$0xf]  ;;  %v7515_v11 = vld [vmem:[%s8255_s22 + $0x4f4] sm:$0xf0] }
 0x2b1   : > { %v7547_v14 = vld [vmem:[%s8255_s22 + $0x5f4] sm:$0xf0]  ;;  %v6336_v20 = vor.u32 %v7455_v9, %v6335_v4  ;;  %v6576_v22 = vor.u32 %v7515_v11, %v6575_v10  ;;  %v6559_v25 = vld [vmem:[%s8255_s22 + $0x4c8] sm:$0xf] }
 0x2b2   : > { %4254 = vmatpush.bf16.msra.mxu3 %v6416_v12  ;;  %4216 = vmatpush.bf16.msra.mxu0 %v6016_v21  ;;  %v6703_v12 = vld [vmem:[%s8255_s22 + $0x5e8] sm:$0xf]  ;;  %v7579_v16 = vld [vmem:[%s8255_s22 + $0x6f4] sm:$0xf0]  ;;  %v6208_v21 = vor.u32 %v7423_v63, %v6207_v62 }
 0x2b3   : > { %4229 = vmatpush.bf16.msra.mxu1 %v6144_v18  ;;  %v6959_v18 = vld [vmem:[%s8255_s22 + $0x7e8] sm:$0xf]  ;;  %v6704_v23 = vor.u32 %v7547_v14, %v6703_v12  ;;  %v7511_v28 = vld [vmem:[%s8255_s22 + $0x4d4] sm:$0xf0]  ;;  %v8744_v12 = vld [vmem:[%s8261_s16] sm:$0xf] }
 0x2b4   : > { %4242 = vmatpush.bf16.msra.mxu2 %v6272_v19  ;;  %v7611_v19 = vld [vmem:[%s8255_s22 + $0x7f4] sm:$0xf0]  ;;  %v6687_v30 = vld [vmem:[%s8255_s22 + $0x5c8] sm:$0xf]  ;;  %v6560_v40 = vor.u32 %v7511_v28, %v6559_v25 }
 0x2b5   : > { %v6960_v32 = vor.u32 %v7611_v19, %v6959_v18  ;;  %v7543_v34 = vld [vmem:[%s8255_s22 + $0x5d4] sm:$0xf0]  ;;  %v6543_v43 = vld [vmem:[%s8255_s22 + $0x4a8] sm:$0xf] }
 0x2b6   : > { %4255 = vmatpush.bf16.msra.mxu3 %v6400_v56  ;;  %4217 = vmatpush.bf16.msra.mxu0 %v6000_v35  ;;  %v6832_v56 = vor.u32 %v7579_v16, %v6831_v15  ;;  %v6815_v35 = vld [vmem:[%s8255_s22 + $0x6c8] sm:$0xf]  ;;  %v7607_v38 = vld [vmem:[%s8255_s22 + $0x7d4] sm:$0xf0]  ;;  %v6688_v41 = vor.u32 %v7543_v34, %v6687_v30 }
 0x2b7   : > { %4230 = vmatpush.bf16.msra.mxu1 %v6128_v36  ;;  %v7575_v36 = vld [vmem:[%s8255_s22 + $0x6d4] sm:$0xf0]  ;;  %v6671_v5 = vld [vmem:[%s8255_s22 + $0x5a8] sm:$0xf] }
 0x2b8   : > { %4243 = vmatpush.bf16.msra.mxu2 %v6256_v37  ;;  %v6943_v37 = vld [vmem:[%s8255_s22 + $0x7c8] sm:$0xf]  ;;  %v7507_v44 = vld [vmem:[%s8255_s22 + $0x4b4] sm:$0xf0] }
 0x2b9   : > { %v6944_v33 = vor.u32 %v7607_v38, %v6943_v37  ;;  %v7539_v45 = vld [vmem:[%s8255_s22 + $0x5b4] sm:$0xf0]  ;;  %v6544_v31 = vor.u32 %v7507_v44, %v6543_v43  ;;  %v6527_v48 = vld [vmem:[%s8255_s22 + $0x488] sm:$0xf] }
 0x2ba   : > { %4256 = vmatpush.bf16.msra.mxu3 %v6384_v42  ;;  %4218 = vmatpush.bf16.msra.mxu0 %v5984_v7  ;;  %v6816_v42 = vor.u32 %v7575_v36, %v6815_v35  ;;  %v6799_v7 = vld [vmem:[%s8255_s22 + $0x6a8] sm:$0xf]  ;;  %v7603_v46 = vld [vmem:[%s8255_s22 + $0x7b4] sm:$0xf0]  ;;  %v6672_v6 = vor.u32 %v7539_v45, %v6671_v5 }
 0x2bb   : > { %4231 = vmatpush.bf16.msra.mxu1 %v6112_v59  ;;  %v7571_v59 = vld [vmem:[%s8255_s22 + $0x6b4] sm:$0xf0]  ;;  %v6655_v49 = vld [vmem:[%s8255_s22 + $0x588] sm:$0xf] }
 0x2bc   : > { %4244 = vmatpush.bf16.msra.mxu2 %v6240_v57  ;;  %v6927_v57 = vld [vmem:[%s8255_s22 + $0x7a8] sm:$0xf]  ;;  %v7503_v39 = vld [vmem:[%s8255_s22 + $0x494] sm:$0xf0] }
 0x2bd   : > { %v6928_v50 = vor.u32 %v7603_v46, %v6927_v57  ;;  %v7535_v52 = vld [vmem:[%s8255_s22 + $0x594] sm:$0xf0]  ;;  %v6911_v54 = vld [vmem:[%s8255_s22 + $0x788] sm:$0xf] }
 0x2be   : > { %4257 = vmatpush.bf16.msra.mxu3 %v6368_v47  ;;  %4219 = vmatpush.bf16.msra.mxu0 %v5968_v53  ;;  %v6800_v47 = vor.u32 %v7571_v59, %v6799_v7  ;;  %v6783_v53 = vld [vmem:[%s8255_s22 + $0x688] sm:$0xf]  ;;  %v7567_v51 = vld [vmem:[%s8255_s22 + $0x694] sm:$0xf0]  ;;  %v6656_v61 = vor.u32 %v7535_v52, %v6655_v49 }
 0x2bf   : > { %4232 = vmatpush.bf16.msra.mxu1 %v6096_v55  ;;  %v7599_v55 = vld [vmem:[%s8255_s22 + $0x794] sm:$0xf0]  ;;  %v6511_v58 = vld [vmem:[%s8255_s22 + $0x468] sm:$0xf]  ;;  %v6784_v62 = vor.u32 %v7567_v51, %v6783_v53 }
 0x2c0   : > { %4245 = vmatpush.bf16.msra.mxu2 %v6224_v60  ;;  %v6528_v60 = vor.u32 %v7503_v39, %v6527_v48  ;;  %v6639_v63 = vld [vmem:[%s8255_s22 + $0x568] sm:$0xf]  ;;  %v7531_v4 = vld [vmem:[%s8255_s22 + $0x574] sm:$0xf0]  ;;  %v6912_v9 = vor.u32 %v7599_v55, %v6911_v54 }
 0x2c1   : > { %v6767_v10 = vld [vmem:[%s8255_s22 + $0x668] sm:$0xf]  ;;  %v7563_v11 = vld [vmem:[%s8255_s22 + $0x674] sm:$0xf0] }
 0x2c2   : > { %4258 = vmatpush.bf16.msra.mxu3 %v6352_v1  ;;  %4220 = vmatpush.bf16.msra.mxu0 %v5952_v13  ;;  %v7499_v1 = vld [vmem:[%s8255_s22 + $0x474] sm:$0xf0]  ;;  %v6895_v13 = vld [vmem:[%s8255_s22 + $0x768] sm:$0xf]  ;;  %v4014_v34 = vpop.f32.mrf.mxu0 }
 0x2c3   : > { %4233 = vmatpush.bf16.msra.mxu1 %v6080_v17  ;;  %v7595_v14 = vld [vmem:[%s8255_s22 + $0x774] sm:$0xf0]  ;;  %v6512_v15 = vor.u32 %v7499_v1, %v6511_v58  ;;  %v6495_v16 = vld [vmem:[%s8255_s22 + $0x448] sm:$0xf]  ;;  %v6640_v17 = vor.u32 %v7531_v4, %v6639_v63  ;;  %v7385_v58 = vld [vmem:[%s8255_s22 + $0xec] sm:$0xf] }
 0x2c4   : > { %4246 = vmatpush.bf16.msra.mxu2 %v6208_v21  ;;  %v6768_v21 = vor.u32 %v7563_v11, %v6767_v10  ;;  %v7495_v18 = vld [vmem:[%s8255_s22 + $0x454] sm:$0xf0]  ;;  %v6623_v19 = vld [vmem:[%s8255_s22 + $0x548] sm:$0xf]  ;;  %v6193_v63 = vld [vmem:[%s8255_s22 + $0x1f8] sm:$0xf0] }
 0x2c5   : > { %4221 = vmatmul.bf16.vlgmr.msra.gmra.mxu0 %v8447_v2  ;;  %v7559_v25 = vld [vmem:[%s8255_s22 + $0x654] sm:$0xf0]  ;;  %v6879_v28 = vld [vmem:[%s8255_s22 + $0x748] sm:$0xf]  ;;  %v7449_v4 = vld [vmem:[%s8255_s22 + $0x2ec] sm:$0xf] }
 0x2c6   : > { %4259 = vmatpush.bf16.msra.mxu3 %v6336_v20  ;;  %4265 = vmatpush.bf16.msrb.mxu0 %v6576_v22  ;;  %v2689_v20 = vperm.slane %v8744_v12, 0  ;;  %v6896_v22 = vor.u32 %v7595_v14, %v6895_v13  ;;  %v7591_v30 = vld [vmem:[%s8255_s22 + $0x754] sm:$0xf0]  ;;  %v6479_v37 = vld [vmem:[%s8255_s22 + $0x428] sm:$0xf] }
 0x2c7   : > { %4278 = vmatpush.bf16.msrb.mxu1 %v6704_v23  ;;  %4247 = vmatmul.bf16.vlgmr.msra.gmra.mxu2 %v8445_v0  ;;  %v7527_v23 = vld [vmem:[%s8255_s22 + $0x554] sm:$0xf0]  ;;  %v6880_v43 = vor.u32 %v7591_v30, %v6879_v28  ;;  %v6735_v5 = vld [vmem:[%s8255_s22 + $0x628] sm:$0xf]  ;;  %v6177_v28 = vld [vmem:[%s8255_s22 + $0x1d8] sm:$0xf0] }
 0x2c8   : > { %4291 = vmatpush.bf16.msrb.mxu2 %v6832_v56  ;;  %4234 = vmatmul.bf16.vlgmr.msra.gmra.mxu1 %v8451_v8  ;;  %v6751_v56 = vld [vmem:[%s8255_s22 + $0x648] sm:$0xf]  ;;  %v6624_v35 = vor.u32 %v7527_v23, %v6623_v19  ;;  %v7491_v38 = vld [vmem:[%s8255_s22 + $0x434] sm:$0xf0]  ;;  %v6049_v23 = vld [vmem:[%s8255_s22 + $0xd8] sm:$0xf0] }
 0x2c9   : > { %4260 = vmatmul.bf16.vlgmr.msra.gmra.mxu3 %v8449_v3  ;;  %v6752_v36 = vor.u32 %v7559_v25, %v6751_v56  ;;  %v7523_v44 = vld [vmem:[%s8255_s22 + $0x534] sm:$0xf0]  ;;  %v6863_v45 = vld [vmem:[%s8255_s22 + $0x728] sm:$0xf]  ;;  %v6480_v57 = vor.u32 %v7491_v38, %v6479_v37  ;;  %v7413_v56 = vld [vmem:[%s8255_s22 + $0x1cc] sm:$0xf] }
 0x2ca   : > { %4304 = vmatpush.bf16.msrb.mxu3 %v6960_v32  ;;  %4266 = vmatpush.bf16.msrb.mxu0 %v6560_v40  ;;  %v6496_v32 = vor.u32 %v7495_v18, %v6495_v16  ;;  %v6607_v40 = vld [vmem:[%s8255_s22 + $0x528] sm:$0xf]  ;;  %v7587_v7 = vld [vmem:[%s8255_s22 + $0x734] sm:$0xf0]  ;;  %v4016_v11 = vpop.f32.mrf.mxu0  ;;  %v6449_v16 = vld [vmem:[%s8255_s22 + $0x3f8] sm:$0xf0] }
 0x2cb   : > { %4279 = vmatpush.bf16.msrb.mxu1 %v6688_v41  ;;  %v4015_v41 = vadd.f32 %v4014_v34, %v2689_v20  ;;  %v6463_v46 = vld [vmem:[%s8255_s22 + $0x408] sm:$0xf]  ;;  %v7519_v39 = vld [vmem:[%s8255_s22 + $0x514] sm:$0xf0]  ;;  %v6864_v52 = vor.u32 %v7587_v7, %v6863_v45  ;;  %v7445_v30 = vld [vmem:[%s8255_s22 + $0x2cc] sm:$0xf] }
 0x2cc   : > { %4292 = vmatpush.bf16.msrb.mxu2 %v6816_v42  ;;  %v4027_v42 = vpop.f32.mrf.mxu1  ;;  %v6591_v48 = vld [vmem:[%s8255_s22 + $0x508] sm:$0xf]  ;;  %v7551_v53 = vld [vmem:[%s8255_s22 + $0x614] sm:$0xf0]  ;;  %v7477_v34 = vld [vmem:[%s8255_s22 + $0x3cc] sm:$0xf] }
 0x2cd   : > { %v4028_v59 = vadd.f32 %v4027_v42, %v4015_v41  ;;  %v6719_v49 = vld [vmem:[%s8255_s22 + $0x608] sm:$0xf]  ;;  %v7583_v54 = vld [vmem:[%s8255_s22 + $0x714] sm:$0xf0]  ;;  %v6592_v13 = vor.u32 %v7519_v39, %v6591_v48  ;;  %v7377_v42 = vld [vmem:[%s8255_s22 + $0xac] sm:$0xf] }
 0x2ce   : > { %4305 = vmatpush.bf16.msrb.mxu3 %v6944_v33  ;;  %4267 = vmatpush.bf16.msrb.mxu0 %v6544_v31  ;;  %v7555_v33 = vld [vmem:[%s8255_s22 + $0x634] sm:$0xf0]  ;;  %v6847_v51 = vld [vmem:[%s8255_s22 + $0x708] sm:$0xf]  ;;  %v6720_v14 = vor.u32 %v7551_v53, %v6719_v49  ;;  %v7441_v45 = vld [vmem:[%s8255_s22 + $0x2ac] sm:$0xf] }
 0x2cf   : > { %4280 = vmatpush.bf16.msrb.mxu1 %v6672_v6  ;;  %v7487_v31 = vld [vmem:[%s8255_s22 + $0x414] sm:$0xf0]  ;;  %v6608_v6 = vor.u32 %v7523_v44, %v6607_v40  ;;  %v6180_v40 = vor.u32 %v7413_v56, %v6177_v28  ;;  %v7409_v44 = vld [vmem:[%s8255_s22 + $0x1ac] sm:$0xf]  ;;  %v6289_v7 = vld [vmem:[%s8255_s22 + $0x2b8] sm:$0xf0] }
 0x2d0   : > { %4293 = vmatpush.bf16.msrb.mxu2 %v6800_v47  ;;  %v6736_v47 = vor.u32 %v7555_v33, %v6735_v5  ;;  %v6464_v1 = vor.u32 %v7487_v31, %v6463_v46  ;;  %v6161_v33 = vld [vmem:[%s8255_s22 + $0x1b8] sm:$0xf0]  ;;  %v7405_v39 = vld [vmem:[%s8255_s22 + $0x18c] sm:$0xf] }
 0x2d1   : > { %v6164_v31 = vor.u32 %v7409_v44, %v6161_v33  ;;  %v6017_v48 = vld [vmem:[%s8255_s22 + $0x98] sm:$0xf0]  ;;  %v7361_v44 = vld [vmem:[%s8255_s22 + $0x2c] sm:$0xf] }
 0x2d2   : > { %4306 = vmatpush.bf16.msrb.mxu3 %v6928_v50  ;;  %4268 = vmatpush.bf16.msrb.mxu0 %v6528_v60  ;;  %v4040_v50 = vpop.f32.mrf.mxu2  ;;  %v4053_v60 = vpop.f32.mrf.mxu3  ;;  %v6273_v53 = vld [vmem:[%s8255_s22 + $0x298] sm:$0xf0]  ;;  %v7393_v33 = vld [vmem:[%s8255_s22 + $0x12c] sm:$0xf] }
 0x2d3   : > { %4281 = vmatpush.bf16.msrb.mxu1 %v6656_v61  ;;  %v4041_v55 = vadd.f32 %v4040_v50, %v4028_v59  ;;  %v6065_v61 = vld [vmem:[%s8255_s22 + $0xf8] sm:$0xf0]  ;;  %v7473_v59 = vld [vmem:[%s8255_s22 + $0x3ac] sm:$0xf] }
 0x2d4   : > { %4294 = vmatpush.bf16.msrb.mxu2 %v6784_v62  ;;  %v7417_v62 = vld [vmem:[%s8255_s22 + $0x1ec] sm:$0xf]  ;;  %v6068_v18 = vor.u32 %v7385_v58, %v6065_v61  ;;  %v6145_v50 = vld [vmem:[%s8255_s22 + $0x198] sm:$0xf0] }
 0x2d5   : > { %v8779_v10 = vadd.f32 %v4053_v60, %v4041_v55  ;;  %v6196_v19 = vor.u32 %v7417_v62, %v6193_v63  ;;  %v6148_v58 = vor.u32 %v7405_v39, %v6145_v50  ;;  %v7369_v62 = vld [vmem:[%s8255_s22 + $0x6c] sm:$0xf]  ;;  %v6113_v28 = vld [vmem:[%s8255_s22 + $0x158] sm:$0xf0] }
 0x2d6   : > { %4307 = vmatpush.bf16.msrb.mxu3 %v6912_v9  ;;  %4269 = vmatpush.bf16.msrb.mxu0 %v6512_v15  ;;  %v6321_v9 = vld [vmem:[%s8255_s22 + $0x2f8] sm:$0xf0]  ;;  %v7481_v15 = vld [vmem:[%s8255_s22 + $0x3ec] sm:$0xf] }
 0x2d7   : > { %4282 = vmatpush.bf16.msrb.mxu1 %v6640_v17  ;;  %v4029_v17 = vpop.f32.mrf.mxu1  ;;  %v6324_v20 = vor.u32 %v7449_v4, %v6321_v9  ;;  %v6452_v25 = vor.u32 %v7481_v15, %v6449_v16  ;;  %v7401_v63 = vld [vmem:[%s8255_s22 + $0x16c] sm:$0xf]  ;;  %v6257_v15 = vld [vmem:[%s8255_s22 + $0x278] sm:$0xf0] }
 0x2d8   : > { %4295 = vmatpush.bf16.msrb.mxu2 %v6768_v21  ;;  %v6848_v21 = vor.u32 %v7583_v54, %v6847_v51  ;;  %v7469_v51 = vld [vmem:[%s8255_s22 + $0x38c] sm:$0xf]  ;;  %v6401_v54 = vld [vmem:[%s8255_s22 + $0x398] sm:$0xf0] }
 0x2d9   : > { %v6404_v11 = vor.u32 %v7469_v51, %v6401_v54  ;;  %v7465_v16 = vld [vmem:[%s8255_s22 + $0x36c] sm:$0xf]  ;;  %v6385_v17 = vld [vmem:[%s8255_s22 + $0x378] sm:$0xf0] }
 0x2da   : > { %4308 = vmatpush.bf16.msrb.mxu3 %v6896_v22  ;;  %4270 = vmatpush.bf16.msrb.mxu0 %v6496_v32  ;;  %v7381_v22 = vld [vmem:[%s8255_s22 + $0xcc] sm:$0xf]  ;;  %v6305_v32 = vld [vmem:[%s8255_s22 + $0x2d8] sm:$0xf0]  ;;  %v4055_v38 = vpop.f32.mrf.mxu3 }
 0x2db   : > { %4283 = vmatpush.bf16.msrb.mxu1 %v6624_v35  ;;  %v6433_v35 = vld [vmem:[%s8255_s22 + $0x3d8] sm:$0xf0]  ;;  %v6052_v37 = vor.u32 %v7381_v22, %v6049_v23  ;;  %v6308_v41 = vor.u32 %v7445_v30, %v6305_v32  ;;  %v7397_v23 = vld [vmem:[%s8255_s22 + $0x14c] sm:$0xf] }
 0x2dc   : > { %4296 = vmatpush.bf16.msrb.mxu2 %v6752_v36  ;;  %v4042_v36 = vpop.f32.mrf.mxu2  ;;  %v6436_v5 = vor.u32 %v7477_v34, %v6433_v35  ;;  %v5985_v22 = vld [vmem:[%s8255_s22 + $0x58] sm:$0xf0]  ;;  %v7429_v30 = vld [vmem:[%s8255_s22 + $0x24c] sm:$0xf] }
 0x2dd   : > { %v6241_v32 = vld [vmem:[%s8255_s22 + $0x258] sm:$0xf0]  ;;  %v7461_v36 = vld [vmem:[%s8255_s22 + $0x34c] sm:$0xf] }
 0x2de   : > { %4309 = vmatpush.bf16.msrb.mxu3 %v6880_v43  ;;  %4271 = vmatpush.bf16.msrb.mxu0 %v6480_v57  ;;  %v6033_v43 = vld [vmem:[%s8255_s22 + $0xb8] sm:$0xf0]  ;;  %v7421_v51 = vld [vmem:[%s8255_s22 + $0x20c] sm:$0xf] }
 0x2df   : > { %4284 = vmatpush.bf16.msrb.mxu1 %v6608_v6  ;;  %v6417_v57 = vld [vmem:[%s8255_s22 + $0x3b8] sm:$0xf0]  ;;  %v6036_v46 = vor.u32 %v7377_v42, %v6033_v43  ;;  %v6292_v6 = vor.u32 %v7441_v45, %v6289_v7  ;;  %v6116_v42 = vor.u32 %v7397_v23, %v6113_v28  ;;  %v6244_v43 = vor.u32 %v7429_v30, %v6241_v32  ;;  %v7573_v30 = vld [vmem:[%s8255_s22 + $0x6cc] sm:$0xf] }
 0x2e0   : > { %4297 = vmatpush.bf16.msrb.mxu2 %v6736_v47  ;;  %v7373_v47 = vld [vmem:[%s8255_s22 + $0x8c] sm:$0xf]  ;;  %v6420_v49 = vor.u32 %v7473_v59, %v6417_v57  ;;  %v6097_v59 = vld [vmem:[%s8255_s22 + $0x138] sm:$0xf0] }
 0x2e1   : > { %v6020_v55 = vor.u32 %v7373_v47, %v6017_v48  ;;  %v7425_v57 = vld [vmem:[%s8255_s22 + $0x22c] sm:$0xf]  ;;  %v5953_v39 = vld [vmem:[%s8255_s22 + $0x18] sm:$0xf0] }
 0x2e2   : > { %4310 = vmatpush.bf16.msrb.mxu3 %v6864_v52  ;;  %4272 = vmatpush.bf16.msrb.mxu0 %v6464_v1  ;;  %v7437_v52 = vld [vmem:[%s8255_s22 + $0x28c] sm:$0xf]  ;;  %v6001_v1 = vld [vmem:[%s8255_s22 + $0x78] sm:$0xf0] }
 0x2e3   : > { %4285 = vmatpush.bf16.msrb.mxu1 %v6592_v13  ;;  %v6276_v61 = vor.u32 %v7437_v52, %v6273_v53  ;;  %v6129_v13 = vld [vmem:[%s8255_s22 + $0x178] sm:$0xf0]  ;;  %v7357_v48 = vld [vmem:[%s8255_s22 + $0xc] sm:$0xf] }
 0x2e4   : > { %4298 = vmatpush.bf16.msrb.mxu2 %v6720_v14  ;;  %v7433_v14 = vld [vmem:[%s8255_s22 + $0x26c] sm:$0xf]  ;;  %v6081_v53 = vld [vmem:[%s8255_s22 + $0x118] sm:$0xf0] }
 0x2e5   : > { %4273 = vmatmul.bf16.vlgmr.msrb.gmra.mxu0 %v8507_v26  ;;  %v4066_v60 = vpop.f32.mrf.mxu0  ;;  %v7389_v52 = vld [vmem:[%s8255_s22 + $0x10c] sm:$0xf]  ;;  %v6561_v23 = vld [vmem:[%s8255_s22 + $0x4d8] sm:$0xf0] }
 0x2e6   : > { %4311 = vmatpush.bf16.msrb.mxu3 %v6848_v21  ;;  %4317 = vmatpush.bf16.msra.mxu0 %v6068_v18  ;;  %v4067_v4 = vadd.f32 %v4066_v60, %v8779_v10  ;;  %v4079_v9 = vpop.f32.mrf.mxu1  ;;  %v6004_v18 = vor.u32 %v7369_v62, %v6001_v1  ;;  %v6132_v10 = vor.u32 %v7401_v63, %v6129_v13  ;;  %v6209_v60 = vld [vmem:[%s8255_s22 + $0x218] sm:$0xf0]  ;;  %v7513_v1 = vld [vmem:[%s8255_s22 + $0x4ec] sm:$0xf] }
 0x2e7   : > { %4330 = vmatpush.bf16.msra.mxu1 %v6196_v19  ;;  %4299 = vmatmul.bf16.vlgmr.msrb.gmra.mxu2 %v8503_v24  ;;  %v6260_v19 = vor.u32 %v7433_v14, %v6257_v15  ;;  %v6577_v63 = vld [vmem:[%s8255_s22 + $0x4f8] sm:$0xf0]  ;;  %v7577_v13 = vld [vmem:[%s8255_s22 + $0x6ec] sm:$0xf]  ;;  %v6084_v15 = vor.u32 %v7389_v52, %v6081_v53 }
 0x2e8   : > { %4343 = vmatpush.bf16.msra.mxu2 %v6324_v20  ;;  %4286 = vmatmul.bf16.vlgmr.msrb.gmra.mxu1 %v8511_v29  ;;  %v4080_v21 = vadd.f32 %v4079_v9, %v4067_v4  ;;  %v7365_v20 = vld [vmem:[%s8255_s22 + $0x4c] sm:$0xf]  ;;  %v5956_v9 = vor.u32 %v7357_v48, %v5953_v39  ;;  %v6833_v14 = vld [vmem:[%s8255_s22 + $0x6f8] sm:$0xf0] }
 0x2e9   : > { %4312 = vmatmul.bf16.vlgmr.msrb.gmra.mxu3 %v8509_v27  ;;  %v5988_v38 = vor.u32 %v7365_v20, %v5985_v22  ;;  %v7545_v4 = vld [vmem:[%s8255_s22 + $0x5ec] sm:$0xf]  ;;  %v6836_v20 = vor.u32 %v7577_v13, %v6833_v14  ;;  %v6689_v28 = vld [vmem:[%s8255_s22 + $0x5d8] sm:$0xf0] }
 0x2ea   : > { %4356 = vmatpush.bf16.msra.mxu3 %v6452_v25  ;;  %4318 = vmatpush.bf16.msra.mxu0 %v6052_v37  ;;  %v4092_v56 = vpop.f32.mrf.mxu2  ;;  %v6388_v25 = vor.u32 %v7465_v16, %v6385_v17  ;;  %v6369_v37 = vld [vmem:[%s8255_s22 + $0x358] sm:$0xf0]  ;;  %v6212_v16 = vor.u32 %v7421_v51, %v6209_v60  ;;  %v7609_v17 = vld [vmem:[%s8255_s22 + $0x7ec] sm:$0xf] }
 0x2eb   : > { %4331 = vmatpush.bf16.msra.mxu1 %v6180_v40  ;;  %v4093_v34 = vadd.f32 %v4092_v56, %v4080_v21  ;;  %v6372_v7 = vor.u32 %v7461_v36, %v6369_v37  ;;  %v6961_v21 = vld [vmem:[%s8255_s22 + $0x7f8] sm:$0xf0]  ;;  %v7509_v22 = vld [vmem:[%s8255_s22 + $0x4cc] sm:$0xf] }
 0x2ec   : > { %4344 = vmatpush.bf16.msra.mxu2 %v6308_v41  ;;  %v4105_v35 = vpop.f32.mrf.mxu3  ;;  %v7541_v56 = vld [vmem:[%s8255_s22 + $0x5cc] sm:$0xf]  ;;  %v6817_v32 = vld [vmem:[%s8255_s22 + $0x6d8] sm:$0xf0]  ;;  %v6564_v36 = vor.u32 %v7509_v22, %v6561_v23 }
 0x2ed   : > { %v8828_v40 = vadd.f32 %v4105_v35, %v4093_v34  ;;  %v4068_v41 = vpop.f32.mrf.mxu0  ;;  %v7605_v34 = vld [vmem:[%s8255_s22 + $0x7cc] sm:$0xf]  ;;  %v6945_v35 = vld [vmem:[%s8255_s22 + $0x7d8] sm:$0xf0]  ;;  %v6692_v37 = vor.u32 %v7541_v56, %v6689_v28 }
 0x2ee   : > { %4357 = vmatpush.bf16.msra.mxu3 %v6436_v5  ;;  %4319 = vmatpush.bf16.msra.mxu0 %v6036_v46  ;;  %v5969_v5 = vld [vmem:[%s8255_s22 + $0x38] sm:$0xf0]  ;;  %v4081_v45 = vpop.f32.mrf.mxu1  ;;  %v7505_v41 = vld [vmem:[%s8255_s22 + $0x4ac] sm:$0xf] }
 0x2ef   : > { %4332 = vmatpush.bf16.msra.mxu1 %v6164_v31  ;;  %v6225_v46 = vld [vmem:[%s8255_s22 + $0x238] sm:$0xf0]  ;;  %v7457_v31 = vld [vmem:[%s8255_s22 + $0x32c] sm:$0xf]  ;;  %v5972_v47 = vor.u32 %v7361_v44, %v5969_v5  ;;  %v6948_v44 = vor.u32 %v7605_v34, %v6945_v35 }
 0x2f0   : > { %4345 = vmatpush.bf16.msra.mxu2 %v6292_v6  ;;  %v6353_v6 = vld [vmem:[%s8255_s22 + $0x338] sm:$0xf0]  ;;  %v6228_v50 = vor.u32 %v7425_v57, %v6225_v46  ;;  %v7529_v60 = vld [vmem:[%s8255_s22 + $0x56c] sm:$0xf] }
 0x2f1   : > { %v6673_v5 = vld [vmem:[%s8255_s22 + $0x5b8] sm:$0xf0]  ;;  %v7589_v23 = vld [vmem:[%s8255_s22 + $0x74c] sm:$0xf] }
 0x2f2   : > { %4358 = vmatpush.bf16.msra.mxu3 %v6420_v49  ;;  %4320 = vmatpush.bf16.msra.mxu0 %v6020_v55  ;;  %v6100_v49 = vor.u32 %v7393_v33, %v6097_v59  ;;  %v4094_v54 = vpop.f32.mrf.mxu2  ;;  %v6356_v55 = vor.u32 %v7457_v31, %v6353_v6  ;;  %v7569_v33 = vld [vmem:[%s8255_s22 + $0x6ac] sm:$0xf]  ;;  %v6801_v45 = vld [vmem:[%s8255_s22 + $0x6b8] sm:$0xf0] }
 0x2f3   : > { %4333 = vmatpush.bf16.msra.mxu1 %v6148_v58  ;;  %v7453_v58 = vld [vmem:[%s8255_s22 + $0x30c] sm:$0xf]  ;;  %v6929_v59 = vld [vmem:[%s8255_s22 + $0x7b8] sm:$0xf0]  ;;  %v6804_v46 = vor.u32 %v7569_v33, %v6801_v45  ;;  %v2690_v33 = vperm.slane %v8744_v12, 1 }
 0x2f4   : > { %4346 = vmatpush.bf16.msra.mxu2 %v6276_v61  ;;  %v6337_v61 = vld [vmem:[%s8255_s22 + $0x318] sm:$0xf0]  ;;  %v4107_v62 = vpop.f32.mrf.mxu3  ;;  %v7501_v31 = vld [vmem:[%s8255_s22 + $0x48c] sm:$0xf] }
 0x2f5   : > { %v6529_v6 = vld [vmem:[%s8255_s22 + $0x498] sm:$0xf0]  ;;  %v7497_v54 = vld [vmem:[%s8255_s22 + $0x46c] sm:$0xf] }
 0x2f6   : > { %4359 = vmatpush.bf16.msra.mxu3 %v6404_v11  ;;  %4321 = vmatpush.bf16.msra.mxu0 %v6004_v18  ;;  %v6705_v11 = vld [vmem:[%s8255_s22 + $0x5f8] sm:$0xf0]  ;;  %v6340_v18 = vor.u32 %v7453_v58, %v6337_v61  ;;  %v7489_v34 = vld [vmem:[%s8255_s22 + $0x42c] sm:$0xf] }
 0x2f7   : > { %4334 = vmatpush.bf16.msra.mxu1 %v6132_v10  ;;  %v6580_v10 = vor.u32 %v7513_v1, %v6577_v63  ;;  %v6657_v48 = vld [vmem:[%s8255_s22 + $0x598] sm:$0xf0]  ;;  %v7561_v1 = vld [vmem:[%s8255_s22 + $0x66c] sm:$0xf] }
 0x2f8   : > { %4347 = vmatpush.bf16.msra.mxu2 %v6260_v19  ;;  %v6708_v19 = vor.u32 %v7545_v4, %v6705_v11  ;;  %v6785_v39 = vld [vmem:[%s8255_s22 + $0x698] sm:$0xf0]  ;;  %v7593_v4 = vld [vmem:[%s8255_s22 + $0x76c] sm:$0xf] }
 0x2f9   : > { %v6641_v62 = vld [vmem:[%s8255_s22 + $0x578] sm:$0xf0] }
 0x2fa   : > { %4360 = vmatpush.bf16.msra.mxu3 %v6388_v25  ;;  %4322 = vmatpush.bf16.msra.mxu0 %v5988_v38  ;;  %v6964_v25 = vor.u32 %v7609_v17, %v6961_v21  ;;  %v6820_v38 = vor.u32 %v7573_v30, %v6817_v32  ;;  %v6769_v63 = vld [vmem:[%s8255_s22 + $0x678] sm:$0xf0]  ;;  %v6644_v13 = vor.u32 %v7529_v60, %v6641_v62  ;;  %v7525_v17 = vld [vmem:[%s8255_s22 + $0x54c] sm:$0xf]  ;;  %v7627_v60 = vld [vmem:[%s8263_s18 + $0x78] sm:$0xff] }
 0x2fb   : > { %4335 = vmatpush.bf16.msra.mxu1 %v6116_v42  ;;  %v6545_v42 = vld [vmem:[%s8255_s22 + $0x4b8] sm:$0xf0]  ;;  %v6772_v14 = vor.u32 %v7561_v1, %v6769_v63  ;;  %v7635_v62 = vld [vmem:[%s8263_s18 + $0xb8] sm:$0xff] }
 0x2fc   : > { %4348 = vmatpush.bf16.msra.mxu2 %v6244_v43  ;;  %v7537_v43 = vld [vmem:[%s8255_s22 + $0x5ac] sm:$0xf]  ;;  %v6548_v57 = vor.u32 %v7505_v41, %v6545_v42  ;;  %v6881_v56 = vld [vmem:[%s8255_s22 + $0x758] sm:$0xf0] }
 0x2fd   : > { %v6481_v35 = vld [vmem:[%s8255_s22 + $0x438] sm:$0xf0]  ;;  %v7553_v42 = vld [vmem:[%s8255_s22 + $0x62c] sm:$0xf] }
 0x2fe   : > { %4361 = vmatpush.bf16.msra.mxu3 %v6372_v7  ;;  %4323 = vmatpush.bf16.msra.mxu0 %v5972_v47  ;;  %v7601_v7 = vld [vmem:[%s8255_s22 + $0x7ac] sm:$0xf]  ;;  %v6609_v41 = vld [vmem:[%s8255_s22 + $0x538] sm:$0xf0]  ;;  %v6484_v45 = vor.u32 %v7489_v34, %v6481_v35 }
 0x2ff   : > { %4336 = vmatpush.bf16.msra.mxu1 %v6100_v49  ;;  %v7533_v47 = vld [vmem:[%s8255_s22 + $0x58c] sm:$0xf]  ;;  %v7626_v1 = vld [vmem:[%s8263_s18 + $0x70] sm:$0xff] }
 0x300   : > { %4349 = vmatpush.bf16.msra.mxu2 %v6228_v50  ;;  %v7597_v49 = vld [vmem:[%s8255_s22 + $0x78c] sm:$0xf]  ;;  %v6913_v50 = vld [vmem:[%s8255_s22 + $0x798] sm:$0xf0]  ;;  %v6660_v53 = vor.u32 %v7533_v47, %v6657_v48 }
 0x301   : > { %v6916_v61 = vor.u32 %v7597_v49, %v6913_v50  ;;  %v6593_v47 = vld [vmem:[%s8255_s22 + $0x518] sm:$0xf0] }
 0x302   : > { %4362 = vmatpush.bf16.msra.mxu3 %v6356_v55  ;;  %4324 = vmatpush.bf16.msra.mxu0 %v5956_v9  ;;  %v8882_v52 = vpop.f32.mrf.mxu0  ;;  %v6513_v55 = vld [vmem:[%s8255_s22 + $0x478] sm:$0xf0] }
 0x303   : > { %4337 = vmatpush.bf16.msra.mxu1 %v6084_v15  ;;  %v6897_v9 = vld [vmem:[%s8255_s22 + $0x778] sm:$0xf0]  ;;  %v6516_v11 = vor.u32 %v7497_v54, %v6513_v55  ;;  %v7493_v15 = vld [vmem:[%s8255_s22 + $0x44c] sm:$0xf]  ;;  %v4119_v50 = vadd.f32 %v8882_v52, %v2690_v33  ;;  %v7619_v55 = vld [vmem:[%s8263_s18 + $0x38] sm:$0xff] }
 0x304   : > { %4350 = vmatpush.bf16.msra.mxu2 %v6212_v16  ;;  %v6497_v16 = vld [vmem:[%s8255_s22 + $0x458] sm:$0xf0] }
 0x305   : > { %4325 = vmatmul.bf16.vlgmr.msra.gmra.mxu0 %v8447_v2  ;;  %v6932_v2 = vor.u32 %v7601_v7, %v6929_v59  ;;  %v8887_v58 = vpop.f32.mrf.mxu1  ;;  %v6721_v48 = vld [vmem:[%s8255_s22 + $0x618] sm:$0xf0] }
 0x306   : > { %4363 = vmatpush.bf16.msra.mxu3 %v6340_v18  ;;  %4369 = vmatpush.bf16.msrb.mxu0 %v6580_v10  ;;  %v6900_v18 = vor.u32 %v7593_v4, %v6897_v9  ;;  %v6625_v10 = vld [vmem:[%s8255_s22 + $0x558] sm:$0xf0]  ;;  %v7616_v9 = vld [vmem:[%s8263_s18 + $0x20] sm:$0xff] }
 0x307   : > { %4382 = vmatpush.bf16.msrb.mxu1 %v6708_v19  ;;  %4351 = vmatmul.bf16.vlgmr.msra.gmra.mxu2 %v8445_v0  ;;  %v6676_v0 = vor.u32 %v7537_v43, %v6673_v5  ;;  %v7557_v19 = vld [vmem:[%s8255_s22 + $0x64c] sm:$0xf]  ;;  %v6628_v30 = vor.u32 %v7525_v17, %v6625_v10  ;;  %v6737_v43 = vld [vmem:[%s8255_s22 + $0x638] sm:$0xf0] }
 0x308   : > { %4395 = vmatpush.bf16.msrb.mxu2 %v6836_v20  ;;  %4338 = vmatmul.bf16.vlgmr.msra.gmra.mxu1 %v8451_v8  ;;  %v6532_v8 = vor.u32 %v7501_v31, %v6529_v6  ;;  %v6753_v20 = vld [vmem:[%s8255_s22 + $0x658] sm:$0xf0]  ;;  %v6740_v59 = vor.u32 %v7553_v42, %v6737_v43 }
 0x309   : > { %4364 = vmatmul.bf16.vlgmr.msra.gmra.mxu3 %v8449_v3  ;;  %v7565_v3 = vld [vmem:[%s8255_s22 + $0x68c] sm:$0xf]  ;;  %v6756_v32 = vor.u32 %v7557_v19, %v6753_v20  ;;  %v6865_v5 = vld [vmem:[%s8255_s22 + $0x738] sm:$0xf0] }
 0x30a   : > { %4408 = vmatpush.bf16.msrb.mxu3 %v6964_v25  ;;  %4370 = vmatpush.bf16.msrb.mxu0 %v6564_v36  ;;  %v6788_v51 = vor.u32 %v7565_v3, %v6785_v39  ;;  %v8897_v21 = vpop.f32.mrf.mxu2  ;;  %v6500_v25 = vor.u32 %v7493_v15, %v6497_v16  ;;  %v4120_v28 = vpop.f32.mrf.mxu0  ;;  %v7521_v36 = vld [vmem:[%s8255_s22 + $0x52c] sm:$0xf]  ;;  %v6849_v49 = vld [vmem:[%s8255_s22 + $0x718] sm:$0xf0]  ;;  %v7623_v16 = vld [vmem:[%s8263_s18 + $0x58] sm:$0xff] }
 0x30b   : > { %4383 = vmatpush.bf16.msrb.mxu1 %v6692_v37  ;;  %v6612_v7 = vor.u32 %v7521_v36, %v6609_v41  ;;  %v7581_v39 = vld [vmem:[%s8255_s22 + $0x70c] sm:$0xf]  ;;  %v7618_v52 = vld [vmem:[%s8263_s18 + $0x30] sm:$0xff]  ;;  %v7613_v28 = vld [vmem:[%s8263_s18 + $0x8] sm:$0xff] }
 0x30c   : > { %4396 = vmatpush.bf16.msrb.mxu2 %v6820_v38  ;;  %v8902_v22 = vpop.f32.mrf.mxu3  ;;  %v6884_v38 = vor.u32 %v7589_v23, %v6881_v56  ;;  %v6852_v54 = vor.u32 %v7581_v39, %v6849_v49  ;;  %v7614_v10 = vld [vmem:[%s8263_s18 + $0x10] sm:$0xff]  ;;  %v7620_v41 = vld [vmem:[%s8263_s18 + $0x40] sm:$0xff] }
 0x30d   : > { %v4133_v37 = vpop.f32.mrf.mxu1  ;;  %v7622_v23 = vld [vmem:[%s8263_s18 + $0x50] sm:$0xff] }
 0x30e   : > { %4409 = vmatpush.bf16.msrb.mxu3 %v6948_v44  ;;  %4371 = vmatpush.bf16.msrb.mxu0 %v6548_v57  ;;  %v7585_v44 = vld [vmem:[%s8255_s22 + $0x72c] sm:$0xf]  ;;  %v7630_v33 = vld [vmem:[%s8263_s18 + $0x90] sm:$0xff] }
 0x30f   : > { %4384 = vmatpush.bf16.msrb.mxu1 %v6676_v0  ;;  %v7485_v57 = vld [vmem:[%s8255_s22 + $0x40c] sm:$0xf]  ;;  %v6465_v0 = vld [vmem:[%s8255_s22 + $0x418] sm:$0xf0]  ;;  %v6868_v6 = vor.u32 %v7585_v44, %v6865_v5 }
 0x310   : > { %4397 = vmatpush.bf16.msrb.mxu2 %v6804_v46  ;;  %v7517_v46 = vld [vmem:[%s8255_s22 + $0x50c] sm:$0xf] }
 0x311   : > { %v7612_v37 = vld [vmem:[%s8263_s18] sm:$0xff] }
 0x312   : > { %4410 = vmatpush.bf16.msrb.mxu3 %v6932_v2  ;;  %4372 = vmatpush.bf16.msrb.mxu0 %v6532_v8  ;;  %v4146_v31 = vpop.f32.mrf.mxu2  ;;  %v7549_v2 = vld [vmem:[%s8255_s22 + $0x60c] sm:$0xf]  ;;  %v6468_v8 = vor.u32 %v7485_v57, %v6465_v0 }
 0x313   : > { %4385 = vmatpush.bf16.msrb.mxu1 %v6660_v53  ;;  %v6596_v53 = vor.u32 %v7517_v46, %v6593_v47  ;;  %v2691_v46 = vperm.slane %v8744_v12, 2 }
 0x314   : > { %4398 = vmatpush.bf16.msrb.mxu2 %v6788_v51  ;;  %v4159_v3 = vpop.f32.mrf.mxu3  ;;  %v6724_v51 = vor.u32 %v7549_v2, %v6721_v48 }
 0x316   : > { %4411 = vmatpush.bf16.msrb.mxu3 %v6916_v61  ;;  %4373 = vmatpush.bf16.msrb.mxu0 %v6516_v11  ;;  %v4132_v61 = vadd.f32 %v8887_v58, %v4119_v50  ;;  %v7617_v58 = vld [vmem:[%s8263_s18 + $0x28] sm:$0xff] }
 0x317   : > { %4386 = vmatpush.bf16.msrb.mxu1 %v6644_v13 }
 0x318   : > { %4399 = vmatpush.bf16.msrb.mxu2 %v6772_v14  ;;  %v4145_v63 = vadd.f32 %v8897_v21, %v4132_v61  ;;  %v7615_v14 = vld [vmem:[%s8263_s18 + $0x18] sm:$0xff] }
 0x31a   : > { %4412 = vmatpush.bf16.msrb.mxu3 %v6900_v18  ;;  %4374 = vmatpush.bf16.msrb.mxu0 %v6500_v25  ;;  %v4158_v4 = vadd.f32 %v8902_v22, %v4145_v63  ;;  %v7633_v18 = vld [vmem:[%s8263_s18 + $0xa8] sm:$0xff]  ;;  %v7632_v22 = vld [vmem:[%s8263_s18 + $0xa0] sm:$0xff] }
 0x31b   : > { %4387 = vmatpush.bf16.msrb.mxu1 %v6628_v30  ;;  %v7631_v30 = vld [vmem:[%s8263_s18 + $0x98] sm:$0xff] }
 0x31c   : > { %4400 = vmatpush.bf16.msrb.mxu2 %v6756_v32  ;;  %v7621_v32 = vld [vmem:[%s8263_s18 + $0x48] sm:$0xff] }
 0x31e   : > { %4413 = vmatpush.bf16.msrb.mxu3 %v6884_v38  ;;  %4375 = vmatpush.bf16.msrb.mxu0 %v6484_v45  ;;  %v4421_v38 = vmax.f32 %v8828_v40, 0.0  ;;  %v7628_v40 = vld [vmem:[%s8263_s18 + $0x80] sm:$0xff] }
 0x31f   : > { %4388 = vmatpush.bf16.msrb.mxu1 %v6612_v7 }
 0x320   : > { %4401 = vmatpush.bf16.msrb.mxu2 %v6740_v59  ;;  %v4426_v43 = vpack.c.bf16 %v4421_v38, %v4421_v38  ;;  %v7629_v59 = vld [vmem:[%s8263_s18 + $0x88] sm:$0xff] }
 0x322   : > { %4414 = vmatpush.bf16.msrb.mxu3 %v6868_v6  ;;  %4376 = vmatpush.bf16.msrb.mxu0 %v6468_v8  ;;  %v4170_v11 = vpop.f32.mrf.mxu0 }
 0x323   : > { %4389 = vmatpush.bf16.msrb.mxu1 %v6596_v53  ;;  %v4171_v13 = vadd.f32 %v4170_v11, %v4158_v4  ;;  %v7639_v11 = vld [vmem:[%s8263_s18 + $0xd8] sm:$0xff] }
 0x324   : > { %4402 = vmatpush.bf16.msrb.mxu2 %v6724_v51 }
 0x325   : > { %4377 = vmatmul.bf16.vlgmr.msrb.gmra.mxu0 %v8507_v26  ;;  %v7625_v26 = vld [vmem:[%s8263_s18 + $0x68] sm:$0xff] }
 0x326   : > { %4415 = vmatpush.bf16.msrb.mxu3 %v6852_v54  ;;  %4686 = vmatpush.bf16.msra.mxu0 %v7619_v55  ;;  %v7643_v55 = vld [vmem:[%s8263_s18 + $0xf8] sm:$0xff] }
 0x327   : > { %4699 = vmatpush.bf16.msra.mxu1 %v7627_v60  ;;  %4403 = vmatmul.bf16.vlgmr.msrb.gmra.mxu2 %v8503_v24  ;;  %v4183_v24 = vpop.f32.mrf.mxu1 }
 0x328   : > { %4390 = vmatmul.bf16.vlgmr.msrb.gmra.mxu1 %v8511_v29  ;;  %4712 = vmatpush.bf16.msra.mxu2 %v7635_v62  ;;  %v7624_v29 = vld [vmem:[%s8263_s18 + $0x60] sm:$0xff]  ;;  %v4184_v15 = vadd.f32 %v4183_v24, %v4171_v13 }
 0x329   : > { %4416 = vmatmul.bf16.vlgmr.msrb.gmra.mxu3 %v8509_v27  ;;  %v7634_v27 = vld [vmem:[%s8263_s18 + $0xb0] sm:$0xff] }
 0x32a   : > { %4687 = vmatpush.bf16.msra.mxu0 %v7618_v52  ;;  %v4196_v17 = vpop.f32.mrf.mxu2  ;;  %v4172_v20 = vpop.f32.mrf.mxu0  ;;  %4725 = vmatpush.bf16.msra.mxu3 %v7643_v55  ;;  %v7642_v52 = vld [vmem:[%s8263_s18 + $0xf0] sm:$0xff] }
 0x32b   : > { %4700 = vmatpush.bf16.msra.mxu1 %v7626_v1  ;;  %v4197_v19 = vadd.f32 %v4196_v17, %v4184_v15  ;;  %v7636_v17 = vld [vmem:[%s8263_s18 + $0xc0] sm:$0xff] }
 0x32c   : > { %4713 = vmatpush.bf16.msra.mxu2 %v7634_v27  ;;  %v4209_v21 = vpop.f32.mrf.mxu3  ;;  %v7637_v27 = vld [vmem:[%s8263_s18 + $0xc8] sm:$0xff] }
 0x32d   : > { %v4210_v25 = vadd.f32 %v4209_v21, %v4197_v19 }
 0x32e   : > { %4688 = vmatpush.bf16.msra.mxu0 %v7617_v58  ;;  %4726 = vmatpush.bf16.msra.mxu3 %v7642_v52  ;;  %v7641_v58 = vld [vmem:[%s8263_s18 + $0xe8] sm:$0xff] }
 0x32f   : > { %4701 = vmatpush.bf16.msra.mxu1 %v7625_v26  ;;  %v4185_v56 = vpop.f32.mrf.mxu1  ;;  %v4422_v36 = vmax.f32 %v4210_v25, 0.0 }
 0x330   : > { %4714 = vmatpush.bf16.msra.mxu2 %v7633_v18  ;;  %v2692_v18 = vperm.slane %v8744_v12, 3 }
 0x331   : > { %v4427_v42 = vpack.c.bf16 %v4422_v36, %v4422_v36 }
 0x332   : > { %4689 = vmatpush.bf16.msra.mxu0 %v7616_v9  ;;  %v4198_v34 = vpop.f32.mrf.mxu2  ;;  %4727 = vmatpush.bf16.msra.mxu3 %v7641_v58  ;;  %v7640_v9 = vld [vmem:[%s8263_s18 + $0xe0] sm:$0xff] }
 0x333   : > { %4702 = vmatpush.bf16.msra.mxu1 %v7624_v29  ;;  %v7638_v29 = vld [vmem:[%s8263_s18 + $0xd0] sm:$0xff] }
 0x334   : > { %4715 = vmatpush.bf16.msra.mxu2 %v7632_v22  ;;  %v4211_v35 = vpop.f32.mrf.mxu3 }
 0x336   : > { %4690 = vmatpush.bf16.msra.mxu0 %v7615_v14  ;;  %4728 = vmatpush.bf16.msra.mxu3 %v7640_v9 }
 0x337   : > { %4703 = vmatpush.bf16.msra.mxu1 %v7623_v16 }
 0x338   : > { %4716 = vmatpush.bf16.msra.mxu2 %v7631_v30 }
 0x33a   : > { %4691 = vmatpush.bf16.msra.mxu0 %v7614_v10  ;;  %4729 = vmatpush.bf16.msra.mxu3 %v7639_v11 }
 0x33b   : > { %4704 = vmatpush.bf16.msra.mxu1 %v7622_v23 }
 0x33c   : > { %4717 = vmatpush.bf16.msra.mxu2 %v7630_v33 }
 0x33e   : > { %4692 = vmatpush.bf16.msra.mxu0 %v7613_v28  ;;  %4730 = vmatpush.bf16.msra.mxu3 %v7638_v29 }
 0x33f   : > { %4705 = vmatpush.bf16.msra.mxu1 %v7621_v32 }
 0x340   : > { %4718 = vmatpush.bf16.msra.mxu2 %v7629_v59 }
 0x342   : > { %4693 = vmatpush.bf16.msra.mxu0 %v7612_v37  ;;  %v4222_v44 = vpop.f32.mrf.mxu0  ;;  %4731 = vmatpush.bf16.msra.mxu3 %v7637_v27 }
 0x343   : > { %4706 = vmatpush.bf16.msra.mxu1 %v7620_v41  ;;  %v4223_v47 = vadd.f32 %v4222_v44, %v2691_v46  ;;  %v4425_v46 = vld [vmem:[#allocation15] sm:$0xff] }
 0x344   : > { %4719 = vmatpush.bf16.msra.mxu2 %v7628_v40 }
 0x345   : > { %4694 = vmatmul.bf16.vlgmr.msra.gmra.mxu0 %v4426_v43  ;;  %v4235_v5 = vpop.f32.mrf.mxu1 }
 0x346   : > { %4707 = vmatmul.bf16.vlgmr.msra.gmra.mxu1 %v4427_v42  ;;  %v4236_v2 = vadd.f32 %v4235_v5, %v4223_v47  ;;  %4732 = vmatpush.bf16.msra.mxu3 %v7636_v17 }
 0x34a   : > { %v4248_v45 = vpop.f32.mrf.mxu2  ;;  %v4224_v57 = vpop.f32.mrf.mxu0 }
 0x34b   : > { %v4249_v48 = vadd.f32 %v4248_v45, %v4236_v2 }
 0x34c   : > { %v4261_v7 = vpop.f32.mrf.mxu3 }
 0x34d   : > { %v4237_v0 = vpop.f32.mrf.mxu1  ;;  %v4262_v3 = vadd.f32 %v4261_v7, %v4249_v48 }
 0x352   : > { %v4250_v31 = vpop.f32.mrf.mxu2 }
 0x354   : > { %v4263_v6 = vpop.f32.mrf.mxu3 }
 0x362   : > { %v4274_v39 = vpop.f32.mrf.mxu0 }
 0x363   : > { %v4275_v49 = vadd.f32 %v4274_v39, %v4262_v3 }
 0x365   : > { %v4287_v50 = vpop.f32.mrf.mxu1 }
 0x366   : > { %v4288_v8 = vadd.f32 %v4287_v50, %v4275_v49 }
 0x36a   : > { %v4300_v53 = vpop.f32.mrf.mxu2  ;;  %v4276_v61 = vpop.f32.mrf.mxu0 }
 0x36b   : > { %v4301_v51 = vadd.f32 %v4300_v53, %v4288_v8 }
 0x36c   : > { %v4313_v54 = vpop.f32.mrf.mxu3 }
 0x36d   : > { %v4314_v60 = vadd.f32 %v4313_v54, %v4301_v51  ;;  %v4289_v62 = vpop.f32.mrf.mxu1 }
 0x36f   : > { %v4423_v1 = vmax.f32 %v4314_v60, 0.0 }
 0x371   : > { %v4428_v63 = vpack.c.bf16 %v4423_v1, %v4423_v1 }
 0x372   : > { %v4302_v4 = vpop.f32.mrf.mxu2 }
 0x373   : > { %4720 = vmatmul.bf16.vlgmr.msra.gmra.mxu2 %v4428_v63 }
 0x374   : > { %v4315_v26 = vpop.f32.mrf.mxu3 }
 0x382   : > { %v4326_v13 = vpop.f32.mrf.mxu0 }
 0x383   : > { %v4327_v20 = vadd.f32 %v4326_v13, %v2692_v18 }
 0x385   : > { %v4339_v24 = vpop.f32.mrf.mxu1 }
 0x386   : > { %v4340_v22 = vadd.f32 %v4339_v24, %v4327_v20 }
 0x38a   : > { %v4352_v14 = vpop.f32.mrf.mxu2  ;;  %v4328_v16 = vpop.f32.mrf.mxu0 }
 0x38b   : > { %v4353_v23 = vadd.f32 %v4352_v14, %v4340_v22 }
 0x38c   : > { %v4365_v15 = vpop.f32.mrf.mxu3 }
 0x38d   : > { %v4341_v21 = vpop.f32.mrf.mxu1  ;;  %v4366_v56 = vadd.f32 %v4365_v15, %v4353_v23 }
 0x392   : > { %v4354_v10 = vpop.f32.mrf.mxu2 }
 0x394   : > { %v4367_v19 = vpop.f32.mrf.mxu3 }
 0x3a2   : > { %v4378_v25 = vpop.f32.mrf.mxu0 }
 0x3a3   : > { %v4379_v30 = vadd.f32 %v4378_v25, %v4366_v56 }
 0x3a5   : > { %v4391_v28 = vpop.f32.mrf.mxu1 }
 0x3a6   : > { %v4392_v32 = vadd.f32 %v4391_v28, %v4379_v30 }
 0x3aa   : > { %v4404_v34 = vpop.f32.mrf.mxu2  ;;  %v4380_v37 = vpop.f32.mrf.mxu0 }
 0x3ab   : > { %v4405_v35 = vadd.f32 %v4404_v34, %v4392_v32 }
 0x3ac   : > { %v4417_v36 = vpop.f32.mrf.mxu3 }
 0x3ad   : > { %v4393_v38 = vpop.f32.mrf.mxu1  ;;  %v4418_v41 = vadd.f32 %v4417_v36, %v4405_v35 }
 0x3af   : > { %v4424_v42 = vmax.f32 %v4418_v41, 0.0 }
 0x3b1   : > { %v4429_v43 = vpack.c.bf16 %v4424_v42, %v4424_v42 }
 0x3b2   : > { %v4406_v44 = vpop.f32.mrf.mxu2 }
 0x3b3   : > { %4733 = vmatmul.bf16.vlgmr.msra.gmra.mxu3 %v4429_v43 }
 0x3b4   : > { %v4419_v12 = vpop.f32.mrf.mxu3 }
 0x3c2   : > { %v4695_v5 = vpop.f32.mrf.mxu0 }
 0x3c3   : > { %v4708_v33 = vpop.f32.mrf.mxu1 }
 0x3c4   : > { %v4709_v45 = vadd.f32 %v4708_v33, %v4695_v5 }
 0x3ca   : > { %v4697_v7 = vpop.f32.mrf.mxu0 }
 0x3cb   : > { %v4710_v59 = vpop.f32.mrf.mxu1 }
 0x3f6   : > { %v4721_v57 = vpop.f32.mrf.mxu2 }
 0x3f7   : > { %v4722_v40 = vadd.f32 %v4721_v57, %v4709_v45 }
 0x3fe   : > { %v4723_v0 = vpop.f32.mrf.mxu2 }
 0x436   : > { %v4734_v31 = vpop.f32.mrf.mxu3 }
 0x437   : > { %v4735_v6 = vadd.f32 %v4734_v31, %v4722_v40 }
 0x439   : > { %v4738_v47 = vadd.f32 %v4735_v6, %v4425_v46 }
 0x43a   : > { %4743 = sbr.rel (%p7093_p1) target bundleno = 1094 (0x446), region = 84 }
 0x43b   : > { %4739 = vst [vmem:[#allocation15] sm:$0xff] %v4738_v47 }
 0x43e   : > { %v4736_v2 = vpop.f32.mrf.mxu3 }
 0x43f   : > { %v7748_v3 = vld [vmem:[#allocation14] ss:$0 sm:$0xff] }
 0x442   : > { %v4744_v48 = vld [vmem:[#allocation15] sm:$0xff] }
 0x443   : > { %v4749_v39 = vadd.f32 %v7748_v3, %v4744_v48 }
 0x445   : > { %4750 = vst [vmem:[#allocation15] sm:$0xff] %v4749_v39 }
 0x446 PF: > { %p7702_p4 = scmp.eq.s32.totalorder %s8114_s28, 1  ;;  %s8054_s29 = smov [#allocation15]  }
 0x447   : > { %s4757_s17 = sshll.u32 %s8054_s29, 4  ;;  %s4759_s3 = sshll.u32 %s8991_s7, 4  ;;  %s4758_s17 = int_to_ptr.vmem [resolvable:$true] %s4757_s17  ;;  %s4760_s3 = int_to_ptr.hbm [resolvable:$true] %s4759_s3 }
 0x448   : > { %7667 = dma.vmem_to_hbm [thread:$0]  (%p7702_p4), %s4758_s17, 128, %s4760_s3, [#allocation5]  }
 0x449   : > { %8024 = dma.done.wait (%p7702_p4), [#allocation5], 128  }
 0x44a   : > { %8026 = vsyncadd (%p7702_p4), [#allocation5], 4294967168 }
 0x44b PF: > { %p23_p5 = scmp.ge.s32.totalorder %s8152_s21, 4   ;;  %s9008_s24 = smov %s8033_s25 }
 0x44c   : > { %s9009_s25 = smov %s8037_s26  ;;  %s9010_s26 = smov %s8163_s30 }
 0x44d   : > { %s9011_s27 = smov %s8152_s21  ;;  %25 = sbr.rel (!%p23_p5) target bundleno = 13 (0xd), region = 134 }
 0x452   :  { %4773 = vsyncpa [#allocation4], 1 }
 0x453   :  { %4775 = vsyncpa [#allocation4 + $0x1], 1 }
 0x454   :  { %4776 = vsyncpa [#allocation7], 1 }
 0x455   :  { %4777 = vsyncpa [#allocation10], 1 }
 0x456   :  { %4779 = vsyncpa [#allocation10 + $0x1], 1 }
 0x457   :  { %4780 = vsyncpa [#allocation13], 1 }
 0x458   :  { %4782 = vsyncpa [#allocation13 + $0x1], 1 }
 0x459   :  { %4783 = vsyncpa [#allocation5], 1 }
 0x45a   :  { %4785 = vsyncpa [#allocation5 + $0x1], 1 }

</bundles_post_ra>
